<compile_context>
chip_gen: v6e
topology: v6e:2x2x1
jax: 0.10.0
libtpu: 0.0.40
codegen_flags: <defaults>
</compile_context>

<pallas_src>
import jax
import jax.numpy as jnp
from jax.experimental import pallas as pl
from jax.experimental.pallas import tpu as pltpu


def _convt_elu_kernel_factory(C_in, C_out, TH, W, Wd):
    """Kernel for one (image, row-tile) step."""
    C4 = 4 * C_out
    Lo = TH * Wd - 4                      # last 4 lanes of the last row are junk -> never needed
    offsets = [dh * Wd + 2 * dw for dh in range(3) for dw in range(3)]

    def kernel(xt_ref, w_ref, o_ref):
        # xt_ref: (1, 1, Cin, (TH+2)*Wd)  column-duplicated padded input slab (compute dtype)
        # w_ref : (4*Cout, 9*Cin + 1)     block-sparse ConvT weight + bias column (resident)
        # o_ref : (1, Cout, 2*TH, 2*W)    NCHW output tile (written directly, no post-pass)
        taps = [xt_ref[0, 0, :, pl.ds(off, Lo)] for off in offsets]       # 9 x (Cin, Lo)
        ones = jnp.ones((1, Lo), dtype=taps[0].dtype)                     # bias row (folded bias)
        patch = jnp.concatenate(taps + [ones], axis=0)                    # (9*Cin+1, Lo)
        acc = jnp.dot(w_ref[...], patch,
                      preferred_element_type=jnp.float32)                 # (4*Cout, Lo), f32

        lane = jax.lax.broadcasted_iota(jnp.int32, (1, Lo), 1)
        even = (lane & 1) == 0             # even output column -> w-parity s=0 block

        for r in range(2):                 # output-row parity
            s0 = acc[(2 * r) * C_out:(2 * r + 1) * C_out]                 # (Cout, Lo)
            s1 = acc[(2 * r + 1) * C_out:(2 * r + 2) * C_out]             # (Cout, Lo)
            sel = jnp.where(even, s0, s1)
            # ELU (alpha=1) in f32; junk lanes stay finite and are never stored.
            elu = jnp.where(sel > 0, sel, jnp.exp(jnp.minimum(sel, 0.0)) - 1.0)
            elu = elu.astype(o_ref.dtype)
            for j in range(TH):            # static unroll: 2 narrow VMEM stores per input row
                o_ref[0, :, 2 * j + r, :] = elu[:, j * Wd:j * Wd + 2 * W]

    return kernel


def _vmem_budget():
    """Per-generation VMEM sizing (v5e/v6e: 128 MiB, v7x: 64 MiB per TensorCore)."""
    try:
        cap = int(getattr(pltpu.get_tpu_info(), "vmem_capacity_bytes", 64 << 20))
    except Exception:
        cap = 64 << 20
    limit = min((cap * 3) // 4, 96 << 20)   # 96 MiB on v5e/v6e, 48 MiB on v7x
    return limit, limit // 2                # (vmem_limit_bytes, block-sizing budget)


def _choose_tile_rows(N, H, W, C_in, C_out, c_bytes, o_bytes, budget, max_unroll=64):
    """Largest row tile TH | H whose (double-buffered) footprint fits the budget."""
    Wd = 2 * (W + 2)
    K = 9 * C_in + 1
    C4 = 4 * C_out

    def fits(th):
        lh = (th + 2) * Wd
        lo = th * Wd
        in_blk = C_in * lh * c_bytes
        out_blk = C_out * (2 * th) * (2 * W) * o_bytes
        inter = K * lo * c_bytes + (C4 + 2 * C_out) * lo * 4 + in_blk     # patch/acc/sel scratch
        return 2 * in_blk + 2 * out_blk + C4 * K * c_bytes + inter <= budget

    # BlockSpec constraint: when the H axis is split, 2*TH must be a multiple of 8.
    cands = [d for d in range(1, H + 1)
             if H % d == 0 and (d == H or (d % 4 == 0 and d <= max_unroll))]
    feas = [d for d in cands if fits(d)]
    if not feas:
        return min(cands) if cands else H
    th = max(feas)
    if N == 1:
        # give the grid >= 2 steps so a v7x megacore can shard the row axis (free on 1-TC chips)
        smaller = [d for d in feas if d <= H // 2]
        if smaller:
            th = max(smaller)
    return th


def upsampling_block(x, weight, bias, *, compute_dtype=jnp.bfloat16, out_dtype=None,
                     tile_rows=None):
    """ConvTranspose2d(Cin, Cout, 4, stride=2, padding=1) + ELU.  NCHW -> NCHW (2H, 2W)."""
    N, C_in, H, W = x.shape
    assert weight.shape[0] == C_in and weight.shape[2:] == (4, 4)
    C_out = weight.shape[1]
    out_dtype = x.dtype if out_dtype is None else out_dtype

    K9 = 9 * C_in
    C4 = 4 * C_out
    Wd = 2 * (W + 2)

    vmem_limit, budget = _vmem_budget()
    TH = tile_rows if tile_rows is not None else _choose_tile_rows(
        N, H, W, C_in, C_out,
        jnp.dtype(compute_dtype).itemsize, jnp.dtype(out_dtype).itemsize, budget)
    assert H % TH == 0, (H, TH)
    NT = H // TH
    THp = TH + 2
    Lh = THp * Wd

    # ---- block-sparse weight (4*Cout, 9*Cin) + bias column:  out parity (r,s) uses tap (dh,dw)
    #      with (kh, kw) = (3+r-2*dh, 3+s-2*dw) when both lie in [0, 3]; zero otherwise. ----
    wt = jnp.zeros((C4, K9), dtype=jnp.float32)
    for r in (0, 1):
        for s in (0, 1):
            row = (2 * r + s) * C_out
            for dh in range(3):
                kh = 3 + r - 2 * dh
                if not 0 <= kh <= 3:
                    continue
                for dw in range(3):
                    kw = 3 + s - 2 * dw
                    if not 0 <= kw <= 3:
                        continue
                    col = (dh * 3 + dw) * C_in
                    wt = wt.at[row:row + C_out, col:col + C_in].set(weight[:, :, kh, kw].T)
    b_col = jnp.tile(bias.astype(jnp.float32), 4).reshape(C4, 1)
    wmat = jnp.concatenate([wt, b_col], axis=1).astype(compute_dtype)     # (C4, K9+1)

    # ---- padded, column-duplicated input slabs (the only input prep; ~2x Cin bytes) ----
    xp = jnp.pad(x, ((0, 0), (0, 0), (1, 1), (1, 1)))                     # (N, Cin, H+2, W+2)
    xd = jnp.repeat(xp, 2, axis=3)                                        # (N, Cin, H+2, Wd)
    xt = jnp.stack([xd[:, :, t * TH:t * TH + THp, :] for t in range(NT)], axis=1)
    xt = xt.reshape(N, NT, C_in, Lh).astype(compute_dtype)                # (N, NT, Cin, Lh)

    kernel = _convt_elu_kernel_factory(C_in, C_out, TH, W, Wd)
    out = pl.pallas_call(
        kernel,
        out_shape=jax.ShapeDtypeStruct((N, C_out, 2 * H, 2 * W), out_dtype),
        grid_spec=pltpu.PrefetchScalarGridSpec(
            num_scalar_prefetch=0,
            grid=(N, NT),
            in_specs=[
                # dominant stream; add pipeline_mode=pl.Buffered(3) if profiling shows exposed DMA
                pl.BlockSpec((1, 1, C_in, Lh), lambda n, t: (n, t, 0, 0)),
                pl.BlockSpec((C4, K9 + 1), lambda n, t: (0, 0)),          # resident weight+bias
            ],
            out_specs=pl.BlockSpec((1, C_out, 2 * TH, 2 * W), lambda n, t: (n, 0, t, 0)),
        ),
        compiler_params=pltpu.CompilerParams(
            dimension_semantics=("parallel", "parallel"),
            vmem_limit_bytes=vmem_limit),
    )(xt, wmat)
    return out


def _reference(x, weight, bias):
    # ConvTranspose2d == dilated conv with spatially-flipped, IO-swapped kernel.
    w = jnp.flip(weight, (2, 3)).transpose(1, 0, 2, 3)                    # OIHW
    y = jax.lax.conv_general_dilated(
        x, w, window_strides=(1, 1), padding=((2, 2), (2, 2)),
        lhs_dilation=(2, 2),
        dimension_numbers=("NCHW", "OIHW", "NCHW"))
    y = y + bias[None, :, None, None]
    return jnp.where(y > 0, y, jnp.exp(jnp.minimum(y, 0.0)) - 1.0)


if __name__ == "__main__":
    key = jax.random.PRNGKey(0)
    k_x, k_w, k_b = jax.random.split(key, 3)

    N, C_in, C_out, H, W = 2, 4, 8, 16, 16
    x = jax.random.normal(k_x, (N, C_in, H, W), dtype=jnp.float32)
    # ConvTranspose2d weight shape: (in_channels, out_channels, kH, kW)
    weight = jax.random.normal(k_w, (C_in, C_out, 4, 4), dtype=jnp.float32) * 0.1
    bias = jax.random.normal(k_b, (C_out,), dtype=jnp.float32) * 0.1

    y_ref = jax.block_until_ready(_reference(x, weight, bias))

    # f32 compute path: matches the XLA reference to float32 accuracy.
    run_f32 = jax.jit(lambda a, w, b: upsampling_block(a, w, b, compute_dtype=jnp.float32))
    y32 = jax.block_until_ready(run_f32(x, weight, bias))
    assert y32.shape == (N, C_out, 2 * H, 2 * W), y32.shape
    assert jnp.allclose(y32, y_ref, atol=1e-4, rtol=1e-4), float(jnp.max(jnp.abs(y32 - y_ref)))

    # default bf16 compute path (halves the dominant input stream; f32 accumulate + epilogue).
    run_bf16 = jax.jit(lambda a, w, b: upsampling_block(a, w, b))
    y = jax.block_until_ready(run_bf16(x, weight, bias))
    assert y.shape == (N, C_out, 2 * H, 2 * W), y.shape
    assert jnp.allclose(y, y_ref, atol=5e-2, rtol=5e-2), float(jnp.max(jnp.abs(y - y_ref)))

    print("KERNEL_OK")
</pallas_src>

<mosaic_0001>
module attributes {stable_mosaic.version = 11 : i64} {
  func.func @kernel(%arg0: i32, %arg1: i32, %arg2: memref<1x1x4x648xf32, #tpu.memory_space<vmem>>, %arg3: memref<32x37xf32, #tpu.memory_space<vmem>>, %arg4: memref<1x8x32x32xf32, #tpu.memory_space<vmem>>) attributes {dimension_semantics = [#tpu.dimension_semantics<parallel>, #tpu.dimension_semantics<parallel>], iteration_bounds = array<i64: 2, 1>, scalar_prefetch = 0 : i64, scratch_operands = 0 : i64, tpu.core_type = #tpu.core_type<tc>, window_params = [{transform_indices = @transform_0, window_bounds = array<i64: 1, 1, 4, 648>}, {pipeline_mode = #tpu.pipeline_mode<synchronous>, transform_indices = @transform_1, window_bounds = array<i64: 32, 37>}, {transform_indices = @transform_2, window_bounds = array<i64: 1, 8, 32, 32>}]} {
    %c0 = arith.constant 0 : index
    %c0_0 = arith.constant 0 : index
    %c0_1 = arith.constant 0 : index
    %c0_2 = arith.constant 0 : index
    %0 = vector.load %arg2[%c0, %c0_0, %c0_1, %c0_2] : memref<1x1x4x648xf32, #tpu.memory_space<vmem>>, vector<1x1x4x572xf32>
    %1 = vector.shape_cast %0 : vector<1x1x4x572xf32> to vector<4x572xf32>
    %c0_3 = arith.constant 0 : index
    %c0_4 = arith.constant 0 : index
    %c0_5 = arith.constant 0 : index
    %c2 = arith.constant 2 : index
    %2 = vector.load %arg2[%c0_3, %c0_4, %c0_5, %c2] : memref<1x1x4x648xf32, #tpu.memory_space<vmem>>, vector<1x1x4x572xf32>
    %3 = vector.shape_cast %2 : vector<1x1x4x572xf32> to vector<4x572xf32>
    %c0_6 = arith.constant 0 : index
    %c0_7 = arith.constant 0 : index
    %c0_8 = arith.constant 0 : index
    %c4 = arith.constant 4 : index
    %4 = vector.load %arg2[%c0_6, %c0_7, %c0_8, %c4] : memref<1x1x4x648xf32, #tpu.memory_space<vmem>>, vector<1x1x4x572xf32>
    %5 = vector.shape_cast %4 : vector<1x1x4x572xf32> to vector<4x572xf32>
    %c0_9 = arith.constant 0 : index
    %c0_10 = arith.constant 0 : index
    %c0_11 = arith.constant 0 : index
    %c36 = arith.constant 36 : index
    %6 = vector.load %arg2[%c0_9, %c0_10, %c0_11, %c36] : memref<1x1x4x648xf32, #tpu.memory_space<vmem>>, vector<1x1x4x572xf32>
    %7 = vector.shape_cast %6 : vector<1x1x4x572xf32> to vector<4x572xf32>
    %c0_12 = arith.constant 0 : index
    %c0_13 = arith.constant 0 : index
    %c0_14 = arith.constant 0 : index
    %c38 = arith.constant 38 : index
    %8 = vector.load %arg2[%c0_12, %c0_13, %c0_14, %c38] : memref<1x1x4x648xf32, #tpu.memory_space<vmem>>, vector<1x1x4x572xf32>
    %9 = vector.shape_cast %8 : vector<1x1x4x572xf32> to vector<4x572xf32>
    %c0_15 = arith.constant 0 : index
    %c0_16 = arith.constant 0 : index
    %c0_17 = arith.constant 0 : index
    %c40 = arith.constant 40 : index
    %10 = vector.load %arg2[%c0_15, %c0_16, %c0_17, %c40] : memref<1x1x4x648xf32, #tpu.memory_space<vmem>>, vector<1x1x4x572xf32>
    %11 = vector.shape_cast %10 : vector<1x1x4x572xf32> to vector<4x572xf32>
    %c0_18 = arith.constant 0 : index
    %c0_19 = arith.constant 0 : index
    %c0_20 = arith.constant 0 : index
    %c72 = arith.constant 72 : index
    %12 = vector.load %arg2[%c0_18, %c0_19, %c0_20, %c72] : memref<1x1x4x648xf32, #tpu.memory_space<vmem>>, vector<1x1x4x572xf32>
    %13 = vector.shape_cast %12 : vector<1x1x4x572xf32> to vector<4x572xf32>
    %c0_21 = arith.constant 0 : index
    %c0_22 = arith.constant 0 : index
    %c0_23 = arith.constant 0 : index
    %c74 = arith.constant 74 : index
    %14 = vector.load %arg2[%c0_21, %c0_22, %c0_23, %c74] : memref<1x1x4x648xf32, #tpu.memory_space<vmem>>, vector<1x1x4x572xf32>
    %15 = vector.shape_cast %14 : vector<1x1x4x572xf32> to vector<4x572xf32>
    %c0_24 = arith.constant 0 : index
    %c0_25 = arith.constant 0 : index
    %c0_26 = arith.constant 0 : index
    %c76 = arith.constant 76 : index
    %16 = vector.load %arg2[%c0_24, %c0_25, %c0_26, %c76] : memref<1x1x4x648xf32, #tpu.memory_space<vmem>>, vector<1x1x4x572xf32>
    %17 = vector.shape_cast %16 : vector<1x1x4x572xf32> to vector<4x572xf32>
    %cst = arith.constant 1.000000e+00 : f32
    %18 = vector.broadcast %cst : f32 to vector<1x572xf32>
    %19 = tpu.concatenate %1, %3, %5, %7, %9, %11, %13, %15, %17, %18 in 0 : vector<4x572xf32>, vector<4x572xf32>, vector<4x572xf32>, vector<4x572xf32>, vector<4x572xf32>, vector<4x572xf32>, vector<4x572xf32>, vector<4x572xf32>, vector<4x572xf32>, vector<1x572xf32> -> vector<37x572xf32>
    %c0_27 = arith.constant 0 : index
    %c0_28 = arith.constant 0 : index
    %20 = vector.load %arg3[%c0_27, %c0_28] : memref<32x37xf32, #tpu.memory_space<vmem>>, vector<32x37xf32>
    %cst_29 = arith.constant dense<0.000000e+00> : vector<32x572xf32>
    %21 = tpu.matmul %20, %19, %cst_29 {dimension_numbers = #tpu.dot_dimension_numbers<[1], [0], [0], [1], [0, 0, 1, 1], [], []>} : vector<32x37xf32>, vector<37x572xf32>, vector<32x572xf32> -> vector<32x572xf32>
    %22 = tpu.iota {dimensions = array<i32: 1>} : vector<1x572xi32>
    %c1_i32 = arith.constant 1 : i32
    %23 = vector.broadcast %c1_i32 : i32 to vector<1x572xi32>
    %24 = arith.andi %22, %23 : vector<1x572xi32>
    %c0_i32 = arith.constant 0 : i32
    %25 = vector.broadcast %c0_i32 : i32 to vector<1x572xi32>
    %26 = arith.cmpi eq, %24, %25 : vector<1x572xi32>
    %27 = vector.extract_strided_slice %21 {offsets = [0, 0], sizes = [8, 572], strides = [1, 1]} : vector<32x572xf32> to vector<8x572xf32>
    %28 = vector.extract_strided_slice %21 {offsets = [8, 0], sizes = [8, 572], strides = [1, 1]} : vector<32x572xf32> to vector<8x572xf32>
    %29 = vector.shape_cast %26 : vector<1x572xi1> to vector<1x572xi1>
    %30 = vector.broadcast %29 : vector<1x572xi1> to vector<8x572xi1>
    %31 = arith.select %30, %27, %28 : vector<8x572xi1>, vector<8x572xf32>
    %cst_30 = arith.constant 0.000000e+00 : f32
    %32 = vector.broadcast %cst_30 : f32 to vector<8x572xf32>
    %33 = arith.cmpf ogt, %31, %32 : vector<8x572xf32>
    %cst_31 = arith.constant 0.000000e+00 : f32
    %34 = vector.broadcast %cst_31 : f32 to vector<8x572xf32>
    %35 = arith.minimumf %31, %34 : vector<8x572xf32>
    %36 = math.exp %35 : vector<8x572xf32>
    %cst_32 = arith.constant 1.000000e+00 : f32
    %37 = vector.broadcast %cst_32 : f32 to vector<8x572xf32>
    %38 = arith.subf %36, %37 : vector<8x572xf32>
    %39 = arith.select %33, %31, %38 : vector<8x572xi1>, vector<8x572xf32>
    %40 = vector.extract_strided_slice %39 {offsets = [0, 0], sizes = [8, 32], strides = [1, 1]} : vector<8x572xf32> to vector<8x32xf32>
    %c0_33 = arith.constant 0 : index
    %c0_34 = arith.constant 0 : index
    %c0_35 = arith.constant 0 : index
    %c0_36 = arith.constant 0 : index
    %41 = vector.load %arg4[%c0_33, %c0_34, %c0_35, %c0_36] : memref<1x8x32x32xf32, #tpu.memory_space<vmem>>, vector<1x8x1x32xf32>
    %42 = vector.shape_cast %41 : vector<1x8x1x32xf32> to vector<8x32xf32>
    %43 = vector.shape_cast %40 : vector<8x32xf32> to vector<1x8x1x32xf32>
    tpu.vector_store %arg4[%c0_33, %c0_34, %c0_35, %c0_36], %43 {strides = array<i32>} : memref<1x8x32x32xf32, #tpu.memory_space<vmem>>, vector<1x8x1x32xf32>,
    %44 = vector.extract_strided_slice %39 {offsets = [0, 36], sizes = [8, 32], strides = [1, 1]} : vector<8x572xf32> to vector<8x32xf32>
    %c0_37 = arith.constant 0 : index
    %c0_38 = arith.constant 0 : index
    %c2_39 = arith.constant 2 : index
    %c0_40 = arith.constant 0 : index
    %45 = vector.load %arg4[%c0_37, %c0_38, %c2_39, %c0_40] : memref<1x8x32x32xf32, #tpu.memory_space<vmem>>, vector<1x8x1x32xf32>
    %46 = vector.shape_cast %45 : vector<1x8x1x32xf32> to vector<8x32xf32>
    %47 = vector.shape_cast %44 : vector<8x32xf32> to vector<1x8x1x32xf32>
    tpu.vector_store %arg4[%c0_37, %c0_38, %c2_39, %c0_40], %47 {strides = array<i32>} : memref<1x8x32x32xf32, #tpu.memory_space<vmem>>, vector<1x8x1x32xf32>,
    %48 = vector.extract_strided_slice %39 {offsets = [0, 72], sizes = [8, 32], strides = [1, 1]} : vector<8x572xf32> to vector<8x32xf32>
    %c0_41 = arith.constant 0 : index
    %c0_42 = arith.constant 0 : index
    %c4_43 = arith.constant 4 : index
    %c0_44 = arith.constant 0 : index
    %49 = vector.load %arg4[%c0_41, %c0_42, %c4_43, %c0_44] : memref<1x8x32x32xf32, #tpu.memory_space<vmem>>, vector<1x8x1x32xf32>
    %50 = vector.shape_cast %49 : vector<1x8x1x32xf32> to vector<8x32xf32>
    %51 = vector.shape_cast %48 : vector<8x32xf32> to vector<1x8x1x32xf32>
    tpu.vector_store %arg4[%c0_41, %c0_42, %c4_43, %c0_44], %51 {strides = array<i32>} : memref<1x8x32x32xf32, #tpu.memory_space<vmem>>, vector<1x8x1x32xf32>,
    %52 = vector.extract_strided_slice %39 {offsets = [0, 108], sizes = [8, 32], strides = [1, 1]} : vector<8x572xf32> to vector<8x32xf32>
    %c0_45 = arith.constant 0 : index
    %c0_46 = arith.constant 0 : index
    %c6 = arith.constant 6 : index
    %c0_47 = arith.constant 0 : index
    %53 = vector.load %arg4[%c0_45, %c0_46, %c6, %c0_47] : memref<1x8x32x32xf32, #tpu.memory_space<vmem>>, vector<1x8x1x32xf32>
    %54 = vector.shape_cast %53 : vector<1x8x1x32xf32> to vector<8x32xf32>
    %55 = vector.shape_cast %52 : vector<8x32xf32> to vector<1x8x1x32xf32>
    tpu.vector_store %arg4[%c0_45, %c0_46, %c6, %c0_47], %55 {strides = array<i32>} : memref<1x8x32x32xf32, #tpu.memory_space<vmem>>, vector<1x8x1x32xf32>,
    %56 = vector.extract_strided_slice %39 {offsets = [0, 144], sizes = [8, 32], strides = [1, 1]} : vector<8x572xf32> to vector<8x32xf32>
    %c0_48 = arith.constant 0 : index
    %c0_49 = arith.constant 0 : index
    %c8 = arith.constant 8 : index
    %c0_50 = arith.constant 0 : index
    %57 = vector.load %arg4[%c0_48, %c0_49, %c8, %c0_50] : memref<1x8x32x32xf32, #tpu.memory_space<vmem>>, vector<1x8x1x32xf32>
    %58 = vector.shape_cast %57 : vector<1x8x1x32xf32> to vector<8x32xf32>
    %59 = vector.shape_cast %56 : vector<8x32xf32> to vector<1x8x1x32xf32>
    tpu.vector_store %arg4[%c0_48, %c0_49, %c8, %c0_50], %59 {strides = array<i32>} : memref<1x8x32x32xf32, #tpu.memory_space<vmem>>, vector<1x8x1x32xf32>,
    %60 = vector.extract_strided_slice %39 {offsets = [0, 180], sizes = [8, 32], strides = [1, 1]} : vector<8x572xf32> to vector<8x32xf32>
    %c0_51 = arith.constant 0 : index
    %c0_52 = arith.constant 0 : index
    %c10 = arith.constant 10 : index
    %c0_53 = arith.constant 0 : index
    %61 = vector.load %arg4[%c0_51, %c0_52, %c10, %c0_53] : memref<1x8x32x32xf32, #tpu.memory_space<vmem>>, vector<1x8x1x32xf32>
    %62 = vector.shape_cast %61 : vector<1x8x1x32xf32> to vector<8x32xf32>
    %63 = vector.shape_cast %60 : vector<8x32xf32> to vector<1x8x1x32xf32>
    tpu.vector_store %arg4[%c0_51, %c0_52, %c10, %c0_53], %63 {strides = array<i32>} : memref<1x8x32x32xf32, #tpu.memory_space<vmem>>, vector<1x8x1x32xf32>,
    %64 = vector.extract_strided_slice %39 {offsets = [0, 216], sizes = [8, 32], strides = [1, 1]} : vector<8x572xf32> to vector<8x32xf32>
    %c0_54 = arith.constant 0 : index
    %c0_55 = arith.constant 0 : index
    %c12 = arith.constant 12 : index
    %c0_56 = arith.constant 0 : index
    %65 = vector.load %arg4[%c0_54, %c0_55, %c12, %c0_56] : memref<1x8x32x32xf32, #tpu.memory_space<vmem>>, vector<1x8x1x32xf32>
    %66 = vector.shape_cast %65 : vector<1x8x1x32xf32> to vector<8x32xf32>
    %67 = vector.shape_cast %64 : vector<8x32xf32> to vector<1x8x1x32xf32>
    tpu.vector_store %arg4[%c0_54, %c0_55, %c12, %c0_56], %67 {strides = array<i32>} : memref<1x8x32x32xf32, #tpu.memory_space<vmem>>, vector<1x8x1x32xf32>,
    %68 = vector.extract_strided_slice %39 {offsets = [0, 252], sizes = [8, 32], strides = [1, 1]} : vector<8x572xf32> to vector<8x32xf32>
    %c0_57 = arith.constant 0 : index
    %c0_58 = arith.constant 0 : index
    %c14 = arith.constant 14 : index
    %c0_59 = arith.constant 0 : index
    %69 = vector.load %arg4[%c0_57, %c0_58, %c14, %c0_59] : memref<1x8x32x32xf32, #tpu.memory_space<vmem>>, vector<1x8x1x32xf32>
    %70 = vector.shape_cast %69 : vector<1x8x1x32xf32> to vector<8x32xf32>
    %71 = vector.shape_cast %68 : vector<8x32xf32> to vector<1x8x1x32xf32>
    tpu.vector_store %arg4[%c0_57, %c0_58, %c14, %c0_59], %71 {strides = array<i32>} : memref<1x8x32x32xf32, #tpu.memory_space<vmem>>, vector<1x8x1x32xf32>,
    %72 = vector.extract_strided_slice %39 {offsets = [0, 288], sizes = [8, 32], strides = [1, 1]} : vector<8x572xf32> to vector<8x32xf32>
    %c0_60 = arith.constant 0 : index
    %c0_61 = arith.constant 0 : index
    %c16 = arith.constant 16 : index
    %c0_62 = arith.constant 0 : index
    %73 = vector.load %arg4[%c0_60, %c0_61, %c16, %c0_62] : memref<1x8x32x32xf32, #tpu.memory_space<vmem>>, vector<1x8x1x32xf32>
    %74 = vector.shape_cast %73 : vector<1x8x1x32xf32> to vector<8x32xf32>
    %75 = vector.shape_cast %72 : vector<8x32xf32> to vector<1x8x1x32xf32>
    tpu.vector_store %arg4[%c0_60, %c0_61, %c16, %c0_62], %75 {strides = array<i32>} : memref<1x8x32x32xf32, #tpu.memory_space<vmem>>, vector<1x8x1x32xf32>,
    %76 = vector.extract_strided_slice %39 {offsets = [0, 324], sizes = [8, 32], strides = [1, 1]} : vector<8x572xf32> to vector<8x32xf32>
    %c0_63 = arith.constant 0 : index
    %c0_64 = arith.constant 0 : index
    %c18 = arith.constant 18 : index
    %c0_65 = arith.constant 0 : index
    %77 = vector.load %arg4[%c0_63, %c0_64, %c18, %c0_65] : memref<1x8x32x32xf32, #tpu.memory_space<vmem>>, vector<1x8x1x32xf32>
    %78 = vector.shape_cast %77 : vector<1x8x1x32xf32> to vector<8x32xf32>
    %79 = vector.shape_cast %76 : vector<8x32xf32> to vector<1x8x1x32xf32>
    tpu.vector_store %arg4[%c0_63, %c0_64, %c18, %c0_65], %79 {strides = array<i32>} : memref<1x8x32x32xf32, #tpu.memory_space<vmem>>, vector<1x8x1x32xf32>,
    %80 = vector.extract_strided_slice %39 {offsets = [0, 360], sizes = [8, 32], strides = [1, 1]} : vector<8x572xf32> to vector<8x32xf32>
    %c0_66 = arith.constant 0 : index
    %c0_67 = arith.constant 0 : index
    %c20 = arith.constant 20 : index
    %c0_68 = arith.constant 0 : index
    %81 = vector.load %arg4[%c0_66, %c0_67, %c20, %c0_68] : memref<1x8x32x32xf32, #tpu.memory_space<vmem>>, vector<1x8x1x32xf32>
    %82 = vector.shape_cast %81 : vector<1x8x1x32xf32> to vector<8x32xf32>
    %83 = vector.shape_cast %80 : vector<8x32xf32> to vector<1x8x1x32xf32>
    tpu.vector_store %arg4[%c0_66, %c0_67, %c20, %c0_68], %83 {strides = array<i32>} : memref<1x8x32x32xf32, #tpu.memory_space<vmem>>, vector<1x8x1x32xf32>,
    %84 = vector.extract_strided_slice %39 {offsets = [0, 396], sizes = [8, 32], strides = [1, 1]} : vector<8x572xf32> to vector<8x32xf32>
    %c0_69 = arith.constant 0 : index
    %c0_70 = arith.constant 0 : index
    %c22 = arith.constant 22 : index
    %c0_71 = arith.constant 0 : index
    %85 = vector.load %arg4[%c0_69, %c0_70, %c22, %c0_71] : memref<1x8x32x32xf32, #tpu.memory_space<vmem>>, vector<1x8x1x32xf32>
    %86 = vector.shape_cast %85 : vector<1x8x1x32xf32> to vector<8x32xf32>
    %87 = vector.shape_cast %84 : vector<8x32xf32> to vector<1x8x1x32xf32>
    tpu.vector_store %arg4[%c0_69, %c0_70, %c22, %c0_71], %87 {strides = array<i32>} : memref<1x8x32x32xf32, #tpu.memory_space<vmem>>, vector<1x8x1x32xf32>,
    %88 = vector.extract_strided_slice %39 {offsets = [0, 432], sizes = [8, 32], strides = [1, 1]} : vector<8x572xf32> to vector<8x32xf32>
    %c0_72 = arith.constant 0 : index
    %c0_73 = arith.constant 0 : index
    %c24 = arith.constant 24 : index
    %c0_74 = arith.constant 0 : index
    %89 = vector.load %arg4[%c0_72, %c0_73, %c24, %c0_74] : memref<1x8x32x32xf32, #tpu.memory_space<vmem>>, vector<1x8x1x32xf32>
    %90 = vector.shape_cast %89 : vector<1x8x1x32xf32> to vector<8x32xf32>
    %91 = vector.shape_cast %88 : vector<8x32xf32> to vector<1x8x1x32xf32>
    tpu.vector_store %arg4[%c0_72, %c0_73, %c24, %c0_74], %91 {strides = array<i32>} : memref<1x8x32x32xf32, #tpu.memory_space<vmem>>, vector<1x8x1x32xf32>,
    %92 = vector.extract_strided_slice %39 {offsets = [0, 468], sizes = [8, 32], strides = [1, 1]} : vector<8x572xf32> to vector<8x32xf32>
    %c0_75 = arith.constant 0 : index
    %c0_76 = arith.constant 0 : index
    %c26 = arith.constant 26 : index
    %c0_77 = arith.constant 0 : index
    %93 = vector.load %arg4[%c0_75, %c0_76, %c26, %c0_77] : memref<1x8x32x32xf32, #tpu.memory_space<vmem>>, vector<1x8x1x32xf32>
    %94 = vector.shape_cast %93 : vector<1x8x1x32xf32> to vector<8x32xf32>
    %95 = vector.shape_cast %92 : vector<8x32xf32> to vector<1x8x1x32xf32>
    tpu.vector_store %arg4[%c0_75, %c0_76, %c26, %c0_77], %95 {strides = array<i32>} : memref<1x8x32x32xf32, #tpu.memory_space<vmem>>, vector<1x8x1x32xf32>,
    %96 = vector.extract_strided_slice %39 {offsets = [0, 504], sizes = [8, 32], strides = [1, 1]} : vector<8x572xf32> to vector<8x32xf32>
    %c0_78 = arith.constant 0 : index
    %c0_79 = arith.constant 0 : index
    %c28 = arith.constant 28 : index
    %c0_80 = arith.constant 0 : index
    %97 = vector.load %arg4[%c0_78, %c0_79, %c28, %c0_80] : memref<1x8x32x32xf32, #tpu.memory_space<vmem>>, vector<1x8x1x32xf32>
    %98 = vector.shape_cast %97 : vector<1x8x1x32xf32> to vector<8x32xf32>
    %99 = vector.shape_cast %96 : vector<8x32xf32> to vector<1x8x1x32xf32>
    tpu.vector_store %arg4[%c0_78, %c0_79, %c28, %c0_80], %99 {strides = array<i32>} : memref<1x8x32x32xf32, #tpu.memory_space<vmem>>, vector<1x8x1x32xf32>,
    %100 = vector.extract_strided_slice %39 {offsets = [0, 540], sizes = [8, 32], strides = [1, 1]} : vector<8x572xf32> to vector<8x32xf32>
    %c0_81 = arith.constant 0 : index
    %c0_82 = arith.constant 0 : index
    %c30 = arith.constant 30 : index
    %c0_83 = arith.constant 0 : index
    %101 = vector.load %arg4[%c0_81, %c0_82, %c30, %c0_83] : memref<1x8x32x32xf32, #tpu.memory_space<vmem>>, vector<1x8x1x32xf32>
    %102 = vector.shape_cast %101 : vector<1x8x1x32xf32> to vector<8x32xf32>
    %103 = vector.shape_cast %100 : vector<8x32xf32> to vector<1x8x1x32xf32>
    tpu.vector_store %arg4[%c0_81, %c0_82, %c30, %c0_83], %103 {strides = array<i32>} : memref<1x8x32x32xf32, #tpu.memory_space<vmem>>, vector<1x8x1x32xf32>,
    %104 = vector.extract_strided_slice %21 {offsets = [16, 0], sizes = [8, 572], strides = [1, 1]} : vector<32x572xf32> to vector<8x572xf32>
    %105 = vector.extract_strided_slice %21 {offsets = [24, 0], sizes = [8, 572], strides = [1, 1]} : vector<32x572xf32> to vector<8x572xf32>
    %106 = vector.shape_cast %26 : vector<1x572xi1> to vector<1x572xi1>
    %107 = vector.broadcast %106 : vector<1x572xi1> to vector<8x572xi1>
    %108 = arith.select %107, %104, %105 : vector<8x572xi1>, vector<8x572xf32>
    %cst_84 = arith.constant 0.000000e+00 : f32
    %109 = vector.broadcast %cst_84 : f32 to vector<8x572xf32>
    %110 = arith.cmpf ogt, %108, %109 : vector<8x572xf32>
    %cst_85 = arith.constant 0.000000e+00 : f32
    %111 = vector.broadcast %cst_85 : f32 to vector<8x572xf32>
    %112 = arith.minimumf %108, %111 : vector<8x572xf32>
    %113 = math.exp %112 : vector<8x572xf32>
    %cst_86 = arith.constant 1.000000e+00 : f32
    %114 = vector.broadcast %cst_86 : f32 to vector<8x572xf32>
    %115 = arith.subf %113, %114 : vector<8x572xf32>
    %116 = arith.select %110, %108, %115 : vector<8x572xi1>, vector<8x572xf32>
    %117 = vector.extract_strided_slice %116 {offsets = [0, 0], sizes = [8, 32], strides = [1, 1]} : vector<8x572xf32> to vector<8x32xf32>
    %c0_87 = arith.constant 0 : index
    %c0_88 = arith.constant 0 : index
    %c1 = arith.constant 1 : index
    %c0_89 = arith.constant 0 : index
    %118 = vector.load %arg4[%c0_87, %c0_88, %c1, %c0_89] : memref<1x8x32x32xf32, #tpu.memory_space<vmem>>, vector<1x8x1x32xf32>
    %119 = vector.shape_cast %118 : vector<1x8x1x32xf32> to vector<8x32xf32>
    %120 = vector.shape_cast %117 : vector<8x32xf32> to vector<1x8x1x32xf32>
    tpu.vector_store %arg4[%c0_87, %c0_88, %c1, %c0_89], %120 {strides = array<i32>} : memref<1x8x32x32xf32, #tpu.memory_space<vmem>>, vector<1x8x1x32xf32>,
    %121 = vector.extract_strided_slice %116 {offsets = [0, 36], sizes = [8, 32], strides = [1, 1]} : vector<8x572xf32> to vector<8x32xf32>
    %c0_90 = arith.constant 0 : index
    %c0_91 = arith.constant 0 : index
    %c3 = arith.constant 3 : index
    %c0_92 = arith.constant 0 : index
    %122 = vector.load %arg4[%c0_90, %c0_91, %c3, %c0_92] : memref<1x8x32x32xf32, #tpu.memory_space<vmem>>, vector<1x8x1x32xf32>
    %123 = vector.shape_cast %122 : vector<1x8x1x32xf32> to vector<8x32xf32>
    %124 = vector.shape_cast %121 : vector<8x32xf32> to vector<1x8x1x32xf32>
    tpu.vector_store %arg4[%c0_90, %c0_91, %c3, %c0_92], %124 {strides = array<i32>} : memref<1x8x32x32xf32, #tpu.memory_space<vmem>>, vector<1x8x1x32xf32>,
    %125 = vector.extract_strided_slice %116 {offsets = [0, 72], sizes = [8, 32], strides = [1, 1]} : vector<8x572xf32> to vector<8x32xf32>
    %c0_93 = arith.constant 0 : index
    %c0_94 = arith.constant 0 : index
    %c5 = arith.constant 5 : index
    %c0_95 = arith.constant 0 : index
    %126 = vector.load %arg4[%c0_93, %c0_94, %c5, %c0_95] : memref<1x8x32x32xf32, #tpu.memory_space<vmem>>, vector<1x8x1x32xf32>
    %127 = vector.shape_cast %126 : vector<1x8x1x32xf32> to vector<8x32xf32>
    %128 = vector.shape_cast %125 : vector<8x32xf32> to vector<1x8x1x32xf32>
    tpu.vector_store %arg4[%c0_93, %c0_94, %c5, %c0_95], %128 {strides = array<i32>} : memref<1x8x32x32xf32, #tpu.memory_space<vmem>>, vector<1x8x1x32xf32>,
    %129 = vector.extract_strided_slice %116 {offsets = [0, 108], sizes = [8, 32], strides = [1, 1]} : vector<8x572xf32> to vector<8x32xf32>
    %c0_96 = arith.constant 0 : index
    %c0_97 = arith.constant 0 : index
    %c7 = arith.constant 7 : index
    %c0_98 = arith.constant 0 : index
    %130 = vector.load %arg4[%c0_96, %c0_97, %c7, %c0_98] : memref<1x8x32x32xf32, #tpu.memory_space<vmem>>, vector<1x8x1x32xf32>
    %131 = vector.shape_cast %130 : vector<1x8x1x32xf32> to vector<8x32xf32>
    %132 = vector.shape_cast %129 : vector<8x32xf32> to vector<1x8x1x32xf32>
    tpu.vector_store %arg4[%c0_96, %c0_97, %c7, %c0_98], %132 {strides = array<i32>} : memref<1x8x32x32xf32, #tpu.memory_space<vmem>>, vector<1x8x1x32xf32>,
    %133 = vector.extract_strided_slice %116 {offsets = [0, 144], sizes = [8, 32], strides = [1, 1]} : vector<8x572xf32> to vector<8x32xf32>
    %c0_99 = arith.constant 0 : index
    %c0_100 = arith.constant 0 : index
    %c9 = arith.constant 9 : index
    %c0_101 = arith.constant 0 : index
    %134 = vector.load %arg4[%c0_99, %c0_100, %c9, %c0_101] : memref<1x8x32x32xf32, #tpu.memory_space<vmem>>, vector<1x8x1x32xf32>
    %135 = vector.shape_cast %134 : vector<1x8x1x32xf32> to vector<8x32xf32>
    %136 = vector.shape_cast %133 : vector<8x32xf32> to vector<1x8x1x32xf32>
    tpu.vector_store %arg4[%c0_99, %c0_100, %c9, %c0_101], %136 {strides = array<i32>} : memref<1x8x32x32xf32, #tpu.memory_space<vmem>>, vector<1x8x1x32xf32>,
    %137 = vector.extract_strided_slice %116 {offsets = [0, 180], sizes = [8, 32], strides = [1, 1]} : vector<8x572xf32> to vector<8x32xf32>
    %c0_102 = arith.constant 0 : index
    %c0_103 = arith.constant 0 : index
    %c11 = arith.constant 11 : index
    %c0_104 = arith.constant 0 : index
    %138 = vector.load %arg4[%c0_102, %c0_103, %c11, %c0_104] : memref<1x8x32x32xf32, #tpu.memory_space<vmem>>, vector<1x8x1x32xf32>
    %139 = vector.shape_cast %138 : vector<1x8x1x32xf32> to vector<8x32xf32>
    %140 = vector.shape_cast %137 : vector<8x32xf32> to vector<1x8x1x32xf32>
    tpu.vector_store %arg4[%c0_102, %c0_103, %c11, %c0_104], %140 {strides = array<i32>} : memref<1x8x32x32xf32, #tpu.memory_space<vmem>>, vector<1x8x1x32xf32>,
    %141 = vector.extract_strided_slice %116 {offsets = [0, 216], sizes = [8, 32], strides = [1, 1]} : vector<8x572xf32> to vector<8x32xf32>
    %c0_105 = arith.constant 0 : index
    %c0_106 = arith.constant 0 : index
    %c13 = arith.constant 13 : index
    %c0_107 = arith.constant 0 : index
    %142 = vector.load %arg4[%c0_105, %c0_106, %c13, %c0_107] : memref<1x8x32x32xf32, #tpu.memory_space<vmem>>, vector<1x8x1x32xf32>
    %143 = vector.shape_cast %142 : vector<1x8x1x32xf32> to vector<8x32xf32>
    %144 = vector.shape_cast %141 : vector<8x32xf32> to vector<1x8x1x32xf32>
    tpu.vector_store %arg4[%c0_105, %c0_106, %c13, %c0_107], %144 {strides = array<i32>} : memref<1x8x32x32xf32, #tpu.memory_space<vmem>>, vector<1x8x1x32xf32>,
    %145 = vector.extract_strided_slice %116 {offsets = [0, 252], sizes = [8, 32], strides = [1, 1]} : vector<8x572xf32> to vector<8x32xf32>
    %c0_108 = arith.constant 0 : index
    %c0_109 = arith.constant 0 : index
    %c15 = arith.constant 15 : index
    %c0_110 = arith.constant 0 : index
    %146 = vector.load %arg4[%c0_108, %c0_109, %c15, %c0_110] : memref<1x8x32x32xf32, #tpu.memory_space<vmem>>, vector<1x8x1x32xf32>
    %147 = vector.shape_cast %146 : vector<1x8x1x32xf32> to vector<8x32xf32>
    %148 = vector.shape_cast %145 : vector<8x32xf32> to vector<1x8x1x32xf32>
    tpu.vector_store %arg4[%c0_108, %c0_109, %c15, %c0_110], %148 {strides = array<i32>} : memref<1x8x32x32xf32, #tpu.memory_space<vmem>>, vector<1x8x1x32xf32>,
    %149 = vector.extract_strided_slice %116 {offsets = [0, 288], sizes = [8, 32], strides = [1, 1]} : vector<8x572xf32> to vector<8x32xf32>
    %c0_111 = arith.constant 0 : index
    %c0_112 = arith.constant 0 : index
    %c17 = arith.constant 17 : index
    %c0_113 = arith.constant 0 : index
    %150 = vector.load %arg4[%c0_111, %c0_112, %c17, %c0_113] : memref<1x8x32x32xf32, #tpu.memory_space<vmem>>, vector<1x8x1x32xf32>
    %151 = vector.shape_cast %150 : vector<1x8x1x32xf32> to vector<8x32xf32>
    %152 = vector.shape_cast %149 : vector<8x32xf32> to vector<1x8x1x32xf32>
    tpu.vector_store %arg4[%c0_111, %c0_112, %c17, %c0_113], %152 {strides = array<i32>} : memref<1x8x32x32xf32, #tpu.memory_space<vmem>>, vector<1x8x1x32xf32>,
    %153 = vector.extract_strided_slice %116 {offsets = [0, 324], sizes = [8, 32], strides = [1, 1]} : vector<8x572xf32> to vector<8x32xf32>
    %c0_114 = arith.constant 0 : index
    %c0_115 = arith.constant 0 : index
    %c19 = arith.constant 19 : index
    %c0_116 = arith.constant 0 : index
    %154 = vector.load %arg4[%c0_114, %c0_115, %c19, %c0_116] : memref<1x8x32x32xf32, #tpu.memory_space<vmem>>, vector<1x8x1x32xf32>
    %155 = vector.shape_cast %154 : vector<1x8x1x32xf32> to vector<8x32xf32>
    %156 = vector.shape_cast %153 : vector<8x32xf32> to vector<1x8x1x32xf32>
    tpu.vector_store %arg4[%c0_114, %c0_115, %c19, %c0_116], %156 {strides = array<i32>} : memref<1x8x32x32xf32, #tpu.memory_space<vmem>>, vector<1x8x1x32xf32>,
    %157 = vector.extract_strided_slice %116 {offsets = [0, 360], sizes = [8, 32], strides = [1, 1]} : vector<8x572xf32> to vector<8x32xf32>
    %c0_117 = arith.constant 0 : index
    %c0_118 = arith.constant 0 : index
    %c21 = arith.constant 21 : index
    %c0_119 = arith.constant 0 : index
    %158 = vector.load %arg4[%c0_117, %c0_118, %c21, %c0_119] : memref<1x8x32x32xf32, #tpu.memory_space<vmem>>, vector<1x8x1x32xf32>
    %159 = vector.shape_cast %158 : vector<1x8x1x32xf32> to vector<8x32xf32>
    %160 = vector.shape_cast %157 : vector<8x32xf32> to vector<1x8x1x32xf32>
    tpu.vector_store %arg4[%c0_117, %c0_118, %c21, %c0_119], %160 {strides = array<i32>} : memref<1x8x32x32xf32, #tpu.memory_space<vmem>>, vector<1x8x1x32xf32>,
    %161 = vector.extract_strided_slice %116 {offsets = [0, 396], sizes = [8, 32], strides = [1, 1]} : vector<8x572xf32> to vector<8x32xf32>
    %c0_120 = arith.constant 0 : index
    %c0_121 = arith.constant 0 : index
    %c23 = arith.constant 23 : index
    %c0_122 = arith.constant 0 : index
    %162 = vector.load %arg4[%c0_120, %c0_121, %c23, %c0_122] : memref<1x8x32x32xf32, #tpu.memory_space<vmem>>, vector<1x8x1x32xf32>
    %163 = vector.shape_cast %162 : vector<1x8x1x32xf32> to vector<8x32xf32>
    %164 = vector.shape_cast %161 : vector<8x32xf32> to vector<1x8x1x32xf32>
    tpu.vector_store %arg4[%c0_120, %c0_121, %c23, %c0_122], %164 {strides = array<i32>} : memref<1x8x32x32xf32, #tpu.memory_space<vmem>>, vector<1x8x1x32xf32>,
    %165 = vector.extract_strided_slice %116 {offsets = [0, 432], sizes = [8, 32], strides = [1, 1]} : vector<8x572xf32> to vector<8x32xf32>
    %c0_123 = arith.constant 0 : index
    %c0_124 = arith.constant 0 : index
    %c25 = arith.constant 25 : index
    %c0_125 = arith.constant 0 : index
    %166 = vector.load %arg4[%c0_123, %c0_124, %c25, %c0_125] : memref<1x8x32x32xf32, #tpu.memory_space<vmem>>, vector<1x8x1x32xf32>
    %167 = vector.shape_cast %166 : vector<1x8x1x32xf32> to vector<8x32xf32>
    %168 = vector.shape_cast %165 : vector<8x32xf32> to vector<1x8x1x32xf32>
    tpu.vector_store %arg4[%c0_123, %c0_124, %c25, %c0_125], %168 {strides = array<i32>} : memref<1x8x32x32xf32, #tpu.memory_space<vmem>>, vector<1x8x1x32xf32>,
    %169 = vector.extract_strided_slice %116 {offsets = [0, 468], sizes = [8, 32], strides = [1, 1]} : vector<8x572xf32> to vector<8x32xf32>
    %c0_126 = arith.constant 0 : index
    %c0_127 = arith.constant 0 : index
    %c27 = arith.constant 27 : index
    %c0_128 = arith.constant 0 : index
    %170 = vector.load %arg4[%c0_126, %c0_127, %c27, %c0_128] : memref<1x8x32x32xf32, #tpu.memory_space<vmem>>, vector<1x8x1x32xf32>
    %171 = vector.shape_cast %170 : vector<1x8x1x32xf32> to vector<8x32xf32>
    %172 = vector.shape_cast %169 : vector<8x32xf32> to vector<1x8x1x32xf32>
    tpu.vector_store %arg4[%c0_126, %c0_127, %c27, %c0_128], %172 {strides = array<i32>} : memref<1x8x32x32xf32, #tpu.memory_space<vmem>>, vector<1x8x1x32xf32>,
    %173 = vector.extract_strided_slice %116 {offsets = [0, 504], sizes = [8, 32], strides = [1, 1]} : vector<8x572xf32> to vector<8x32xf32>
    %c0_129 = arith.constant 0 : index
    %c0_130 = arith.constant 0 : index
    %c29 = arith.constant 29 : index
    %c0_131 = arith.constant 0 : index
    %174 = vector.load %arg4[%c0_129, %c0_130, %c29, %c0_131] : memref<1x8x32x32xf32, #tpu.memory_space<vmem>>, vector<1x8x1x32xf32>
    %175 = vector.shape_cast %174 : vector<1x8x1x32xf32> to vector<8x32xf32>
    %176 = vector.shape_cast %173 : vector<8x32xf32> to vector<1x8x1x32xf32>
    tpu.vector_store %arg4[%c0_129, %c0_130, %c29, %c0_131], %176 {strides = array<i32>} : memref<1x8x32x32xf32, #tpu.memory_space<vmem>>, vector<1x8x1x32xf32>,
    %177 = vector.extract_strided_slice %116 {offsets = [0, 540], sizes = [8, 32], strides = [1, 1]} : vector<8x572xf32> to vector<8x32xf32>
    %c0_132 = arith.constant 0 : index
    %c0_133 = arith.constant 0 : index
    %c31 = arith.constant 31 : index
    %c0_134 = arith.constant 0 : index
    %178 = vector.load %arg4[%c0_132, %c0_133, %c31, %c0_134] : memref<1x8x32x32xf32, #tpu.memory_space<vmem>>, vector<1x8x1x32xf32>
    %179 = vector.shape_cast %178 : vector<1x8x1x32xf32> to vector<8x32xf32>
    %180 = vector.shape_cast %177 : vector<8x32xf32> to vector<1x8x1x32xf32>
    tpu.vector_store %arg4[%c0_132, %c0_133, %c31, %c0_134], %180 {strides = array<i32>} : memref<1x8x32x32xf32, #tpu.memory_space<vmem>>, vector<1x8x1x32xf32>,
    return
  }
  func.func @transform_0(%arg0: i32, %arg1: i32) -> (i32, i32, i32, i32) {
    %c0_i32 = arith.constant 0 : i32
    %c0_i32_0 = arith.constant 0 : i32
    %c0_i32_1 = arith.constant 0 : i32
    return %arg0, %arg1, %c0_i32, %c0_i32_0 : i32, i32, i32, i32
  }
  func.func @transform_1(%arg0: i32, %arg1: i32) -> (i32, i32) {
    %c0_i32 = arith.constant 0 : i32
    %c0_i32_0 = arith.constant 0 : i32
    %c0_i32_1 = arith.constant 0 : i32
    return %c0_i32, %c0_i32_0 : i32, i32
  }
  func.func @transform_2(%arg0: i32, %arg1: i32) -> (i32, i32, i32, i32) {
    %c0_i32 = arith.constant 0 : i32
    %c0_i32_0 = arith.constant 0 : i32
    %c0_i32_1 = arith.constant 0 : i32
    return %arg0, %c0_i32, %arg1, %c0_i32_0 : i32, i32, i32, i32
  }
}

</mosaic_0001>

<bundles_post_ra>
// kernel: tile.8
= control target key start
LH: loop header
LB: loop body
LE: loop exit
PB: predicated region body
PF: predicated region fallthrough
CT: control target
= control target key end

     0   :  { %s22_s0 = inlined_call_operand.vmem [shape: f32[8], index: 0, kind: input, shape index: {}]   ;;  %s23_s1 = inlined_call_operand.vmem [shape: f32[4,8], index: 1, kind: output, shape index: {}]  }
   0x1   :  { %v4_v0 = vld [vmem:[%s22_s0] ss:$0 sm:$0xff] }
   0x2   :  { %5 = vst [vmem:[%s23_s1] sm:$0xf] %v4_v0 }

// kernel: tile.0
= control target key start
LH: loop header
LB: loop body
LE: loop exit
PB: predicated region body
PF: predicated region fallthrough
CT: control target
= control target key end

     0   :  { %s67_s8 = smov 125   ;;  %vm8_vm0 = vcmask 7168   ;;  %s68_s11 = smov 126   ;;  %s118_s0 = inlined_call_operand.vmem [shape: f32[4,8], index: 0, kind: input, shape index: {}]   ;;  %s119_s1 = inlined_call_operand.vmem [shape: f32[32,1], index: 1, kind: output, shape index: {}]  }
   0x1   :  { %v5_v0 = vld [vmem:[%s118_s0] sm:$0xf]  ;;  %s66_s0 = smov 127   ;;  %s69_s12 = smov 124  }
   0x2   :  { %6 = vst [vmem:[#allocation0] sm:$0xf] %v5_v0  ;;  %s70_s13 = smov 123   ;;  %s71_s14 = smov 122  }
   0x3   :  { %s72_s15 = smov 121  }
   0x9   :  { %v10_v1 = vld [vmem:[#allocation0] sm:$0xf]  }
   0xa   :  { %v22_v2 = vld [vmem:[#allocation0] sm:$0xf]   ;;  %11 = vrot.lane.b32.xlu0 %v10_v1, %s66_s0 }
   0xb   :  { %23 = vrot.lane.b32.xlu1 %v22_v2, %s67_s8  ;;  %v16_v3 = vld [vmem:[#allocation0] sm:$0xf]  }
   0xc   :  { %v28_v4 = vld [vmem:[#allocation0] sm:$0xf]  }
   0xd   :  { %v7_v5 = vld [vmem:[#allocation0] sm:$0xf]  }
   0xe   :  { %9 = vst.msk [vmem:[%s119_s1] ss:$8 sm:$0xf] %vm8_vm0, %v7_v5   ;;  %17 = vrot.lane.b32.xlu0 %v16_v3, %s68_s11  ;;  %v34_v6 = vld [vmem:[#allocation0] sm:$0xf]  }
   0xf   :  { %29 = vrot.lane.b32.xlu1 %v28_v4, %s69_s12  ;;  %v40_v7 = vld [vmem:[#allocation0] sm:$0xf]  }
  0x10   :  { %v46_v8 = vld [vmem:[#allocation0] sm:$0xf]  }
  0x12   :  { %35 = vrot.lane.b32.xlu0 %v34_v6, %s70_s13 }
  0x13   :  { %41 = vrot.lane.b32.xlu1 %v40_v7, %s71_s14 }
  0x16   :  { %47 = vrot.lane.b32.xlu0 %v46_v8, %s72_s15 }
  0x7c   :  { %v12_v9 = vpop.permute.xlu0 %11  }
  0x7d   :  { %v24_v10 = vpop.permute.xlu1 %23   ;;  %52 = vst.msk [vmem:[%s119_s1 + $0x1] ss:$8 sm:$0xf] %vm8_vm0, %v12_v9  }
  0x7e   :  { %54 = vst.msk [vmem:[%s119_s1 + $0x3] ss:$8 sm:$0xf] %vm8_vm0, %v24_v10  }
  0x80   :  { %v18_v11 = vpop.permute.xlu0 %17  }
  0x81   :  { %v30_v12 = vpop.permute.xlu1 %29   ;;  %53 = vst.msk [vmem:[%s119_s1 + $0x2] ss:$8 sm:$0xf] %vm8_vm0, %v18_v11  }
  0x82   :  { %55 = vst.msk [vmem:[%s119_s1 + $0x4] ss:$8 sm:$0xf] %vm8_vm0, %v30_v12  }
  0x84   :  { %v36_v13 = vpop.permute.xlu0 %35  }
  0x85   :  { %v42_v14 = vpop.permute.xlu1 %41   ;;  %56 = vst.msk [vmem:[%s119_s1 + $0x5] ss:$8 sm:$0xf] %vm8_vm0, %v36_v13  }
  0x86   :  { %57 = vst.msk [vmem:[%s119_s1 + $0x6] ss:$8 sm:$0xf] %vm8_vm0, %v42_v14  }
  0x88   :  { %v48_v15 = vpop.permute.xlu0 %47  }
  0x89   :  { %58 = vst.msk [vmem:[%s119_s1 + $0x7] ss:$8 sm:$0xf] %vm8_vm0, %v48_v15  }

// kernel: _lambda_.1
= control target key start
LH: loop header
LB: loop body
LE: loop exit
PB: predicated region body
PF: predicated region fallthrough
CT: control target
= control target key end

     0   :  { %7 = vsyncpa [#allocation3], 0  ;;  %s6193_s0 = inlined_call_operand.vmem [shape: f32[2,1,4,648], index: 0, kind: input, shape index: {}]   ;;  %s6194_s1 = inlined_call_operand.vmem [shape: f32[32,37], index: 1, kind: input, shape index: {}]   ;;  %s6195_s2 = inlined_call_operand.hbm [shape: f32[2,8,32,32], index: 2, kind: output, shape index: {}]  }
   0x1   :  { %9 = vsyncpa [#allocation3 + $0x1], 0  ;;  %s4094_s9 = smov 0   ;;  %s4096_s10 = smov 0  }
   0x2   :  { %s4098_s11 = smov 0   ;;  %s4100_s12 = smov 0  }
   0x3   :  { %s4102_s13 = smov 0   ;;  %s4104_s14 = smov 0  }
   0x4 LB: > { %s3794_s15 = sadd.s32 4294967295, %s4052_s14   ;;  %s3795_s16 = sadd.s32 4294967294, %s4052_s14   ;;  %s4052_s14 = sphi %s4104_s14, %s15_s14   ;;  %s4048_s13 = sphi %s4102_s13, %s6210_s13   ;;  %s4044_s12 = sphi %s4100_s12, %s6209_s12   ;;  %s4040_s11 = sphi %s4098_s11, %s6208_s11   ;;  %s4036_s10 = sphi %s4096_s10, %s6207_s10   ;;  %s4032_s9 = sphi %s4094_s9, %s6206_s9  }
   0x5   : > { %s27_s17 = sadd.s32 1, %s4048_s13  ;;  %s85_s18 = sadd.s32 1, %s4040_s11 }
   0x6   : > { %p29_p0 = scmp.ge.s32.totalorder %s27_s17, 2  ;;  %p95_p1 = scmp.ne.s32.totalorder %s4040_s11, %s4036_s10 }
   0x7   : > { %p96_p2 = scmp.eq.s32.totalorder %s3794_s15, 1  ;;  %p101_p3 = scmp.ne.s32.totalorder %s4036_s10, %s4032_s9 }
   0x8   : > { %s6212_s17 = smov (%p29_p0, %s27_s17), 0  ;;  %p102_p5 = scmp.eq.s32.totalorder %s3795_s16, 1 }
   0x9   : > { %p4134_p4 = por %p96_p2, %p95_p1  ;;  %s80_s20 = ssub.s32 %s4048_s13, %s6212_s17 }
   0xa   : > { %p3798_p6 = scmp.ge.s32.totalorder %s4052_s14, 1  ;;  %p83_p7 = scmp.eq.s32.totalorder %s80_s20, 0 }
   0xb   : > { %p4141_p8 = por %p102_p5, %p101_p3  ;;  %p135_p9 = scmp.lt.s32.totalorder %s4052_s14, 3 }
   0xc   : > { %s4147_s22 = scalar_select %p83_p7, %s4040_s11, %s85_s18  }
   0xd   : > { %p136_p10 = pnand %p3798_p6, %p135_p9 }
   0xe   : > { %p161_p11 = scmp.lt.s32.totalorder (!%p136_p10), %s4044_s12, 1  ;;  %s4054_s28 = smov (!%p136_p10), 126  }
   0xf   : > { %139 = sbr.rel (%p136_p10) target bundleno = 1190 (0x4a6), region = 28  ;;  %s4055_s29 = smov (!%p136_p10), 124  }
  0x10   : > { %s4056_s30 = smov (!%p136_p10), 92   ;;  %s4057_s3 = smov (!%p136_p10), 90  }
  0x11   : > { %s4058_s4 = smov (!%p136_p10), 88   ;;  %s4059_s5 = smov (!%p136_p10), 56  }
  0x12   : > { %s4060_s6 = smov (!%p136_p10), 54   ;;  %s4061_s7 = smov (!%p136_p10), 52  }
  0x13   : > { %s158_s26 = sand.u32 (!%p136_p10), 1, %s4036_s10   ;;  %s4069_s8 = smov (!%p136_p10), 40  }
  0x14   : > { %s162_s23 = scalar_select %p161_p11, %s4044_s12, 1  ;;  %v4062_v11 = vmov 0.0   ;;  %vm195_vm0 = vcmask 1031168   ;;  %vm235_vm1 = vcmask 752640   ;;  %vm357_vm2 = vcmask 1043456  }
  0x15   : > { %480 = vmatprep.mubr.f32.mxu0 %v4062_v11  ;;  %569 = vmatprep.mubr.f32.mxu1 %v4062_v11  ;;  %vm215_vm3 = vcmask 1014784   ;;  %vm255_vm4 = vcmask 736256   ;;  %vm323_vm5 = vcmask 441344   ;;  %vm346_vm6 = vcmask 424960   ;;  %s4070_s15 = smov 4   ;;  %s4071_s16 = smov 116  }
  0x16   : > { %s3869_s24 = smul.u32 24, %s162_s23  ;;  %vm275_vm7 = vcmask 719872   ;;  %vm299_vm8 = vcmask 457728   ;;  %vm400_vm9 = vcmask 1044480   ;;  %vm387_vm10 = vcmask 302080   ;;  %s4072_s18 = smov 80  }
  0x17   : > { %vm798_vm15 = vcmask 253952   ;;  %s4073_s20 = smov 44   ;;  %s4074_s23 = smov 24  }
  0x18   : > { %s4154_s27 = scalar_lea.vmem %s6193_s0, %s3869_s24  ;;  %s4075_s24 = smov 100  }
  0x19   : > { %v4157_v0 = vld [vmem:[%s4154_s27 + $0x8] sm:$0xff]  ;;  %v4160_v1 = vld [vmem:[%s4154_s27] sm:$0xff]  ;;  %v4167_v3 = vld [vmem:[%s4154_s27 + $0x10] sm:$0xf]  ;;  %s4076_s25 = smov 8  }
  0x1a   : > { %191 = vrot.lane.b32.xlu1 %v4157_v0, %s4054_s28  ;;  %187 = vrot.lane.b32.xlu0 %v4160_v1, %s4054_s28  ;;  %v182_v2 = vcombine.low %v4160_v1, %v4160_v1  ;;  %v183_v4 = vcombine.low %v4157_v0, %v4157_v0  ;;  %v184_v5 = vcombine.low %v4167_v3, %v4167_v3  ;;  %v174_v8 = vld [vmem:[%s4154_s27 + $0x10] sm:$0xff]  ;;  %s3799_s27 = sshll.u32 %s158_s26, 8 }
  0x1b   : > { %v4176_v6 = vcombine.high %v4160_v1, %v4160_v1  ;;  %v4182_v7 = vcombine.high %v4157_v0, %v4157_v0  ;;  %v286_v9 = vcombine.high %v174_v8, %v174_v8  ;;  %v310_v10 = vcombine.low %v174_v8, %v174_v8 }
  0x1e   : > { %205 = vrot.lane.b32.xlu1 %v4160_v1, %s4055_s29  ;;  %185 = vrot.lane.b32.xlu0 %v182_v2, %s4054_s28 }
  0x22   : > { %189 = vrot.lane.b32.xlu1 %v183_v4, %s4054_s28  ;;  %193 = vrot.lane.b32.xlu0 %v184_v5, %s4054_s28  ;;  %s4452_s28 = scalar_lea.vmem [#allocation2], %s3799_s27 }
  0x26   : > { %209 = vrot.lane.b32.xlu1 %v4157_v0, %s4055_s29  ;;  %207 = vrot.lane.b32.xlu0 %v4176_v6, %s4055_s29 }
  0x2a   : > { %213 = vrot.lane.b32.xlu1 %v4167_v3, %s4055_s29  ;;  %211 = vrot.lane.b32.xlu0 %v4182_v7, %s4055_s29  ;;  %s4064_s29 = smov 96  }
  0x2e   : > { %227 = vrot.lane.b32.xlu1 %v4160_v1, %s4056_s30  ;;  %225 = vrot.lane.b32.xlu0 %v182_v2, %s4056_s30 }
  0x32   : > { %231 = vrot.lane.b32.xlu1 %v4157_v0, %s4056_s30  ;;  %229 = vrot.lane.b32.xlu0 %v183_v4, %s4056_s30 }
  0x36   : > { %245 = vrot.lane.b32.xlu1 %v4160_v1, %s4057_s3  ;;  %233 = vrot.lane.b32.xlu0 %v184_v5, %s4056_s30 }
  0x3a   : > { %249 = vrot.lane.b32.xlu1 %v4157_v0, %s4057_s3  ;;  %247 = vrot.lane.b32.xlu0 %v4176_v6, %s4057_s3 }
  0x3e   : > { %253 = vrot.lane.b32.xlu1 %v4167_v3, %s4057_s3  ;;  %251 = vrot.lane.b32.xlu0 %v4182_v7, %s4057_s3  ;;  %s4065_s3 = smov 60  }
  0x42   : > { %267 = vrot.lane.b32.xlu1 %v4160_v1, %s4058_s4  ;;  %265 = vrot.lane.b32.xlu0 %v182_v2, %s4058_s4 }
  0x46   : > { %271 = vrot.lane.b32.xlu1 %v4157_v0, %s4058_s4  ;;  %269 = vrot.lane.b32.xlu0 %v183_v4, %s4058_s4 }
  0x4a   : > { %287 = vrot.lane.b32.xlu1 %v4160_v1, %s4059_s5  ;;  %273 = vrot.lane.b32.xlu0 %v184_v5, %s4058_s4  ;;  %s4066_s4 = smov 112  }
  0x4e   : > { %291 = vrot.lane.b32.xlu1 %v4157_v0, %s4059_s5  ;;  %289 = vrot.lane.b32.xlu0 %v4176_v6, %s4059_s5 }
  0x52   : > { %295 = vrot.lane.b32.xlu1 %v174_v8, %s4059_s5  ;;  %293 = vrot.lane.b32.xlu0 %v4182_v7, %s4059_s5 }
  0x56   : > { %311 = vrot.lane.b32.xlu1 %v182_v2, %s4060_s6  ;;  %297 = vrot.lane.b32.xlu0 %v286_v9, %s4059_s5 }
  0x5a   : > { %315 = vrot.lane.b32.xlu1 %v183_v4, %s4060_s6  ;;  %313 = vrot.lane.b32.xlu0 %v4160_v1, %s4060_s6 }
  0x5e   : > { %319 = vrot.lane.b32.xlu1 %v310_v10, %s4060_s6  ;;  %317 = vrot.lane.b32.xlu0 %v4157_v0, %s4060_s6 }
  0x62   : > { %334 = vrot.lane.b32.xlu1 %v4160_v1, %s4061_s7  ;;  %321 = vrot.lane.b32.xlu0 %v174_v8, %s4060_s6  ;;  %s4067_s6 = smov 20  }
  0x66   : > { %338 = vrot.lane.b32.xlu1 %v4157_v0, %s4061_s7  ;;  %336 = vrot.lane.b32.xlu0 %v4176_v6, %s4061_s7 }
  0x6a   : > { %342 = vrot.lane.b32.xlu1 %v174_v8, %s4061_s7  ;;  %340 = vrot.lane.b32.xlu0 %v4182_v7, %s4061_s7 }
  0x6e   : > { %344 = vrot.lane.b32.xlu0 %v286_v9, %s4061_s7  ;;  %s4068_s7 = smov 76  }
  0x8c   : > { %v4219_v12 = vpop.permute.xlu1 %191  ;;  %v188_v13 = vpop.permute.xlu0 %187 }
  0x90   : > { %v206_v14 = vpop.permute.xlu1 %205  ;;  %v186_v15 = vpop.permute.xlu0 %185 }
  0x91   : > { %v196_v48 = vsel %vm195_vm0, %v186_v15, %v188_v13 }
  0x92   : > { %v4265_v53 = vsel %vm357_vm2, %v4160_v1, %v196_v48 }
  0x94   : > { %v4221_v16 = vpop.permute.xlu1 %189  ;;  %v4223_v17 = vpop.permute.xlu0 %193 }
  0x95   : > { %v197_v51 = vsel %vm195_vm0, %v188_v13, %v4221_v16 }
  0x96   : > { %v359_v59 = vsel %vm357_vm2, %v4176_v6, %v197_v51 }
  0x98   : > { %v4225_v18 = vpop.permute.xlu1 %209  ;;  %v208_v19 = vpop.permute.xlu0 %207 }
  0x99   : > { %v216_v54 = vsel %vm215_vm3, %v206_v14, %v208_v19  ;;  %v217_v55 = vsel %vm215_vm3, %v208_v19, %v4225_v18 }
  0x9c   : > { %v4227_v20 = vpop.permute.xlu1 %213  ;;  %v4229_v21 = vpop.permute.xlu0 %211 }
  0xa0   : > { %v228_v22 = vpop.permute.xlu1 %227  ;;  %v226_v23 = vpop.permute.xlu0 %225 }
  0xa1   : > { %v236_v52 = vsel %vm235_vm1, %v226_v23, %v228_v22 }
  0xa2   : > { %v363_v63 = vsel %vm357_vm2, %v216_v54, %v236_v52 }
  0xa4   : > { %v4231_v24 = vpop.permute.xlu1 %231  ;;  %v230_v25 = vpop.permute.xlu0 %229 }
  0xa5   : > { %v237_v56 = vsel %vm235_vm1, %v228_v22, %v230_v25  ;;  %v4279_v1 = vsel %vm235_vm1, %v230_v25, %v4231_v24 }
  0xa6   : > { %v364_v10 = vsel %vm357_vm2, %v217_v55, %v237_v56  ;;  %v199_v56 = vsel %vm195_vm0, %v4219_v12, %v4223_v17 }
  0xa8   : > { %v246_v26 = vpop.permute.xlu1 %245  ;;  %v4233_v27 = vpop.permute.xlu0 %233 }
  0xa9   : > { %v239_v54 = vsel %vm235_vm1, %v4231_v24, %v4233_v27  ;;  %v383_v24 = vld [vmem:[%s6194_s1] sm:$0xff] }
  0xac   : > { %v4235_v28 = vpop.permute.xlu1 %249  ;;  %v248_v29 = vpop.permute.xlu0 %247 }
  0xad   : > { %v256_v6 = vsel %vm255_vm4, %v246_v26, %v248_v29  ;;  %v257_v13 = vsel %vm255_vm4, %v248_v29, %v4235_v28 }
  0xb0   : > { %v4237_v30 = vpop.permute.xlu1 %253  ;;  %v4239_v31 = vpop.permute.xlu0 %251 }
  0xb1   : > { %v259_v55 = vsel %vm255_vm4, %v4239_v31, %v4237_v30 }
  0xb4   : > { %v268_v32 = vpop.permute.xlu1 %267  ;;  %v266_v33 = vpop.permute.xlu0 %265 }
  0xb5   : > { %v276_v14 = vsel %vm275_vm7, %v266_v33, %v268_v32 }
  0xb8   : > { %v4241_v34 = vpop.permute.xlu1 %271  ;;  %v4243_v35 = vpop.permute.xlu0 %269 }
  0xb9   : > { %v277_v8 = vsel %vm275_vm7, %v268_v32, %v4243_v35 }
  0xba   : > { %v369_v33 = vsel %vm357_vm2, %v257_v13, %v277_v8 }
  0xbc   : > { %v288_v36 = vpop.permute.xlu1 %287  ;;  %v4245_v37 = vpop.permute.xlu0 %273 }
  0xc0   : > { %v4247_v38 = vpop.permute.xlu1 %291  ;;  %v290_v39 = vpop.permute.xlu0 %289 }
  0xc1   : > { %v301_v9 = vsel %vm299_vm8, %v290_v39, %v4247_v38  ;;  %v300_v15 = vsel %vm299_vm8, %v288_v36, %v290_v39 }
  0xc4   : > { %v4249_v40 = vpop.permute.xlu1 %295  ;;  %v4251_v41 = vpop.permute.xlu0 %293 }
  0xc5   : > { %v303_v48 = vsel %vm299_vm8, %v4251_v41, %v4249_v40 }
  0xc8   : > { %v312_v42 = vpop.permute.xlu1 %311  ;;  %v4253_v43 = vpop.permute.xlu0 %297 }
  0xcc   : > { %v316_v44 = vpop.permute.xlu1 %315  ;;  %v314_v45 = vpop.permute.xlu0 %313 }
  0xcd   : > { %v325_v60 = vsel %vm323_vm5, %v314_v45, %v316_v44  ;;  %v324_v2 = vsel %vm323_vm5, %v312_v42, %v314_v45  ;;  %v279_v45 = vsel %vm275_vm7, %v4241_v34, %v4245_v37 }
  0xce   : > { %v374_v23 = vsel %vm357_vm2, %v301_v9, %v325_v60  ;;  %v373_v26 = vsel %vm357_vm2, %v300_v15, %v324_v2 }
  0xd0   : > { %v4255_v46 = vpop.permute.xlu1 %319  ;;  %v318_v47 = vpop.permute.xlu0 %317 }
  0xd1   : > { %v327_v25 = vsel %vm323_vm5, %v318_v47, %v4255_v46  ;;  %v326_v32 = vsel %vm323_vm5, %v316_v44, %v318_v47  ;;  %v368_v44 = vsel %vm357_vm2, %v256_v6, %v276_v14  ;;  %v278_v47 = vsel %vm275_vm7, %v4243_v35, %v4241_v34 }
  0xd2   : > { %v376_v52 = vsel %vm357_vm2, %v303_v48, %v327_v25  ;;  %v258_v35 = vsel %vm255_vm4, %v4235_v28, %v4239_v31  ;;  %v218_v31 = vsel %vm215_vm3, %v4225_v18, %v4229_v21  ;;  %vm1399_vm7 = vcmask 31744  }
  0xd3   : > { %v370_v28 = vsel %vm357_vm2, %v258_v35, %v278_v47  ;;  %v365_v18 = vsel %vm357_vm2, %v218_v31, %v4279_v1 }
  0xd4   : > { %v335_v49 = vpop.permute.xlu1 %334  ;;  %v4258_v50 = vpop.permute.xlu0 %321 }
  0xd8   : > { %v339_v57 = vpop.permute.xlu1 %338  ;;  %v337_v58 = vpop.permute.xlu0 %336 }
  0xd9   : > { %v348_v61 = vsel %vm346_vm6, %v337_v58, %v339_v57  ;;  %v347_v62 = vsel %vm346_vm6, %v335_v49, %v337_v58  ;;  %v302_v49 = vsel %vm299_vm8, %v4247_v38, %v4251_v41  ;;  %v371_v41 = vsel %vm357_vm2, %v259_v55, %v279_v45 }
  0xda   : > { %v379_v4 = vsel %vm357_vm2, %v348_v61, 1.0  ;;  %v378_v5 = vsel %vm357_vm2, %v347_v62, 1.0  ;;  %v375_v34 = vsel %vm357_vm2, %v302_v49, %v326_v32  ;;  %v328_v58 = vsel %vm323_vm5, %v4255_v46, %v4258_v50 }
  0xdb   : > { %3801 = vmatprep.subr.msk.mxu0 %vm400_vm9, %v379_v4  ;;  %v361_v46 = vsel %vm357_vm2, %v4182_v7, %v199_v56  ;;  %v372_v7 = vsel %vm357_vm2, %v4237_v30, %v4245_v37  ;;  %vm1050_vm5 = vcmask 162816  }
  0xdc   : > { %v343_v19 = vpop.permute.xlu1 %342  ;;  %3802 = vmatpush1.msk.msra.mxu0 %vm400_vm9, %v378_v5  ;;  %v341_v22 = vpop.permute.xlu0 %340 }
  0xdd   : > { %440 = vmatprep.subr.mxu0 %v374_v23  ;;  %v350_v42 = vsel %vm346_vm6, %v341_v22, %v343_v19  ;;  %v349_v29 = vsel %vm346_vm6, %v339_v57, %v341_v22  ;;  %v219_v57 = vsel %vm215_vm3, %v4229_v21, %v4227_v20  ;;  %v304_v21 = vsel %vm299_vm8, %v4249_v40, %v4253_v43  ;;  %v385_v43 = vld [vmem:[%s6194_s1 + $0x10] sm:$0xff] }
  0xde   : > { %441 = vmatpush1.msra.mxu0 %v373_v26  ;;  %v381_v36 = vsel %vm357_vm2, %v350_v42, 1.0  ;;  %v380_v39 = vsel %vm357_vm2, %v349_v29, 1.0  ;;  %v366_v60 = vsel %vm357_vm2, %v219_v57, %v239_v54  ;;  %v4063_v42 = vmov 1966171168  }
  0xdf   : > { %442 = vmatprep.subr.mxu0 %v369_v33  ;;  %3807 = vmatprep.subr.msk.mxu1 %vm400_vm9, %v381_v36  ;;  %v743_v29 = vunpack.c.l.s4 %v4063_v42 }
  0xe0   : > { %443 = vmatpush1.msra.mxu0 %v368_v44  ;;  %3808 = vmatpush1.msk.msra.mxu1 %vm400_vm9, %v380_v39  ;;  %v345_v51 = vpop.permute.xlu0 %344 }
  0xe1   : > { %444 = vmatprep.subr.mxu0 %v364_v10  ;;  %529 = vmatprep.subr.mxu1 %v376_v52  ;;  %v351_v38 = vsel %vm346_vm6, %v343_v19, %v345_v51  ;;  %v744_v48 = vunpack.c.0.s8 %v743_v29 }
  0xe2   : > { %445 = vmatpush1.msra.mxu0 %v363_v63  ;;  %530 = vmatpush1.msra.mxu1 %v375_v34  ;;  %v382_v61 = vsel %vm357_vm2, %v351_v38, 1.0 }
  0xe3   : > { %446 = vmatprep.subr.mxu0 %v359_v59  ;;  %531 = vmatprep.subr.mxu1 %v371_v41  ;;  %v198_v59 = vsel %vm195_vm0, %v4221_v16, %v4219_v12  ;;  %v377_v12 = vsel %vm357_vm2, %v304_v21, %v328_v58  ;;  %v384_v16 = vld [vmem:[%s6194_s1 + $0x8] sm:$0xff] }
  0xe4   : > { %447 = vmatpush1.msra.mxu0 %v4265_v53  ;;  %532 = vmatpush1.msra.mxu1 %v370_v28  ;;  %v360_v40 = vsel %vm357_vm2, %v4157_v0, %v198_v59  ;;  %v367_v0 = vsel %vm357_vm2, %v4227_v20, %v4233_v27  ;;  %v362_v20 = vsel %vm357_vm2, %v4167_v3, %v4223_v17  ;;  %v386_v27 = vld [vmem:[%s6194_s1 + $0x18] sm:$0xff]  ;;  %v679_v3 = vlaneseq }
  0xe5   : > { %3803 = vmatmul.mubr.msk.f32.vlgmr.msra.gmra.mxu0 %vm387_vm10, %v383_v24  ;;  %533 = vmatprep.subr.mxu1 %v366_v60 }
  0xe6   : > { %3843 = vmatprep.subr.msk.mxu0 %vm400_vm9, %v382_v61  ;;  %534 = vmatpush1.msra.mxu1 %v365_v18  ;;  %v4406_v17 = vand.u32 127, %v679_v3  ;;  %v4429_v44 = vshrl.u32 %v679_v3, 7 }
  0xe7   : > { %3844 = vmatpush3.msk.msra.mxu0 %vm400_vm9, %v382_v61  ;;  %535 = vmatprep.subr.mxu1 %v361_v46 }
  0xe8   : > { %3845 = vmatprep.subr.mxu0 %v377_v12  ;;  %486 = vmatprep.mubr.f32.mxu0 %v4062_v11  ;;  %v685_v30 = vand.u32 1, %v4406_v17  ;;  %v682_v50 = vadd.s32 256, %v4406_v17  ;;  %v681_v9 = vadd.s32 128, %v4406_v17  ;;  %v4436_v52 = vsub.s32 %v744_v48, %v4429_v44 }
  0xe9   : > { %536 = vmatpush1.msra.mxu1 %v360_v40  ;;  %3846 = vmatpush3.msra.mxu0 %v377_v12  ;;  %v4447_v41 = vsub.s32 0, %v4429_v44 }
  0xea   : > { %3804 = vmatmul.mubr.msk.f32.gmra.mxu0 %vm387_vm10, %v384_v16  ;;  %3809 = vmatmul.mubr.msk.f32.vlgmr.msra.gmra.mxu1 %vm387_vm10, %v383_v24  ;;  %vm4410_vm11 = vcmp.eq.s32.totalorder %v685_v30, 0  ;;  %v687_v1 = vand.u32 1, %v682_v50  ;;  %v686_v19 = vand.u32 1, %v681_v9 }
  0xeb   : > { %3859 = vmatprep.subr.msk.mxu1 %vm400_vm9, %v382_v61  ;;  %3847 = vmatprep.subr.mxu0 %v372_v7 }
  0xec   : > { %3864 = vmatpush3.msk.msra.mxu1 %vm400_vm9, %v382_v61  ;;  %3848 = vmatpush3.msra.mxu0 %v372_v7  ;;  %vm4419_vm12 = vcmp.eq.s32.totalorder %v687_v1, 0  ;;  %vm691_vm13 = vcmp.eq.s32.totalorder %v686_v19, 0  ;;  %vm1716_vm9 = vcmask 195584  }
  0xed   : > { %3860 = vmatprep.subr.mxu1 %v377_v12  ;;  %3849 = vmatprep.subr.mxu0 %v367_v0 }
  0xee   : > { %492 = vmatprep.mubr.f32.mxu0 %v4062_v11  ;;  %575 = vmatprep.mubr.f32.mxu1 %v4062_v11 }
  0xef   : > { %3865 = vmatpush3.msra.mxu1 %v377_v12  ;;  %3850 = vmatpush3.msra.mxu0 %v367_v0 }
  0xf0   : > { %3805 = vmatmul.mubr.msk.f32.gmra.mxu0 %vm387_vm10, %v385_v43  ;;  %3810 = vmatmul.mubr.msk.f32.gmra.mxu1 %vm387_vm10, %v384_v16 }
  0xf1   : > { %3861 = vmatprep.subr.mxu1 %v372_v7  ;;  %3851 = vmatprep.subr.mxu0 %v362_v20 }
  0xf2   : > { %3866 = vmatpush3.msra.mxu1 %v372_v7  ;;  %3852 = vmatpush3.msra.mxu0 %v362_v20 }
  0xf3   : > { %3862 = vmatprep.subr.mxu1 %v367_v0  ;;  %498 = vmatprep.mubr.f32.mxu0 %v4062_v11 }
  0xf4   : > { %3867 = vmatpush3.msra.mxu1 %v367_v0  ;;  %3806 = vmatmul.mubr.msk.f32.gmra.mxu0 %vm387_vm10, %v386_v27 }
  0xf5   : > { %3863 = vmatprep.subr.mxu1 %v362_v20  ;;  %3853 = vmatprep.mubr.msk.f32.mxu0 %vm387_vm10, %v383_v24 }
  0xf6   : > { %3868 = vmatpush3.msra.mxu1 %v362_v20  ;;  %581 = vmatprep.mubr.f32.mxu1 %v4062_v11 }
  0xf7   : > { %3811 = vmatmul.mubr.msk.f32.gmra.mxu1 %vm387_vm10, %v385_v43 }
  0xf8   : > { %3854 = vmatmul.mubr.msk.f32.vlgmr.msra.gmra.mxu0 %vm387_vm10, %v384_v16  ;;  %587 = vmatprep.mubr.f32.mxu1 %v4062_v11 }
  0xfb   : > { %3812 = vmatmul.mubr.msk.f32.gmra.mxu1 %vm387_vm10, %v386_v27 }
  0xfc   : > { %3856 = vmatprep.mubr.msk.f32.mxu1 %vm387_vm10, %v385_v43 }
  0xff   : > { %3857 = vmatmul.mubr.msk.f32.vlgmr.msra.gmra.mxu1 %vm387_vm10, %v386_v27 }
 0x1a5   : > { %v482_v37 = vpop.f32.mrf.mxu0 }
 0x1a7   : > { %v484_v53 = vpop.f32.mrf.mxu0 }
 0x1aa   : > { %v488_v11 = vpop.f32.mrf.mxu0  ;;  %v571_v63 = vpop.f32.mrf.mxu1 }
 0x1ab   : > { %v705_v2 = vsel %vm4410_vm11, %v482_v37, %v488_v11  ;;  %v683_v37 = vadd.s32 384, %v4406_v17 }
 0x1ac   : > { %v715_v4 = vmin.f32 %v705_v2, 0.0  ;;  %v490_v5 = vpop.f32.mrf.mxu0  ;;  %v4416_v6 = vpop.f32.mrf.mxu1  ;;  %vm710_vm14 = vcmp.gt.f32.partialorder %v705_v2, 0.0 }
 0x1ad   : > { %v4431_v47 = vsel %vm691_vm13, %v484_v53, %v490_v5  ;;  %v688_v11 = vand.u32 1, %v683_v37 }
 0x1ae   : > { %v720_v8 = vmul.f32 1.442695, %v715_v4  ;;  %v716_v49 = vmin.f32 %v4431_v47, 0.0  ;;  %vm711_vm3 = vcmp.gt.f32.partialorder %v4431_v47, 0.0 }
 0x1af   : > { %vm4505_vm2 = vcmp.eq.s32.totalorder %v688_v11, 0 }
 0x1b0   : > { %3956 = vpow2.f32 %v720_v8  ;;  %v494_v13 = vpop.f32.mrf.mxu0  ;;  %v577_v14 = vpop.f32.mrf.mxu1  ;;  %v722_v34 = vmul.f32 1.442695, %v716_v49 }
 0x1b1   : > { %v707_v15 = vsel %vm4419_vm12, %v571_v63, %v577_v14 }
 0x1b2   : > { %v717_v22 = vmin.f32 %v707_v15, 0.0  ;;  %v496_v23 = vpop.f32.mrf.mxu0  ;;  %vm712_vm0 = vcmp.gt.f32.partialorder %v707_v15, 0.0 }
 0x1b4   : > { %v724_v25 = vmul.f32 1.442695, %v717_v22  ;;  %v500_v26 = vpop.f32.mrf.mxu0 }
 0x1b5   : > { %v2203_v32 = vsel %vm4410_vm11, %v494_v13, %v500_v26  ;;  %vm2065_vm11 = vcmask 64512  }
 0x1b6   : > { %3958 = vpow2.f32 %v724_v25  ;;  %v2213_v33 = vmin.f32 %v2203_v32, 0.0  ;;  %v502_v36 = vpop.f32.mrf.mxu0  ;;  %vm2208_vm1 = vcmp.gt.f32.partialorder %v2203_v32, 0.0 }
 0x1b7   : > { %v4427_v39 = vsel %vm691_vm13, %v496_v23, %v502_v36 }
 0x1b8   : > { %v2218_v45 = vmul.f32 1.442695, %v2213_v33  ;;  %v4550_v33 = vsub.s32 1, %v4429_v44  ;;  %vm2209_vm10 = vcmp.gt.f32.partialorder %v4427_v39, 0.0 }
 0x1ba   : > { %3960 = vpow2.f32 %v2218_v45 }
 0x1bb   : > { %3962 = vpow2.f32 %v722_v34 }
 0x1bd   : > { %v3957_v51 = vpop.eup %3956 }
 0x1be   : > { %v3818_v54 = vadd.f32 -1.0, %v3957_v51 }
 0x1c0   : > { %v4440_v55 = vsel %vm710_vm14, %v705_v2, %v3818_v54  ;;  %v579_v2 = vpop.f32.mrf.mxu1 }
 0x1c1   : > { %v741_v35 = vcombine.high %v4440_v55, %v4440_v55  ;;  %v748_v38 = vrot.slane %v4440_v55, %v4436_v52  ;;  %v708_v8 = vsel %vm4505_vm2, %v4416_v6, %v579_v2 }
 0x1c2   : > { %v718_v19 = vmin.f32 %v708_v8, 0.0  ;;  %vm713_vm4 = vcmp.gt.f32.partialorder %v708_v8, 0.0 }
 0x1c3   : > { %v3959_v24 = vpop.eup %3958  ;;  %v755_v56 = vrot.slane %v741_v35, %v4436_v52  ;;  %v756_v57 = vcombine.high %v748_v38, %v748_v38  ;;  %v764_v28 = vrot.slane %v748_v38, %v4436_v52 }
 0x1c4   : > { %v3820_v31 = vadd.f32 -1.0, %v3959_v24  ;;  %v726_v25 = vmul.f32 1.442695, %v718_v19 }
 0x1c5   : > { %v810_v58 = vrot.slane %v764_v28, %v4447_v41  ;;  %799 = vst.msk [vmem:[%s4452_s28] sm:$0x1] %vm798_vm15, %v764_v28  ;;  %v778_v60 = vrot.slane %v756_v57, %v4436_v52  ;;  %v786_v59 = vcombine.high %v764_v28, %v764_v28  ;;  %v771_v61 = vrot.slane %v755_v56, %v4436_v52 }
 0x1c6   : > { %v4458_v18 = vsel %vm712_vm0, %v707_v15, %v3820_v31  ;;  %v757_v21 = vcombine.high %v755_v56, %v755_v56  ;;  %3964 = vpow2.f32 %v726_v25 }
 0x1c7   : > { %v3961_v46 = vpop.eup %3960  ;;  %839 = vrot.lane.b32.xlu1 %v810_v58, %s4056_s30  ;;  %v814_v12 = vrot.slane %v778_v60, %v4447_v41  ;;  %800 = vst.msk [vmem:[%s4452_s28 + $0x20] sm:$0x1] %vm798_vm15, %v778_v60  ;;  %v1431_v16 = vrot.slane %v4458_v18, %v4436_v52  ;;  %801 = vst.msk [vmem:[%s4452_s28 + $0x40] sm:$0x1] %vm798_vm15, %v786_v59  ;;  %v788_v40 = vcombine.high %v778_v60, %v778_v60 }
 0x1c8   : > { %803 = vst.msk [vmem:[%s4452_s28 + $0x80] sm:$0x1] %vm798_vm15, %v771_v61  ;;  %v3823_v7 = vadd.f32 -1.0, %v3961_v46  ;;  %v785_v0 = vrot.slane %v757_v21, %v4436_v52  ;;  %v3963_v63 = vpop.eup %3962  ;;  %v818_v5 = vrot.slane %v786_v59, %v4447_v41  ;;  %v4517_v13 = vcombine.high %v771_v61, %v771_v61 }
 0x1c9   : > { %841 = vrot.lane.b32.xlu0 %v814_v12, %s4056_s30  ;;  %v4473_v43 = vrot.slane %v1431_v16, %v4436_v52  ;;  %v1439_v20 = vcombine.high %v1431_v16, %v1431_v16  ;;  %802 = vst.msk [vmem:[%s4452_s28 + $0x60] sm:$0x1] %vm798_vm15, %v788_v40  ;;  %v3819_v1 = vadd.f32 -1.0, %v3963_v63  ;;  %v822_v9 = vrot.slane %v788_v40, %v4447_v41 }
 0x1ca   : > { %v4477_v27 = vsel %vm2208_vm1, %v2203_v32, %v3823_v7  ;;  %804 = vst.msk [vmem:[%s4452_s28 + $0xa0] sm:$0x1] %vm798_vm15, %v785_v0  ;;  %v826_v15 = vrot.slane %v771_v61, %v4447_v41  ;;  %805 = vst.msk [vmem:[%s4452_s28 + $0xc0] sm:$0x1] %vm798_vm15, %v4517_v13  ;;  %v830_v6 = vrot.slane %v785_v0, %v4447_v41 }
 0x1cb   : > { %v4483_v3 = vrot.slane %v4477_v27, %v4436_v52  ;;  %871 = vrot.lane.b32.xlu1 %v810_v58, %s4059_s5  ;;  %v4487_v30 = vrot.slane %v1439_v20, %v4436_v52  ;;  %v1476_v53 = vrot.slane %v4473_v43, %v4447_v41  ;;  %v4520_v14 = vsel %vm711_vm3, %v4431_v47, %v3819_v1 }
 0x1cc   : > { %v904_v22 = vcombine.low %v4440_v55, %v4520_v14  ;;  %v1082_v23 = vrot.slane %v4520_v14, %v4436_v52  ;;  %v4534_v26 = vcombine.high %v785_v0, %v785_v0  ;;  %v905_v29 = vcombine.high %v4440_v55, %v4520_v14 }
 0x1cd   : > { %v4492_v50 = vrot.slane %v4483_v3, %v4436_v52  ;;  %873 = vrot.lane.b32.xlu0 %v814_v12, %s4059_s5  ;;  %v1480_v62 = vrot.slane %v4487_v30, %v4447_v41  ;;  %v1424_v51 = vcombine.high %v4458_v18, %v4458_v18  ;;  %v1469_v34 = vcombine.high %v4473_v43, %v4473_v43 }
 0x1ce   : > { %v4538_v42 = vrot.slane %v904_v22, %v4436_v52  ;;  %806 = vst.msk [vmem:[%s4452_s28 + $0xe0] sm:$0x1] %vm798_vm15, %v4534_v26  ;;  %v4547_v32 = vrot.slane %v1082_v23, %v4436_v52  ;;  %v4558_v45 = vrot.slane %v905_v29, %v4436_v52  ;;  %v1090_v49 = vcombine.high %v1082_v23, %v1082_v23 }
 0x1cf   : > { %2296 = vst.msk [vmem:[%s4452_s28 + $0x1] sm:$0x1] %vm798_vm15, %v4492_v50  ;;  %1505 = vrot.lane.b32.xlu1 %v1476_v53, %s4064_s29  ;;  %v1438_v35 = vrot.slane %v1424_v51, %v4436_v52  ;;  %v1253_v56 = vcombine.low %v4520_v14, %v4458_v18  ;;  %v1484_v57 = vrot.slane %v1469_v34, %v4447_v41 }
 0x1d0   : > { %v4555_v36 = vrot.slane %v4538_v42, %v4436_v52  ;;  %v1127_v48 = vrot.slane %v4547_v32, %v4447_v41  ;;  %v4568_v47 = vrot.slane %v4558_v45, %v4436_v52  ;;  %v4577_v55 = vrot.slane %v1090_v49, %v4436_v52 }
 0x1d1   : > { %1507 = vrot.lane.b32.xlu0 %v1480_v62, %s4064_s29  ;;  %v4591_v28 = vrot.slane %v1438_v35, %v4436_v52  ;;  %v4595_v58 = vrot.slane %v1253_v56, %v4436_v52  ;;  %v1254_v60 = vcombine.high %v4520_v14, %v4458_v18  ;;  %v1471_v43 = vcombine.high %v4487_v30, %v4487_v30 }
 0x1d2   : > { %v961_v44 = vrot.slane %v4555_v36, %v4550_v33  ;;  %v993_v54 = vrot.slane %v4568_v47, %v4550_v33  ;;  %v1131_v24 = vrot.slane %v4577_v55, %v4447_v41  ;;  %v1440_v20 = vcombine.high %v1438_v35, %v1438_v35 }
 0x1d3   : > { %1537 = vrot.lane.b32.xlu1 %v1476_v53, %s4065_s3  ;;  %v3965_v38 = vpop.eup %3964  ;;  %v1492_v59 = vrot.slane %v4591_v28, %v4447_v41  ;;  %v4607_v21 = vrot.slane %v4595_v58, %v4436_v52  ;;  %v4610_v46 = vrot.slane %v1254_v60, %v4436_v52  ;;  %v1488_v53 = vrot.slane %v1471_v43, %v4447_v41 }
 0x1d4   : > { %v3821_v31 = vadd.f32 -1.0, %v3965_v38  ;;  %v834_v2 = vrot.slane %v4517_v13, %v4447_v41  ;;  %v1075_v19 = vcombine.high %v4520_v14, %v4520_v14  ;;  %v989_v23 = vrot.slane %v4568_v47, %v4447_v41 }
 0x1d5   : > { %1539 = vrot.lane.b32.xlu0 %v1480_v62, %s4065_s3  ;;  %v1310_v16 = vrot.slane %v4607_v21, %v4550_v33  ;;  %v4620_v40 = vrot.slane %v4610_v46, %v4436_v52  ;;  %v4637_v62 = vrot.slane %v1440_v20, %v4436_v52  ;;  %v1120_v25 = vcombine.high %v4547_v32, %v4547_v32 }
 0x1d6   : > { %v4602_v61 = vsel %vm713_vm4, %v708_v8, %v3821_v31  ;;  %v1089_v29 = vrot.slane %v1075_v19, %v4436_v52  ;;  %v838_v49 = vrot.slane %v4534_v26, %v4447_v41  ;;  %v920_v51 = vcombine.high %v4538_v42, %v4538_v42 }
 0x1d7   : > { %843 = vrot.lane.b32.xlu1 %v818_v5, %s4056_s30  ;;  %v1748_v12 = vrot.slane %v4602_v61, %v4436_v52  ;;  %v1342_v0 = vrot.slane %v4620_v40, %v4550_v33  ;;  %v1496_v30 = vrot.slane %v4637_v62, %v4447_v41  ;;  %v1570_v11 = vcombine.low %v4458_v18, %v4602_v61 }
 0x1d8   : > { %v1571_v1 = vcombine.high %v4458_v18, %v4602_v61  ;;  %v921_v34 = vcombine.high %v4558_v45, %v4558_v45  ;;  %v4720_v42 = vcombine.high %v4555_v36, %v4555_v36  ;;  %v1306_v45 = vrot.slane %v4607_v21, %v4447_v41 }
 0x1d9   : > { %845 = vrot.lane.b32.xlu0 %v822_v9, %s4056_s30  ;;  %v4624_v7 = vrot.slane %v1748_v12, %v4436_v52  ;;  %v4648_v63 = vrot.slane %v1570_v11, %v4436_v52  ;;  %v1756_v13 = vcombine.high %v1748_v12, %v1748_v12  ;;  %v1470_v56 = vcombine.high %v4591_v28, %v4591_v28 }
 0x1da   : > { %v4661_v8 = vrot.slane %v1571_v1, %v4436_v52  ;;  %v977_v35 = vrot.slane %v4720_v42, %v4550_v33  ;;  %v4727_v38 = vrot.slane %v921_v34, %v4436_v52  ;;  %v1338_v31 = vrot.slane %v4620_v40, %v4447_v41 }
 0x1db   : > { %847 = vrot.lane.b32.xlu1 %v826_v15, %s4056_s30  ;;  %v1793_v37 = vrot.slane %v4624_v7, %v4447_v41  ;;  %v4680_v22 = vrot.slane %v1756_v13, %v4436_v52  ;;  %v1122_v60 = vcombine.high %v4577_v55, %v4577_v55  ;;  %v1741_v11 = vcombine.high %v4602_v61, %v4602_v61 }
 0x1dc   : > { %v1786_v19 = vcombine.high %v4624_v7, %v4624_v7 }
 0x1dd   : > { %849 = vrot.lane.b32.xlu0 %v830_v6, %s4056_s30  ;;  %v1797_v14 = vrot.slane %v4680_v22, %v4447_v41  ;;  %v1139_v55 = vrot.slane %v1122_v60, %v4447_v41 }
 0x1df   : > { %875 = vrot.lane.b32.xlu1 %v818_v5, %s4059_s5  ;;  %v4658_v5 = vrot.slane %v4648_v63, %v4436_v52 }
 0x1e1   : > { %877 = vrot.lane.b32.xlu0 %v822_v9, %s4059_s5  ;;  %v1627_v18 = vrot.slane %v4658_v5, %v4550_v33  ;;  %v4669_v9 = vrot.slane %v4661_v8, %v4436_v52 }
 0x1e3   : > { %879 = vrot.lane.b32.xlu1 %v826_v15, %s4059_s5  ;;  %v957_v15 = vrot.slane %v4555_v36, %v4447_v41  ;;  %v1001_v36 = vrot.slane %v4727_v38, %v4550_v33 }
 0x1e5   : > { %881 = vrot.lane.b32.xlu0 %v830_v6, %s4059_s5  ;;  %v1659_v6 = vrot.slane %v4669_v9, %v4550_v33 }
 0x1e7   : > { %1156 = vrot.lane.b32.xlu1 %v1127_v48, %s4066_s4 }
 0x1e9   : > { %1020 = vrot.lane.b32.xlu0 %v961_v44, %s4067_s6  ;;  %v4694_v44 = vrot.slane %v1089_v29, %v4436_v52 }
 0x1eb   : > { %1188 = vrot.lane.b32.xlu1 %v1127_v48, %s4068_s7  ;;  %v1143_v32 = vrot.slane %v4694_v44, %v4447_v41 }
 0x1ed   : > { %1036 = vrot.lane.b32.xlu0 %v993_v54, %s4067_s6  ;;  %v4710_v54 = vrot.slane %v920_v51, %v4436_v52 }
 0x1ef   : > { %1220 = vrot.lane.b32.xlu1 %v1127_v48, %s4069_s8  ;;  %v1135_v48 = vrot.slane %v1120_v25, %v4447_v41  ;;  %v969_v26 = vrot.slane %v4710_v54, %v4550_v33  ;;  %v4793_v25 = vrot.slane %v1741_v11, %v4436_v52 }
 0x1f1   : > { %1158 = vrot.lane.b32.xlu0 %v1131_v24, %s4066_s4  ;;  %v4814_v51 = vrot.slane %v4793_v25, %v4436_v52 }
 0x1f3   : > { %1509 = vrot.lane.b32.xlu1 %v1484_v57, %s4064_s29 }
 0x1f5   : > { %1190 = vrot.lane.b32.xlu0 %v1131_v24, %s4068_s7 }
 0x1f7   : > { %1513 = vrot.lane.b32.xlu1 %v1492_v59, %s4064_s29 }
 0x1f9   : > { %1222 = vrot.lane.b32.xlu0 %v1131_v24, %s4069_s8  ;;  %v4737_v24 = vcombine.high %v4568_v47, %v4568_v47 }
 0x1fb   : > { %1541 = vrot.lane.b32.xlu1 %v1484_v57, %s4065_s3  ;;  %v1009_v47 = vrot.slane %v4737_v24, %v4550_v33 }
 0x1fd   : > { %1369 = vrot.lane.b32.xlu0 %v1310_v16, %s4070_s15  ;;  %v1500_v16 = vrot.slane %v1470_v56, %v4447_v41 }
 0x1ff   : > { %1545 = vrot.lane.b32.xlu1 %v1492_v59, %s4065_s3  ;;  %v1091_v59 = vcombine.high %v1089_v29, %v1089_v29 }
 0x201   : > { %1385 = vrot.lane.b32.xlu0 %v1342_v0, %s4070_s15  ;;  %v4760_v43 = vrot.slane %v1091_v59, %v4436_v52 }
 0x203   : > { %1822 = vrot.lane.b32.xlu1 %v1793_v37, %s4071_s16 }
 0x205   : > { %1511 = vrot.lane.b32.xlu0 %v1488_v53, %s4064_s29 }
 0x207   : > { %1854 = vrot.lane.b32.xlu1 %v1793_v37, %s4072_s18 }
 0x209   : > { %1515 = vrot.lane.b32.xlu0 %v1496_v30, %s4064_s29 }
 0x20b   : > { %1886 = vrot.lane.b32.xlu1 %v1793_v37, %s4073_s20  ;;  %v2239_v37 = vcombine.high %v4477_v27, %v4477_v27 }
 0x20d   : > { %1543 = vrot.lane.b32.xlu0 %v1488_v53, %s4065_s3 }
 0x20f   : > { %851 = vrot.lane.b32.xlu1 %v834_v2, %s4056_s30 }
 0x211   : > { %1547 = vrot.lane.b32.xlu0 %v1496_v30, %s4065_s3  ;;  %v1147_v30 = vrot.slane %v4760_v43, %v4447_v41 }
 0x213   : > { %883 = vrot.lane.b32.xlu1 %v834_v2, %s4059_s5  ;;  %v1623_v2 = vrot.slane %v4658_v5, %v4447_v41 }
 0x215   : > { %1686 = vrot.lane.b32.xlu0 %v1627_v18, %s4074_s23  ;;  %v2253_v18 = vrot.slane %v2239_v37, %v4436_v52 }
 0x217   : > { %1018 = vrot.lane.b32.xlu1 %v957_v15, %s4067_s6  ;;  %v2254_v15 = vcombine.high %v4483_v3, %v4483_v3  ;;  %v2255_v3 = vcombine.high %v2253_v18, %v2253_v18 }
 0x219   : > { %1702 = vrot.lane.b32.xlu0 %v1659_v6, %s4074_s23  ;;  %v4801_v7 = vrot.slane %v2254_v15, %v4436_v52 }
 0x21b   : > { %1034 = vrot.lane.b32.xlu1 %v989_v23, %s4067_s6  ;;  %v1655_v23 = vrot.slane %v4669_v9, %v4447_v41  ;;  %2297 = vst.msk [vmem:[%s4452_s28 + $0x21] sm:$0x1] %vm798_vm15, %v4801_v7  ;;  %v4826_v34 = vcombine.high %v4801_v7, %v4801_v7 }
 0x21d   : > { %1824 = vrot.lane.b32.xlu0 %v1797_v14, %s4071_s16  ;;  %2299 = vst.msk [vmem:[%s4452_s28 + $0x61] sm:$0x1] %vm798_vm15, %v4826_v34 }
 0x21f   : > { %1160 = vrot.lane.b32.xlu1 %v1135_v48, %s4066_s4 }
 0x221   : > { %1856 = vrot.lane.b32.xlu0 %v1797_v14, %s4072_s18 }
 0x223   : > { %1164 = vrot.lane.b32.xlu1 %v1143_v32, %s4066_s4 }
 0x225   : > { %1888 = vrot.lane.b32.xlu0 %v1797_v14, %s4073_s20  ;;  %v4805_v14 = vcombine.high %v4492_v50, %v4492_v50 }
 0x227   : > { %1192 = vrot.lane.b32.xlu1 %v1135_v48, %s4068_s7  ;;  %2298 = vst.msk [vmem:[%s4452_s28 + $0x41] sm:$0x1] %vm798_vm15, %v4805_v14 }
 0x229   : > { %853 = vrot.lane.b32.xlu0 %v838_v49, %s4056_s30 }
 0x22b   : > { %1196 = vrot.lane.b32.xlu1 %v1143_v32, %s4068_s7 }
 0x22d   : > { %885 = vrot.lane.b32.xlu0 %v838_v49, %s4059_s5  ;;  %v1801_v49 = vrot.slane %v1786_v19, %v4447_v41 }
 0x22f   : > { %1224 = vrot.lane.b32.xlu1 %v1135_v48, %s4069_s8  ;;  %v4808_v48 = vrot.slane %v2253_v18, %v4436_v52 }
 0x231   : > { %1024 = vrot.lane.b32.xlu0 %v969_v26, %s4067_s6  ;;  %2300 = vst.msk [vmem:[%s4452_s28 + $0x81] sm:$0x1] %vm798_vm15, %v4808_v48  ;;  %v1269_v26 = vcombine.high %v4595_v58, %v4595_v58  ;;  %v1809_v58 = vrot.slane %v4814_v51, %v4447_v41 }
 0x233   : > { %1228 = vrot.lane.b32.xlu1 %v1143_v32, %s4069_s8  ;;  %v4863_v60 = vrot.slane %v1269_v26, %v4436_v52 }
 0x235   : > { %1028 = vrot.lane.b32.xlu0 %v977_v35, %s4067_s6 }
 0x237   : > { %1367 = vrot.lane.b32.xlu1 %v1306_v45, %s4070_s15  ;;  %v4835_v45 = vrot.slane %v2255_v3, %v4436_v52 }
 0x239   : > { %v840_v57 = vpop.permute.xlu1 %839  ;;  %1040 = vrot.lane.b32.xlu0 %v1001_v36, %s4067_s6  ;;  %v4839_v36 = vcombine.high %v4808_v48, %v4808_v48  ;;  %2301 = vst.msk [vmem:[%s4452_s28 + $0xa1] sm:$0x1] %vm798_vm15, %v4835_v45 }
 0x23a   : > { %863 = vst.msk [vmem:[%s4452_s28 + $0x2] sm:$0x1] %vm798_vm15, %v840_v57  ;;  %v4857_v57 = vcombine.high %v4835_v45, %v4835_v45 }
 0x23b   : > { %v842_v12 = vpop.permute.xlu0 %841  ;;  %1383 = vrot.lane.b32.xlu1 %v1338_v31, %s4070_s15  ;;  %2302 = vst.msk [vmem:[%s4452_s28 + $0xc1] sm:$0x1] %vm798_vm15, %v4839_v36 }
 0x23c   : > { %864 = vst.msk [vmem:[%s4452_s28 + $0x22] sm:$0x1] %vm798_vm15, %v842_v12  ;;  %2303 = vst.msk [vmem:[%s4452_s28 + $0xe1] sm:$0x1] %vm798_vm15, %v4857_v57  ;;  %v1270_v12 = vcombine.high %v4610_v46, %v4610_v46 }
 0x23d   : > { %v872_v28 = vpop.permute.xlu1 %871  ;;  %1044 = vrot.lane.b32.xlu0 %v1009_v47, %s4067_s6 }
 0x23e   : > { %895 = vst.msk [vmem:[%s4452_s28 + $0x4] sm:$0x1] %vm798_vm15, %v872_v28  ;;  %v1318_v28 = vrot.slane %v4863_v60, %v4550_v33 }
 0x23f   : > { %v874_v0 = vpop.permute.xlu0 %873  ;;  %1517 = vrot.lane.b32.xlu1 %v1500_v16, %s4064_s29 }
 0x240   : > { %896 = vst.msk [vmem:[%s4452_s28 + $0x24] sm:$0x1] %vm798_vm15, %v874_v0 }
 0x241   : > { %v1506_v20 = vpop.permute.xlu1 %1505  ;;  %1162 = vrot.lane.b32.xlu0 %v1139_v55, %s4066_s4 }
 0x242   : > { %1529 = vst.msk [vmem:[%s4452_s28 + $0x10] sm:$0x1] %vm798_vm15, %v1506_v20  ;;  %v4893_v20 = vrot.slane %v1270_v12, %v4436_v52 }
 0x243   : > { %v1508_v53 = vpop.permute.xlu0 %1507  ;;  %1549 = vrot.lane.b32.xlu1 %v1500_v16, %s4065_s3  ;;  %v4880_v16 = vcombine.high %v4607_v21, %v4607_v21 }
 0x244   : > { %1530 = vst.msk [vmem:[%s4452_s28 + $0x30] sm:$0x1] %vm798_vm15, %v1508_v53  ;;  %v1350_v53 = vrot.slane %v4893_v20, %v4550_v33 }
 0x245   : > { %v1538_v1 = vpop.permute.xlu1 %1537  ;;  %1166 = vrot.lane.b32.xlu0 %v1147_v30, %s4066_s4  ;;  %v1326_v46 = vrot.slane %v4880_v16, %v4550_v33 }
 0x246   : > { %1561 = vst.msk [vmem:[%s4452_s28 + $0x12] sm:$0x1] %vm798_vm15, %v1538_v1  ;;  %v1472_v1 = vcombine.high %v4637_v62, %v4637_v62  ;;  %v1586_v62 = vcombine.high %v4648_v63, %v4648_v63 }
 0x247   : > { %v1540_v13 = vpop.permute.xlu0 %1539  ;;  %1684 = vrot.lane.b32.xlu1 %v1623_v2, %s4074_s23 }
 0x248   : > { %1562 = vst.msk [vmem:[%s4452_s28 + $0x32] sm:$0x1] %vm798_vm15, %v1540_v13  ;;  %v965_v13 = vrot.slane %v4710_v54, %v4447_v41  ;;  %v1504_v19 = vrot.slane %v1472_v1, %v4447_v41  ;;  %v4935_v63 = vrot.slane %v1586_v62, %v4436_v52 }
 0x249   : > { %v844_v6 = vpop.permute.xlu1 %843  ;;  %1194 = vrot.lane.b32.xlu0 %v1139_v55, %s4068_s7 }
 0x24a   : > { %865 = vst.msk [vmem:[%s4452_s28 + $0x42] sm:$0x1] %vm798_vm15, %v844_v6  ;;  %v1635_v26 = vrot.slane %v4935_v63, %v4550_v33 }
 0x24b   : > { %v846_v29 = vpop.permute.xlu0 %845  ;;  %1700 = vrot.lane.b32.xlu1 %v1655_v23, %s4074_s23  ;;  %v973_v23 = vrot.slane %v4720_v42, %v4447_v41  ;;  %v1587_v42 = vcombine.high %v4661_v8, %v4661_v8  ;;  %v1005_v8 = vrot.slane %v4737_v24, %v4447_v41 }
 0x24c   : > { %866 = vst.msk [vmem:[%s4452_s28 + $0x62] sm:$0x1] %vm798_vm15, %v846_v29 }
 0x24d   : > { %v848_v32 = vpop.permute.xlu1 %847  ;;  %1198 = vrot.lane.b32.xlu0 %v1147_v30, %s4068_s7 }
 0x24e   : > { %867 = vst.msk [vmem:[%s4452_s28 + $0x82] sm:$0x1] %vm798_vm15, %v848_v32  ;;  %v997_v32 = vrot.slane %v4727_v38, %v4447_v41 }
 0x24f   : > { %v850_v35 = vpop.permute.xlu0 %849  ;;  %1826 = vrot.lane.b32.xlu1 %v1801_v49, %s4071_s16 }
 0x250   : > { %868 = vst.msk [vmem:[%s4452_s28 + $0xa2] sm:$0x1] %vm798_vm15, %v850_v35  ;;  %v4953_v35 = vcombine.high %v4658_v5, %v4658_v5 }
 0x251   : > { %v876_v56 = vpop.permute.xlu1 %875  ;;  %1226 = vrot.lane.b32.xlu0 %v1139_v55, %s4069_s8 }
 0x252   : > { %897 = vst.msk [vmem:[%s4452_s28 + $0x44] sm:$0x1] %vm798_vm15, %v876_v56  ;;  %v1121_v56 = vcombine.high %v4694_v44, %v4694_v44  ;;  %v1643_v5 = vrot.slane %v4953_v35, %v4550_v33 }
 0x253   : > { %v878_v31 = vpop.permute.xlu0 %877  ;;  %1830 = vrot.lane.b32.xlu1 %v1809_v58, %s4071_s16 }
 0x254   : > { %898 = vst.msk [vmem:[%s4452_s28 + $0x64] sm:$0x1] %vm798_vm15, %v878_v31  ;;  %v1151_v12 = vrot.slane %v1121_v56, %v4447_v41 }
 0x255   : > { %v880_v59 = vpop.permute.xlu1 %879  ;;  %1230 = vrot.lane.b32.xlu0 %v1147_v30, %s4069_s8  ;;  %v4905_v30 = vcombine.high %v4620_v40, %v4620_v40 }
 0x256   : > { %899 = vst.msk [vmem:[%s4452_s28 + $0x84] sm:$0x1] %vm798_vm15, %v880_v59  ;;  %v4968_v59 = vrot.slane %v1587_v42, %v4436_v52  ;;  %v684_v42 = vadd.s32 512, %v4406_v17 }
 0x257   : > { %v882_v47 = vpop.permute.xlu0 %881  ;;  %1858 = vrot.lane.b32.xlu1 %v1801_v49, %s4072_s18  ;;  %v1358_v18 = vrot.slane %v4905_v30, %v4550_v33 }
 0x258   : > { %900 = vst.msk [vmem:[%s4452_s28 + $0xa4] sm:$0x1] %vm798_vm15, %v882_v47  ;;  %v1667_v47 = vrot.slane %v4968_v59, %v4550_v33 }
 0x259   : > { %v1157_v0 = vpop.permute.xlu1 %1156  ;;  %1373 = vrot.lane.b32.xlu0 %v1318_v28, %s4070_s15  ;;  %v4979_v28 = vcombine.high %v4669_v9, %v4669_v9  ;;  %v1757_v9 = vcombine.high %v4793_v25, %v4793_v25 }
 0x25a   : > { %1180 = vst.msk [vmem:[%s4452_s28 + $0x8] sm:$0x1] %vm798_vm15, %v1157_v0 }
 0x25b   : > { %v4887_v55 = vpop.permute.xlu0 %1020  ;;  %1862 = vrot.lane.b32.xlu1 %v1809_v58, %s4072_s18 }
 0x25d   : > { %v1189_v21 = vpop.permute.xlu1 %1188  ;;  %1377 = vrot.lane.b32.xlu0 %v1326_v46, %s4070_s15  ;;  %v1788_v46 = vcombine.high %v4680_v22, %v4680_v22 }
 0x25e   : > { %1212 = vst.msk [vmem:[%s4452_s28 + $0xa] sm:$0x1] %vm798_vm15, %v1189_v21 }
 0x25f   : > { %v4898_v37 = vpop.permute.xlu0 %1036  ;;  %1890 = vrot.lane.b32.xlu1 %v1801_v49, %s4073_s20  ;;  %v1805_v22 = vrot.slane %v1788_v46, %v4447_v41 }
 0x261   : > { %v1221_v11 = vpop.permute.xlu1 %1220  ;;  %1389 = vrot.lane.b32.xlu0 %v1350_v53, %s4070_s15  ;;  %v1675_v53 = vrot.slane %v4979_v28, %v4550_v33 }
 0x262   : > { %1244 = vst.msk [vmem:[%s4452_s28 + $0xc] sm:$0x1] %vm798_vm15, %v1221_v11 }
 0x263   : > { %v1159_v2 = vpop.permute.xlu0 %1158  ;;  %1894 = vrot.lane.b32.xlu1 %v1809_v58, %s4073_s20 }
 0x264   : > { %1181 = vst.msk [vmem:[%s4452_s28 + $0x28] sm:$0x1] %vm798_vm15, %v1159_v2  ;;  %v5001_v2 = vrot.slane %v1757_v9, %v4436_v52  ;;  %v1123_v9 = vcombine.high %v4760_v43, %v4760_v43 }
 0x265   : > { %v1510_v40 = vpop.permute.xlu1 %1509  ;;  %1393 = vrot.lane.b32.xlu0 %v1358_v18, %s4070_s15  ;;  %v1314_v18 = vrot.slane %v4863_v60, %v4447_v41 }
 0x266   : > { %1531 = vst.msk [vmem:[%s4452_s28 + $0x50] sm:$0x1] %vm798_vm15, %v1510_v40  ;;  %v1155_v43 = vrot.slane %v1123_v9, %v4447_v41 }
 0x267   : > { %v1191_v15 = vpop.permute.xlu0 %1190  ;;  %1022 = vrot.lane.b32.xlu1 %v965_v13, %s4067_s6  ;;  %v1813_v13 = vrot.slane %v5001_v2, %v4447_v41 }
 0x268   : > { %1213 = vst.msk [vmem:[%s4452_s28 + $0x2a] sm:$0x1] %vm798_vm15, %v1191_v15  ;;  %v1322_v15 = vrot.slane %v4880_v16, %v4447_v41 }
 0x269   : > { %v1514_v6 = vpop.permute.xlu1 %1513  ;;  %1519 = vrot.lane.b32.xlu0 %v1504_v19, %s4064_s29 }
 0x26a   : > { %1533 = vst.msk [vmem:[%s4452_s28 + $0x90] sm:$0x1] %vm798_vm15, %v1514_v6 }
 0x26b   : > { %v1223_v3 = vpop.permute.xlu0 %1222  ;;  %1026 = vrot.lane.b32.xlu1 %v973_v23, %s4067_s6  ;;  %v1346_v23 = vrot.slane %v4893_v20, %v4447_v41 }
 0x26c   : > { %1245 = vst.msk [vmem:[%s4452_s28 + $0x2c] sm:$0x1] %vm798_vm15, %v1223_v3 }
 0x26d   : > { %v1542_v29 = vpop.permute.xlu1 %1541  ;;  %1551 = vrot.lane.b32.xlu0 %v1504_v19, %s4065_s3 }
 0x26e   : > { %1563 = vst.msk [vmem:[%s4452_s28 + $0x52] sm:$0x1] %vm798_vm15, %v1542_v29 }
 0x26f   : > { %v4946_v49 = vpop.permute.xlu0 %1369  ;;  %1038 = vrot.lane.b32.xlu1 %v997_v32, %s4067_s6  ;;  %v1354_v32 = vrot.slane %v4905_v30, %v4447_v41  ;;  %v1631_v30 = vrot.slane %v4935_v63, %v4447_v41 }
 0x271   : > { %v1546_v58 = vpop.permute.xlu1 %1545  ;;  %1690 = vrot.lane.b32.xlu0 %v1635_v26, %s4074_s23 }
 0x272   : > { %1565 = vst.msk [vmem:[%s4452_s28 + $0x92] sm:$0x1] %vm798_vm15, %v1546_v58  ;;  %v3855_v58 = vpop.f32.mrf.mxu0 }
 0x273   : > { %v4962_v31 = vpop.permute.xlu0 %1385  ;;  %1042 = vrot.lane.b32.xlu1 %v1005_v8, %s4067_s6  ;;  %v689_v8 = vand.u32 1, %v684_v42  ;;  %v1302_v42 = vcombine.high %v4893_v20, %v4893_v20  ;;  %v1618_v20 = vcombine.high %v4935_v63, %v4935_v63 }
 0x275   : > { %v1823_v44 = vpop.permute.xlu1 %1822  ;;  %1694 = vrot.lane.b32.xlu0 %v1643_v5, %s4074_s23  ;;  %vm5057_vm6 = vcmp.eq.s32.totalorder %v689_v8, 0 }
 0x276   : > { %1846 = vst.msk [vmem:[%s4452_s28 + $0x16] sm:$0x1] %vm798_vm15, %v1823_v44  ;;  %v1639_v44 = vrot.slane %v4953_v35, %v4447_v41 }
 0x277   : > { %v1512_v24 = vpop.permute.xlu0 %1511  ;;  %1168 = vrot.lane.b32.xlu1 %v1151_v12, %s4066_s4 }
 0x278   : > { %1532 = vst.msk [vmem:[%s4452_s28 + $0x70] sm:$0x1] %vm798_vm15, %v1512_v24 }
 0x279   : > { %v1855_v0 = vpop.permute.xlu1 %1854  ;;  %1706 = vrot.lane.b32.xlu0 %v1667_v47, %s4074_s23 }
 0x27a   : > { %1878 = vst.msk [vmem:[%s4452_s28 + $0x18] sm:$0x1] %vm798_vm15, %v1855_v0  ;;  %v953_v0 = vcombine.high %v4727_v38, %v4727_v38 }
 0x27b   : > { %v1516_v21 = vpop.permute.xlu0 %1515  ;;  %1200 = vrot.lane.b32.xlu1 %v1151_v12, %s4068_s7 }
 0x27c   : > { %1534 = vst.msk [vmem:[%s4452_s28 + $0xb0] sm:$0x1] %vm798_vm15, %v1516_v21  ;;  %v1663_v21 = vrot.slane %v4968_v59, %v4447_v41  ;;  %v1017_v38 = vrot.slane %v953_v0, %v4550_v33  ;;  %v1013_v8 = vrot.slane %v953_v0, %v4447_v41 }
 0x27d   : > { %v1887_v11 = vpop.permute.xlu1 %1886  ;;  %1710 = vrot.lane.b32.xlu0 %v1675_v53, %s4074_s23 }
 0x27e   : > { %1910 = vst.msk [vmem:[%s4452_s28 + $0x1a] sm:$0x1] %vm798_vm15, %v1887_v11 }
 0x27f   : > { %v1544_v1 = vpop.permute.xlu0 %1543  ;;  %1232 = vrot.lane.b32.xlu1 %v1151_v12, %s4069_s8  ;;  %v660_v12 = vpop.f32.mrf.mxu0 }
 0x280   : > { %1564 = vst.msk [vmem:[%s4452_s28 + $0x72] sm:$0x1] %vm798_vm15, %v1544_v1  ;;  %v5071_v35 = vsel %vm5057_vm6, %v660_v12, %v3855_v58 }
 0x281   : > { %v852_v25 = vpop.permute.xlu1 %851  ;;  %1828 = vrot.lane.b32.xlu0 %v1805_v22, %s4071_s16  ;;  %v719_v11 = vmin.f32 %v5071_v35, 0.0  ;;  %vm714_vm8 = vcmp.gt.f32.partialorder %v5071_v35, 0.0 }
 0x282   : > { %869 = vst.msk [vmem:[%s4452_s28 + $0xc2] sm:$0x1] %vm798_vm15, %v852_v25  ;;  %v1787_v25 = vcombine.high %v4814_v51, %v4814_v51 }
 0x283   : > { %v1548_v40 = vpop.permute.xlu0 %1547  ;;  %1371 = vrot.lane.b32.xlu1 %v1314_v18, %s4070_s15 }
 0x284   : > { %1566 = vst.msk [vmem:[%s4452_s28 + $0xb2] sm:$0x1] %vm798_vm15, %v1548_v40  ;;  %v728_v40 = vmul.f32 1.442695, %v719_v11 }
 0x285   : > { %v884_v62 = vpop.permute.xlu1 %883  ;;  %1832 = vrot.lane.b32.xlu0 %v1813_v13, %s4071_s16 }
 0x286   : > { %901 = vst.msk [vmem:[%s4452_s28 + $0xc4] sm:$0x1] %vm798_vm15, %v884_v62  ;;  %3966 = vpow2.f32 %v728_v40 }
 0x287   : > { %v5020_v19 = vpop.permute.xlu0 %1686  ;;  %1375 = vrot.lane.b32.xlu1 %v1322_v15, %s4070_s15 }
 0x289   : > { %v1019_v6 = vpop.permute.xlu1 %1018  ;;  %1860 = vrot.lane.b32.xlu0 %v1805_v22, %s4072_s18 }
 0x28a   : > { %v1051_v3 = vsel %vm1050_vm5, %v1019_v6, %v4887_v55  ;;  %v1301_v6 = vcombine.high %v4863_v60, %v4863_v60 }
 0x28b   : > { %1067 = vst.msk [vmem:[%s4452_s28 + $0x6] sm:$0x1] %vm798_vm15, %v1051_v3  ;;  %v5030_v16 = vpop.permute.xlu0 %1702  ;;  %1387 = vrot.lane.b32.xlu1 %v1346_v23, %s4070_s15 }
 0x28d   : > { %v1035_v29 = vpop.permute.xlu1 %1034  ;;  %1864 = vrot.lane.b32.xlu0 %v1813_v13, %s4072_s18 }
 0x28e   : > { %v1055_v26 = vsel %vm1050_vm5, %v1035_v29, %v4898_v37  ;;  %v952_v37 = vcombine.high %v4710_v54, %v4710_v54 }
 0x28f   : > { %1071 = vst.msk [vmem:[%s4452_s28 + $0x86] sm:$0x1] %vm798_vm15, %v1055_v26  ;;  %v1825_v55 = vpop.permute.xlu0 %1824  ;;  %1391 = vrot.lane.b32.xlu1 %v1354_v32, %s4070_s15  ;;  %v1334_v32 = vrot.slane %v1301_v6, %v4550_v33 }
 0x290   : > { %1847 = vst.msk [vmem:[%s4452_s28 + $0x36] sm:$0x1] %vm798_vm15, %v1825_v55  ;;  %v985_v54 = vrot.slane %v952_v37, %v4550_v33  ;;  %v981_v60 = vrot.slane %v952_v37, %v4447_v41  ;;  %v1619_v37 = vcombine.high %v4968_v59, %v4968_v59 }
 0x291   : > { %v1161_v56 = vpop.permute.xlu1 %1160  ;;  %1892 = vrot.lane.b32.xlu0 %v1805_v22, %s4073_s20  ;;  %v1671_v22 = vrot.slane %v4979_v28, %v4447_v41  ;;  %v1817_v28 = vrot.slane %v1787_v25, %v4447_v41 }
 0x292   : > { %1182 = vst.msk [vmem:[%s4452_s28 + $0x48] sm:$0x1] %vm798_vm15, %v1161_v56  ;;  %v1366_v56 = vrot.slane %v1302_v42, %v4550_v33  ;;  %v1683_v59 = vrot.slane %v1619_v37, %v4550_v33 }
 0x293   : > { %v1857_v17 = vpop.permute.xlu0 %1856  ;;  %1688 = vrot.lane.b32.xlu1 %v1631_v30, %s4074_s23  ;;  %v3967_v30 = vpop.eup %3966 }
 0x294   : > { %1879 = vst.msk [vmem:[%s4452_s28 + $0x38] sm:$0x1] %vm798_vm15, %v1857_v17  ;;  %v1651_v17 = vrot.slane %v1618_v20, %v4550_v33 }
 0x295   : > { %v1165_v5 = vpop.permute.xlu1 %1164  ;;  %1896 = vrot.lane.b32.xlu0 %v1813_v13, %s4073_s20 }
 0x296   : > { %1184 = vst.msk [vmem:[%s4452_s28 + $0x88] sm:$0x1] %vm798_vm15, %v1165_v5  ;;  %v3822_v5 = vadd.f32 -1.0, %v3967_v30 }
 0x297   : > { %v1889_v47 = vpop.permute.xlu0 %1888  ;;  %1692 = vrot.lane.b32.xlu1 %v1639_v44, %s4074_s23  ;;  %v1330_v44 = vrot.slane %v1301_v6, %v4447_v41 }
 0x298   : > { %1911 = vst.msk [vmem:[%s4452_s28 + $0x3a] sm:$0x1] %vm798_vm15, %v1889_v47  ;;  %v1789_v47 = vcombine.high %v5001_v2, %v5001_v2 }
 0x299   : > { %v1193_v46 = vpop.permute.xlu1 %1192  ;;  %1032 = vrot.lane.b32.xlu0 %v985_v54, %s4067_s6  ;;  %v739_v54 = vsel %vm714_vm8, %v5071_v35, %v3822_v5 }
 0x29a   : > { %1214 = vst.msk [vmem:[%s4452_s28 + $0x4a] sm:$0x1] %vm798_vm15, %v1193_v46  ;;  %v1362_v46 = vrot.slane %v1302_v42, %v4447_v41  ;;  %v1821_v2 = vrot.slane %v1789_v47, %v4447_v41  ;;  %v2097_v35 = vrot.slane %v739_v54, %v4436_v52  ;;  %v2090_v42 = vcombine.high %v739_v54, %v739_v54 }
 0x29b   : > { %v854_v53 = vpop.permute.xlu0 %853  ;;  %1704 = vrot.lane.b32.xlu1 %v1663_v21, %s4074_s23 }
 0x29c   : > { %870 = vst.msk [vmem:[%s4452_s28 + $0xe2] sm:$0x1] %vm798_vm15, %v854_v53  ;;  %v1919_v53 = vcombine.low %v4602_v61, %v739_v54  ;;  %v2105_v6 = vcombine.high %v2097_v35, %v2097_v35 }
 0x29d   : > { %v1197_v1 = vpop.permute.xlu1 %1196  ;;  %1048 = vrot.lane.b32.xlu0 %v1017_v38, %s4067_s6 }
 0x29e   : > { %1216 = vst.msk [vmem:[%s4452_s28 + $0x8a] sm:$0x1] %vm798_vm15, %v1197_v1  ;;  %v1920_v1 = vcombine.high %v4602_v61, %v739_v54  ;;  %v2127_v30 = vrot.slane %v2105_v6, %v4436_v52 }
 0x29f   : > { %v886_v18 = vpop.permute.xlu0 %885  ;;  %1708 = vrot.lane.b32.xlu1 %v1671_v22, %s4074_s23  ;;  %v1927_v22 = vrot.slane %v1919_v53, %v4436_v52 }
 0x2a0   : > { %902 = vst.msk [vmem:[%s4452_s28 + $0xe4] sm:$0x1] %vm798_vm15, %v886_v18  ;;  %v1934_v61 = vrot.slane %v1920_v1, %v4436_v52  ;;  %v2146_v5 = vrot.slane %v2127_v30, %v4447_v41 }
 0x2a1   : > { %v1225_v13 = vpop.permute.xlu1 %1224  ;;  %1170 = vrot.lane.b32.xlu0 %v1155_v43, %s4066_s4 }
 0x2a2   : > { %1246 = vst.msk [vmem:[%s4452_s28 + $0x4c] sm:$0x1] %vm798_vm15, %v1225_v13  ;;  %v1943_v13 = vrot.slane %v1927_v22, %v4436_v52  ;;  %v1936_v47 = vcombine.high %v1934_v61, %v1934_v61 }
 0x2a3   : > { %v5100_v51 = vpop.permute.xlu0 %1024  ;;  %1834 = vrot.lane.b32.xlu1 %v1817_v28, %s4071_s16 }
 0x2a5   : > { %v1229_v62 = vpop.permute.xlu1 %1228  ;;  %1202 = vrot.lane.b32.xlu0 %v1155_v43, %s4068_s7 }
 0x2a6   : > { %1248 = vst.msk [vmem:[%s4452_s28 + $0x8c] sm:$0x1] %vm798_vm15, %v1229_v62 }
 0x2a7   : > { %v5106_v15 = vpop.permute.xlu0 %1028  ;;  %1866 = vrot.lane.b32.xlu1 %v1817_v28, %s4072_s18 }
 0x2a9   : > { %v1368_v23 = vpop.permute.xlu1 %1367  ;;  %1234 = vrot.lane.b32.xlu0 %v1155_v43, %s4069_s8  ;;  %v1679_v43 = vrot.slane %v1619_v37, %v4447_v41 }
 0x2aa   : > { %v1400_v3 = vsel %vm1399_vm7, %v1368_v23, %v4946_v49 }
 0x2ab   : > { %1416 = vst.msk [vmem:[%s4452_s28 + $0xe] sm:$0x1] %vm798_vm15, %v1400_v3  ;;  %v5116_v29 = vpop.permute.xlu0 %1040  ;;  %1898 = vrot.lane.b32.xlu1 %v1817_v28, %s4073_s20  ;;  %v1976_v3 = vrot.slane %v1943_v13, %v4550_v33 }
 0x2ad   : > { %v1384_v26 = vpop.permute.xlu1 %1383  ;;  %1381 = vrot.lane.b32.xlu0 %v1334_v32, %s4070_s15  ;;  %v1950_v32 = vrot.slane %v1934_v61, %v4436_v52 }
 0x2ae   : > { %v1404_v49 = vsel %vm1399_vm7, %v1384_v26, %v4962_v31 }
 0x2af   : > { %1420 = vst.msk [vmem:[%s4452_s28 + $0x8e] sm:$0x1] %vm798_vm15, %v1404_v49  ;;  %v5128_v55 = vpop.permute.xlu0 %1044  ;;  %1030 = vrot.lane.b32.xlu1 %v981_v60, %s4067_s6  ;;  %v1972_v60 = vrot.slane %v1943_v13, %v4447_v41  ;;  %v1935_v49 = vcombine.high %v1927_v22, %v1927_v22 }
 0x2b1   : > { %v1518_v58 = vpop.permute.xlu1 %1517  ;;  %1397 = vrot.lane.b32.xlu0 %v1366_v56, %s4070_s15 }
 0x2b2   : > { %1535 = vst.msk [vmem:[%s4452_s28 + $0xd0] sm:$0x1] %vm798_vm15, %v1518_v58  ;;  %v5208_v58 = vrot.slane %v2090_v42, %v4436_v52 }
 0x2b3   : > { %v1163_v31 = vpop.permute.xlu0 %1162  ;;  %1046 = vrot.lane.b32.xlu1 %v1013_v8, %s4067_s6 }
 0x2b4   : > { %1183 = vst.msk [vmem:[%s4452_s28 + $0x68] sm:$0x1] %vm798_vm15, %v1163_v31  ;;  %v2004_v31 = vrot.slane %v1950_v32, %v4447_v41 }
 0x2b5   : > { %v1550_v63 = vpop.permute.xlu1 %1549  ;;  %1698 = vrot.lane.b32.xlu0 %v1651_v17, %s4074_s23 }
 0x2b6   : > { %1567 = vst.msk [vmem:[%s4452_s28 + $0xd2] sm:$0x1] %vm798_vm15, %v1550_v63  ;;  %v1957_v63 = vrot.slane %v1935_v49, %v4436_v52  ;;  %v2106_v49 = vcombine.high %v5208_v58, %v5208_v58 }
 0x2b7   : > { %v1167_v12 = vpop.permute.xlu0 %1166  ;;  %1379 = vrot.lane.b32.xlu1 %v1330_v44, %s4070_s15 }
 0x2b8   : > { %1185 = vst.msk [vmem:[%s4452_s28 + $0xa8] sm:$0x1] %vm798_vm15, %v1167_v12 }
 0x2b9   : > { %v1685_v0 = vpop.permute.xlu1 %1684  ;;  %1714 = vrot.lane.b32.xlu0 %v1683_v59, %s4074_s23  ;;  %v5223_v59 = vrot.slane %v5208_v58, %v4436_v52 }
 0x2ba   : > { %v1717_v21 = vsel %vm1716_vm9, %v1685_v0, %v5020_v19  ;;  %v1647_v19 = vrot.slane %v1618_v20, %v4447_v41  ;;  %v2008_v20 = vrot.slane %v1950_v32, %v4550_v33  ;;  %v1984_v0 = vrot.slane %v1957_v63, %v4550_v33 }
 0x2bb   : > { %1733 = vst.msk [vmem:[%s4452_s28 + $0x14] sm:$0x1] %vm798_vm15, %v1717_v21  ;;  %v1195_v38 = vpop.permute.xlu0 %1194  ;;  %1395 = vrot.lane.b32.xlu1 %v1362_v46, %s4070_s15  ;;  %v1965_v46 = vcombine.high %v1943_v13, %v1943_v13  ;;  %v2158_v53 = vrot.slane %v5223_v59, %v4447_v41 }
 0x2bc   : > { %1215 = vst.msk [vmem:[%s4452_s28 + $0x6a] sm:$0x1] %vm798_vm15, %v1195_v38 }
 0x2bd   : > { %v1701_v9 = vpop.permute.xlu1 %1700  ;;  %1836 = vrot.lane.b32.xlu0 %v1821_v2, %s4071_s16 }
 0x2be   : > { %v1721_v11 = vsel %vm1716_vm9, %v1701_v9, %v5030_v16  ;;  %v2113_v16 = vrot.slane %v2097_v35, %v4436_v52  ;;  %v1964_v35 = vrot.slane %v1936_v47, %v4436_v52 }
 0x2bf   : > { %1737 = vst.msk [vmem:[%s4452_s28 + $0x94] sm:$0x1] %vm798_vm15, %v1721_v11  ;;  %v1199_v25 = vpop.permute.xlu0 %1198  ;;  %1696 = vrot.lane.b32.xlu1 %v1647_v19, %s4074_s23  ;;  %v1980_v19 = vrot.slane %v1957_v63, %v4447_v41 }
 0x2c0   : > { %1217 = vst.msk [vmem:[%s4452_s28 + $0xaa] sm:$0x1] %vm798_vm15, %v1199_v25  ;;  %v2142_v62 = vrot.slane %v2113_v16, %v4447_v41  ;;  %v2135_v17 = vcombine.high %v2113_v16, %v2113_v16  ;;  %v2016_v22 = vrot.slane %v1964_v35, %v4550_v33  ;;  %v1966_v25 = vcombine.high %v1950_v32, %v1950_v32 }
 0x2c1   : > { %v1827_v18 = vpop.permute.xlu1 %1826  ;;  %1868 = vrot.lane.b32.xlu0 %v1821_v2, %s4072_s18 }
 0x2c2   : > { %1848 = vst.msk [vmem:[%s4452_s28 + $0x56] sm:$0x1] %vm798_vm15, %v1827_v18  ;;  %v2150_v12 = vrot.slane %v2135_v17, %v4447_v41  ;;  %v2024_v61 = vrot.slane %v1966_v25, %v4550_v33  ;;  %v2020_v32 = vrot.slane %v1966_v25, %v4447_v41  ;;  %v2134_v17 = vrot.slane %v2106_v49, %v4436_v52 }
 0x2c3   : > { %v1227_v40 = vpop.permute.xlu0 %1226  ;;  %1712 = vrot.lane.b32.xlu1 %v1679_v43, %s4074_s23  ;;  %v1988_v43 = vrot.slane %v1965_v46, %v4447_v41 }
 0x2c4   : > { %1247 = vst.msk [vmem:[%s4452_s28 + $0x6c] sm:$0x1] %vm798_vm15, %v1227_v40  ;;  %v2137_v40 = vcombine.high %v2127_v30, %v2127_v30  ;;  %v2162_v47 = vrot.slane %v2134_v17, %v4447_v41 }
 0x2c5   : > { %v1831_v28 = vpop.permute.xlu1 %1830  ;;  %1900 = vrot.lane.b32.xlu0 %v1821_v2, %s4073_s20  ;;  %v1992_v2 = vrot.slane %v1965_v46, %v4550_v33 }
 0x2c6   : > { %1850 = vst.msk [vmem:[%s4452_s28 + $0x96] sm:$0x1] %vm798_vm15, %v1831_v28  ;;  %v2012_v28 = vrot.slane %v1964_v35, %v4447_v41  ;;  %v2154_v6 = vrot.slane %v2137_v40, %v4447_v41 }
 0x2c7   : > { %v1231_v23 = vpop.permute.xlu0 %1230  ;;  %2171 = vrot.lane.b32.xlu1 %v2142_v62, %s4075_s24 }
 0x2c8   : > { %1249 = vst.msk [vmem:[%s4452_s28 + $0xac] sm:$0x1] %vm798_vm15, %v1231_v23  ;;  %v1967_v23 = vcombine.high %v1957_v63, %v1957_v63  ;;  %v2136_v63 = vcombine.high %v5223_v59, %v5223_v59 }
 0x2c9   : > { %v1859_v26 = vpop.permute.xlu1 %1858  ;;  %2035 = vrot.lane.b32.xlu0 %v1976_v3, %s4076_s25 }
 0x2ca   : > { %1880 = vst.msk [vmem:[%s4452_s28 + $0x58] sm:$0x1] %vm798_vm15, %v1859_v26  ;;  %v2000_v26 = vrot.slane %v1967_v23, %v4550_v33  ;;  %v1996_v30 = vrot.slane %v1967_v23, %v4447_v41 }
 0x2cb   : > { %v5202_v56 = vpop.permute.xlu0 %1373  ;;  %2033 = vrot.lane.b32.xlu1 %v1972_v60, %s4076_s25  ;;  %v1968_v60 = vcombine.high %v1964_v35, %v1964_v35  ;;  %v2307_v35 = vrot.slane %v4492_v50, %v4447_v41  ;;  %v2315_v50 = vrot.slane %v4805_v14, %v4447_v41  ;;  %v2323_v14 = vrot.slane %v4808_v48, %v4447_v41 }
 0x2cc   : > { %v2331_v48 = vrot.slane %v4839_v36, %v4447_v41 }
 0x2cd   : > { %v1863_v8 = vpop.permute.xlu1 %1862  ;;  %2051 = vrot.lane.b32.xlu0 %v2008_v20, %s4076_s25  ;;  %v2028_v58 = vrot.slane %v1968_v60, %v4447_v41 }
 0x2ce   : > { %1882 = vst.msk [vmem:[%s4452_s28 + $0x98] sm:$0x1] %vm798_vm15, %v1863_v8 }
 0x2cf   : > { %v5214_v37 = vpop.permute.xlu0 %1377  ;;  %2049 = vrot.lane.b32.xlu1 %v2004_v31, %s4076_s25  ;;  %v2032_v31 = vrot.slane %v1968_v60, %v4550_v33 }
 0x2d1   : > { %v1891_v44 = vpop.permute.xlu1 %1890  ;;  %2173 = vrot.lane.b32.xlu0 %v2146_v5, %s4075_s24 }
 0x2d2   : > { %1912 = vst.msk [vmem:[%s4452_s28 + $0x5a] sm:$0x1] %vm798_vm15, %v1891_v44 }
 0x2d3   : > { %v5227_v54 = vpop.permute.xlu0 %1389  ;;  %2175 = vrot.lane.b32.xlu1 %v2150_v12, %s4075_s24 }
 0x2d5   : > { %v1895_v21 = vpop.permute.xlu1 %1894  ;;  %2039 = vrot.lane.b32.xlu0 %v1984_v0, %s4076_s25  ;;  %v2138_v0 = vcombine.high %v2134_v17, %v2134_v17 }
 0x2d6   : > { %1914 = vst.msk [vmem:[%s4452_s28 + $0x9a] sm:$0x1] %vm798_vm15, %v1895_v21  ;;  %v2166_v21 = vrot.slane %v2136_v63, %v4447_v41 }
 0x2d7   : > { %v5236_v38 = vpop.permute.xlu0 %1393  ;;  %2179 = vrot.lane.b32.xlu1 %v2158_v53, %s4075_s24  ;;  %v2170_v53 = vrot.slane %v2138_v0, %v4447_v41 }
 0x2d9   : > { %v1023_v9 = vpop.permute.xlu1 %1022  ;;  %2043 = vrot.lane.b32.xlu0 %v1992_v2, %s4076_s25 }
 0x2da   : > { %v1052_v11 = vsel %vm1050_vm5, %v1023_v9, %v5100_v51 }
 0x2db   : > { %1068 = vst.msk [vmem:[%s4452_s28 + $0x26] sm:$0x1] %vm798_vm15, %v1052_v11  ;;  %v1520_v1 = vpop.permute.xlu0 %1519  ;;  %2037 = vrot.lane.b32.xlu1 %v1980_v19, %s4076_s25  ;;  %v2311_v11 = vrot.slane %v4801_v7, %v4447_v41  ;;  %v2319_v7 = vrot.slane %v4826_v34, %v4447_v41  ;;  %v2327_v34 = vrot.slane %v4835_v45, %v4447_v41 }
 0x2dc   : > { %1536 = vst.msk [vmem:[%s4452_s28 + $0xf0] sm:$0x1] %vm798_vm15, %v1520_v1  ;;  %v2335_v45 = vrot.slane %v4857_v57, %v4447_v41 }
 0x2dd   : > { %v1027_v18 = vpop.permute.xlu1 %1026  ;;  %2055 = vrot.lane.b32.xlu0 %v2016_v22, %s4076_s25 }
 0x2de   : > { %v1053_v51 = vsel %vm1050_vm5, %v1027_v18, %v5106_v15 }
 0x2df   : > { %1069 = vst.msk [vmem:[%s4452_s28 + $0x46] sm:$0x1] %vm798_vm15, %v1053_v51  ;;  %v1552_v16 = vpop.permute.xlu0 %1551  ;;  %2041 = vrot.lane.b32.xlu1 %v1988_v43, %s4076_s25 }
 0x2e0   : > { %1568 = vst.msk [vmem:[%s4452_s28 + $0xf2] sm:$0x1] %vm798_vm15, %v1552_v16 }
 0x2e1   : > { %v1039_v13 = vpop.permute.xlu1 %1038  ;;  %2059 = vrot.lane.b32.xlu0 %v2024_v61, %s4076_s25 }
 0x2e2   : > { %v1056_v62 = vsel %vm1050_vm5, %v1039_v13, %v5116_v29 }
 0x2e3   : > { %1072 = vst.msk [vmem:[%s4452_s28 + $0xa6] sm:$0x1] %vm798_vm15, %v1056_v62  ;;  %v5267_v15 = vpop.permute.xlu0 %1690  ;;  %2053 = vrot.lane.b32.xlu1 %v2012_v28, %s4076_s25 }
 0x2e5   : > { %v1043_v3 = vpop.permute.xlu1 %1042  ;;  %2177 = vrot.lane.b32.xlu0 %v2154_v6, %s4075_s24 }
 0x2e6   : > { %v1057_v42 = vsel %vm1050_vm5, %v1043_v3, %v5128_v55  ;;  %v2214_v55 = vmin.f32 %v4427_v39, 0.0 }
 0x2e7   : > { %1073 = vst.msk [vmem:[%s4452_s28 + $0xc6] sm:$0x1] %vm798_vm15, %v1057_v42  ;;  %v5277_v29 = vpop.permute.xlu0 %1694  ;;  %2057 = vrot.lane.b32.xlu1 %v2020_v32, %s4076_s25 }
 0x2e8   : > { %v2220_v44 = vmul.f32 1.442695, %v2214_v55 }
 0x2e9   : > { %v1169_v20 = vpop.permute.xlu1 %1168  ;;  %2047 = vrot.lane.b32.xlu0 %v2000_v26, %s4076_s25 }
 0x2ea   : > { %1186 = vst.msk [vmem:[%s4452_s28 + $0xc8] sm:$0x1] %vm798_vm15, %v1169_v20  ;;  %3968 = vpow2.f32 %v2220_v44 }
 0x2eb   : > { %v5288_v8 = vpop.permute.xlu0 %1706  ;;  %2045 = vrot.lane.b32.xlu1 %v1996_v30, %s4076_s25 }
 0x2ed   : > { %v1201_v5 = vpop.permute.xlu1 %1200  ;;  %2063 = vrot.lane.b32.xlu0 %v2032_v31, %s4076_s25 }
 0x2ee   : > { %1218 = vst.msk [vmem:[%s4452_s28 + $0xca] sm:$0x1] %vm798_vm15, %v1201_v5 }
 0x2ef   : > { %v5299_v12 = vpop.permute.xlu0 %1710  ;;  %2061 = vrot.lane.b32.xlu1 %v2028_v58, %s4076_s25 }
 0x2f1   : > { %v1233_v46 = vpop.permute.xlu1 %1232  ;;  %2181 = vrot.lane.b32.xlu0 %v2162_v47, %s4075_s24 }
 0x2f2   : > { %1250 = vst.msk [vmem:[%s4452_s28 + $0xcc] sm:$0x1] %vm798_vm15, %v1233_v46 }
 0x2f3   : > { %v1829_v59 = vpop.permute.xlu0 %1828  ;;  %2183 = vrot.lane.b32.xlu1 %v2166_v21, %s4075_s24 }
 0x2f4   : > { %1849 = vst.msk [vmem:[%s4452_s28 + $0x76] sm:$0x1] %vm798_vm15, %v1829_v59 }
 0x2f5   : > { %v1372_v2 = vpop.permute.xlu1 %1371  ;;  %2185 = vrot.lane.b32.xlu0 %v2170_v53, %s4075_s24 }
 0x2f6   : > { %v1401_v9 = vsel %vm1399_vm7, %v1372_v2, %v5202_v56 }
 0x2f7   : > { %1417 = vst.msk [vmem:[%s4452_s28 + $0x2e] sm:$0x1] %vm798_vm15, %v1401_v9  ;;  %v1833_v19 = vpop.permute.xlu0 %1832  ;;  %2336 = vrot.lane.b32.xlu1 %v2307_v35, %s4056_s30  ;;  %v3969_v18 = vpop.eup %3968 }
 0x2f8   : > { %1851 = vst.msk [vmem:[%s4452_s28 + $0xb6] sm:$0x1] %vm798_vm15, %v1833_v19 }
 0x2f9   : > { %v1376_v1 = vpop.permute.xlu1 %1375  ;;  %2338 = vrot.lane.b32.xlu0 %v2311_v11, %s4056_s30 }
 0x2fa   : > { %v1402_v56 = vsel %vm1399_vm7, %v1376_v1, %v5214_v37 }
 0x2fb   : > { %1418 = vst.msk [vmem:[%s4452_s28 + $0x4e] sm:$0x1] %vm798_vm15, %v1402_v56  ;;  %v1861_v22 = vpop.permute.xlu0 %1860  ;;  %2340 = vrot.lane.b32.xlu1 %v2315_v50, %s4056_s30 }
 0x2fc   : > { %1881 = vst.msk [vmem:[%s4452_s28 + $0x78] sm:$0x1] %vm798_vm15, %v1861_v22 }
 0x2fd   : > { %v1388_v25 = vpop.permute.xlu1 %1387  ;;  %2342 = vrot.lane.b32.xlu0 %v2319_v7, %s4056_s30 }
 0x2fe   : > { %v1405_v37 = vsel %vm1399_vm7, %v1388_v25, %v5227_v54  ;;  %v3824_v54 = vadd.f32 -1.0, %v3969_v18 }
 0x2ff   : > { %1421 = vst.msk [vmem:[%s4452_s28 + $0xae] sm:$0x1] %vm798_vm15, %v1405_v37  ;;  %v1865_v43 = vpop.permute.xlu0 %1864  ;;  %2344 = vrot.lane.b32.xlu1 %v2323_v14, %s4056_s30 }
 0x300   : > { %1883 = vst.msk [vmem:[%s4452_s28 + $0xb8] sm:$0x1] %vm798_vm15, %v1865_v43  ;;  %v5362_v36 = vsel %vm2209_vm10, %v4427_v39, %v3824_v54  ;;  %v583_v54 = vpop.f32.mrf.mxu1 }
 0x301   : > { %v1392_v51 = vpop.permute.xlu1 %1391  ;;  %2346 = vrot.lane.b32.xlu0 %v2327_v34, %s4056_s30  ;;  %v2401_v57 = vcombine.low %v4477_v27, %v5362_v36  ;;  %v2402_v31 = vcombine.high %v4477_v27, %v5362_v36 }
 0x302   : > { %v1406_v16 = vsel %vm1399_vm7, %v1392_v51, %v5236_v38 }
 0x303   : > { %1422 = vst.msk [vmem:[%s4452_s28 + $0xce] sm:$0x1] %vm798_vm15, %v1406_v16  ;;  %v1893_v61 = vpop.permute.xlu0 %1892  ;;  %2348 = vrot.lane.b32.xlu1 %v2331_v48, %s4056_s30  ;;  %v2409_v6 = vrot.slane %v2401_v57, %v4436_v52  ;;  %v2416_v0 = vrot.slane %v2402_v31, %v4436_v52 }
 0x304   : > { %1913 = vst.msk [vmem:[%s4452_s28 + $0x7a] sm:$0x1] %vm798_vm15, %v1893_v61 }
 0x305   : > { %v1689_v40 = vpop.permute.xlu1 %1688  ;;  %2350 = vrot.lane.b32.xlu0 %v2335_v45, %s4056_s30  ;;  %v2425_v42 = vrot.slane %v2409_v6, %v4436_v52  ;;  %v2432_v2 = vrot.slane %v2416_v0, %v4436_v52  ;;  %s3833_s30 = sshll.u32 %s4044_s12, 12  ;;  %s6147_s12 = scalar_lea.sflag [#allocation3], %s158_s26 }
 0x306   : > { %v1718_v38 = vsel %vm1716_vm9, %v1689_v40, %v5267_v15 }
 0x307   : > { %1734 = vst.msk [vmem:[%s4452_s28 + $0x34] sm:$0x1] %vm798_vm15, %v1718_v38  ;;  %v1897_v13 = vpop.permute.xlu0 %1896  ;;  %2368 = vrot.lane.b32.xlu1 %v2307_v35, %s4059_s5  ;;  %v2454_v20 = vrot.slane %v2425_v42, %v4447_v41  ;;  %v2447_v58 = vcombine.high %v2425_v42, %v2425_v42  ;;  %v2418_v35 = vcombine.high %v2416_v0, %v2416_v0 }
 0x308   : > { %1915 = vst.msk [vmem:[%s4452_s28 + $0xba] sm:$0x1] %vm798_vm15, %v1897_v13  ;;  %v2490_v25 = vrot.slane %v2432_v2, %v4550_v33  ;;  %v2448_v18 = vcombine.high %v2432_v2, %v2432_v2  ;;  %v2571_v38 = vcombine.high %v5362_v36, %v5362_v36 }
 0x309   : > { %v1693_v28 = vpop.permute.xlu1 %1692  ;;  %2370 = vrot.lane.b32.xlu0 %v2311_v11, %s4059_s5  ;;  %v2470_v27 = vrot.slane %v2447_v58, %v4447_v41  ;;  %v2474_v21 = vrot.slane %v2447_v58, %v4550_v33  ;;  %v2446_v56 = vrot.slane %v2418_v35, %v4436_v52 }
 0x30a   : > { %v1719_v39 = vsel %vm1716_vm9, %v1693_v28, %v5277_v29  ;;  %v2417_v29 = vcombine.high %v2409_v6, %v2409_v6  ;;  %v2502_v61 = vrot.slane %v2448_v18, %v4447_v41  ;;  %v2506_v57 = vrot.slane %v2448_v18, %v4550_v33 }
 0x30b   : > { %1735 = vst.msk [vmem:[%s4452_s28 + $0x54] sm:$0x1] %vm798_vm15, %v1719_v39  ;;  %v1033_v62 = vpop.permute.xlu0 %1032  ;;  %2372 = vrot.lane.b32.xlu1 %v2315_v50, %s4059_s5  ;;  %v2486_v50 = vrot.slane %v2432_v2, %v4447_v41  ;;  %v2494_v37 = vrot.slane %v2446_v56, %v4447_v41  ;;  %v2498_v51 = vrot.slane %v2446_v56, %v4550_v33  ;;  %v5455_v39 = vpop.f32.mrf.mxu1 }
 0x30c   : > { %v2439_v30 = vrot.slane %v2417_v29, %v4436_v52  ;;  %v2585_v29 = vrot.slane %v2571_v38, %v4436_v52 }
 0x30d   : > { %v1705_v15 = vpop.permute.xlu1 %1704  ;;  %2374 = vrot.lane.b32.xlu0 %v2319_v7, %s4059_s5 }
 0x30e   : > { %v1722_v23 = vsel %vm1716_vm9, %v1705_v15, %v5288_v8  ;;  %v2458_v8 = vrot.slane %v2425_v42, %v4550_v33  ;;  %v2462_v5 = vrot.slane %v2439_v30, %v4447_v41  ;;  %v2466_v44 = vrot.slane %v2439_v30, %v4550_v33 }
 0x30f   : > { %1738 = vst.msk [vmem:[%s4452_s28 + $0xb4] sm:$0x1] %vm798_vm15, %v1722_v23  ;;  %v1049_v3 = vpop.permute.xlu0 %1048  ;;  %2376 = vrot.lane.b32.xlu1 %v2323_v14, %s4059_s5  ;;  %v2449_v47 = vcombine.high %v2439_v30, %v2439_v30 }
 0x311   : > { %v1709_v32 = vpop.permute.xlu1 %1708  ;;  %2378 = vrot.lane.b32.xlu0 %v2327_v34, %s4059_s5  ;;  %v2478_v53 = vrot.slane %v2449_v47, %v4447_v41  ;;  %v2482_v11 = vrot.slane %v2449_v47, %v4550_v33 }
 0x312   : > { %v1723_v26 = vsel %vm1716_vm9, %v1709_v32, %v5299_v12 }
 0x313   : > { %1739 = vst.msk [vmem:[%s4452_s28 + $0xd4] sm:$0x1] %vm798_vm15, %v1723_v26  ;;  %v1171_v60 = vpop.permute.xlu0 %1170  ;;  %2380 = vrot.lane.b32.xlu1 %v2331_v48, %s4059_s5  ;;  %v2578_v48 = vrot.slane %v5362_v36, %v4436_v52  ;;  %v589_v26 = vpop.f32.mrf.mxu1 }
 0x314   : > { %1187 = vst.msk [vmem:[%s4452_s28 + $0xe8] sm:$0x1] %vm798_vm15, %v1171_v60 }
 0x315   : > { %v1835_v49 = vpop.permute.xlu1 %1834  ;;  %2382 = vrot.lane.b32.xlu0 %v2335_v45, %s4059_s5  ;;  %v2450_v45 = vcombine.high %v2446_v56, %v2446_v56  ;;  %v2586_v28 = vcombine.high %v2578_v48, %v2578_v48  ;;  %v2594_v6 = vrot.slane %v2578_v48, %v4436_v52  ;;  %s3712_s5 = sshll.u32 %s4452_s28, 4  ;;  %s6141_s5 = int_to_ptr.vmem [resolvable:$true] %s3712_s5 }
 0x316   : > { %1852 = vst.msk [vmem:[%s4452_s28 + $0xd6] sm:$0x1] %vm798_vm15, %v1835_v49 }
 0x317   : > { %v1203_v55 = vpop.permute.xlu0 %1202  ;;  %2515 = vrot.lane.b32.xlu1 %v2454_v20, %s4067_s6  ;;  %v2510_v15 = vrot.slane %v2450_v45, %v4447_v41  ;;  %v2514_v32 = vrot.slane %v2450_v45, %v4550_v33  ;;  %v2608_v42 = vrot.slane %v2586_v28, %v4436_v52  ;;  %v5473_v49 = vrot.slane %v2594_v6, %v4447_v41 }
 0x318   : > { %1219 = vst.msk [vmem:[%s4452_s28 + $0xea] sm:$0x1] %vm798_vm15, %v1203_v55  ;;  %v2616_v20 = vcombine.high %v2594_v6, %v2594_v6  ;;  %v5478_v55 = vsel %vm4419_vm12, %v583_v54, %v589_v26 }
 0x319   : > { %v1867_v17 = vpop.permute.xlu1 %1866  ;;  %2517 = vrot.lane.b32.xlu0 %v2458_v8, %s4067_s6  ;;  %v5485_v31 = vrot.slane %v2608_v42, %v4447_v41  ;;  %vm2210_vm12 = vcmp.gt.f32.partialorder %v5478_v55, 0.0 }
 0x31a   : > { %1884 = vst.msk [vmem:[%s4452_s28 + $0xd8] sm:$0x1] %vm798_vm15, %v1867_v17  ;;  %v2618_v17 = vcombine.high %v2608_v42, %v2608_v42  ;;  %v5492_v10 = vrot.slane %v2616_v20, %v4447_v41 }
 0x31b   : > { %v1235_v63 = vpop.permute.xlu0 %1234  ;;  %2519 = vrot.lane.b32.xlu1 %v2462_v5, %s4067_s6  ;;  %v2587_v5 = vcombine.high %v2585_v29, %v2585_v29 }
 0x31c   : > { %1251 = vst.msk [vmem:[%s4452_s28 + $0xec] sm:$0x1] %vm798_vm15, %v1235_v63  ;;  %v2601_v63 = vrot.slane %v2585_v29, %v4436_v52 }
 0x31d   : > { %v1899_v12 = vpop.permute.xlu1 %1898  ;;  %2521 = vrot.lane.b32.xlu0 %v2466_v44, %s4067_s6  ;;  %v2215_v44 = vmin.f32 %v5478_v55, 0.0  ;;  %v2615_v47 = vrot.slane %v2587_v5, %v4436_v52 }
 0x31e   : > { %1916 = vst.msk [vmem:[%s4452_s28 + $0xda] sm:$0x1] %vm798_vm15, %v1899_v12 }
 0x31f   : > { %v1382_v46 = vpop.permute.xlu0 %1381  ;;  %2523 = vrot.lane.b32.xlu1 %v2470_v27, %s4067_s6  ;;  %v2635_v27 = vrot.slane %v2618_v17, %v4447_v41  ;;  %v2643_v35 = vrot.slane %v2615_v47, %v4447_v41 }
 0x321   : > { %v1031_v59 = vpop.permute.xlu1 %1030  ;;  %2525 = vrot.lane.b32.xlu0 %v2474_v21, %s4067_s6  ;;  %v2617_v21 = vcombine.high %v2601_v63, %v2601_v63 }
 0x322   : > { %v1054_v9 = vsel %vm1050_vm5, %v1031_v59, %v1033_v62  ;;  %v2222_v59 = vmul.f32 1.442695, %v2215_v44 }
 0x323   : > { %1070 = vst.msk [vmem:[%s4452_s28 + $0x66] sm:$0x1] %vm798_vm15, %v1054_v9  ;;  %v1398_v19 = vpop.permute.xlu0 %1397  ;;  %2527 = vrot.lane.b32.xlu1 %v2478_v53, %s4067_s6  ;;  %v2619_v9 = vcombine.high %v2615_v47, %v2615_v47 }
 0x324   : > { %3970 = vpow2.f32 %v2222_v59 }
 0x325   : > { %v1047_v1 = vpop.permute.xlu1 %1046  ;;  %2529 = vrot.lane.b32.xlu0 %v2482_v11, %s4067_s6  ;;  %v2647_v11 = vrot.slane %v2617_v21, %v4447_v41  ;;  %v2651_v56 = vrot.slane %v2619_v9, %v4447_v41 }
 0x326   : > { %v1058_v22 = vsel %vm1050_vm5, %v1047_v1, %v1049_v3 }
 0x327   : > { %1074 = vst.msk [vmem:[%s4452_s28 + $0xe6] sm:$0x1] %vm798_vm15, %v1058_v22  ;;  %v1699_v7 = vpop.permute.xlu0 %1698  ;;  %2531 = vrot.lane.b32.xlu1 %v2486_v50, %s4067_s6 }
 0x329   : > { %v1380_v14 = vpop.permute.xlu1 %1379  ;;  %2533 = vrot.lane.b32.xlu0 %v2490_v25, %s4067_s6 }
 0x32a   : > { %v1403_v43 = vsel %vm1399_vm7, %v1380_v14, %v1382_v46  ;;  %v5504_v46 = vrot.slane %v2601_v63, %v4447_v41 }
 0x32b   : > { %1419 = vst.msk [vmem:[%s4452_s28 + $0x6e] sm:$0x1] %vm798_vm15, %v1403_v43  ;;  %v1715_v34 = vpop.permute.xlu0 %1714  ;;  %2535 = vrot.lane.b32.xlu1 %v2494_v37, %s4067_s6 }
 0x32d   : > { %v1396_v16 = vpop.permute.xlu1 %1395  ;;  %2537 = vrot.lane.b32.xlu0 %v2498_v51, %s4067_s6 }
 0x32e   : > { %v1407_v40 = vsel %vm1399_vm7, %v1396_v16, %v1398_v19 }
 0x32f   : > { %1423 = vst.msk [vmem:[%s4452_s28 + $0xee] sm:$0x1] %vm798_vm15, %v1407_v40  ;;  %v1837_v13 = vpop.permute.xlu0 %1836  ;;  %2539 = vrot.lane.b32.xlu1 %v2502_v61, %s4067_s6 }
 0x330   : > { %1853 = vst.msk [vmem:[%s4452_s28 + $0xf6] sm:$0x1] %vm798_vm15, %v1837_v13 }
 0x331   : > { %v1697_v62 = vpop.permute.xlu1 %1696  ;;  %2541 = vrot.lane.b32.xlu0 %v2506_v57, %s4067_s6  ;;  %v3971_v43 = vpop.eup %3970 }
 0x332   : > { %v1720_v23 = vsel %vm1716_vm9, %v1697_v62, %v1699_v7  ;;  %v3825_v48 = vadd.f32 -1.0, %v3971_v43 }
 0x333   : > { %1736 = vst.msk [vmem:[%s4452_s28 + $0x74] sm:$0x1] %vm798_vm15, %v1720_v23  ;;  %v1869_v3 = vpop.permute.xlu0 %1868  ;;  %2543 = vrot.lane.b32.xlu1 %v2510_v15, %s4067_s6 }
 0x334   : > { %1885 = vst.msk [vmem:[%s4452_s28 + $0xf8] sm:$0x1] %vm798_vm15, %v1869_v3  ;;  %v5546_v45 = vsel %vm2210_vm12, %v5478_v55, %v3825_v48 }
 0x335   : > { %v1713_v60 = vpop.permute.xlu1 %1712  ;;  %2545 = vrot.lane.b32.xlu0 %v2514_v32, %s4067_s6  ;;  %v2749_v13 = vcombine.low %v5362_v36, %v5546_v45  ;;  %s4077_s6 = smov [#allocation2]  }
 0x336   : > { %v1724_v30 = vsel %vm1716_vm9, %v1713_v60, %v1715_v34 }
 0x337   : > { %1740 = vst.msk [vmem:[%s4452_s28 + $0xf4] sm:$0x1] %vm798_vm15, %v1724_v30  ;;  %v1901_v8 = vpop.permute.xlu0 %1900  ;;  %2652 = vrot.lane.b32.xlu1 %v5473_v49, %s4066_s4  ;;  %v2757_v6 = vrot.slane %v2749_v13, %v4436_v52 }
 0x338   : > { %1917 = vst.msk [vmem:[%s4452_s28 + $0xfa] sm:$0x1] %vm798_vm15, %v1901_v8 }
 0x339   : > { %v2172_v58 = vpop.permute.xlu1 %2171  ;;  %2654 = vrot.lane.b32.xlu0 %v5485_v31, %s4066_s4  ;;  %v2773_v42 = vrot.slane %v2757_v6, %v4436_v52  ;;  %v2765_v29 = vcombine.high %v2757_v6, %v2757_v6 }
 0x33a   : > { %2195 = vst.msk [vmem:[%s4452_s28 + $0x1e] sm:$0x1] %vm798_vm15, %v2172_v58 }
 0x33b   : > { %v2036_v12 = vpop.permute.xlu0 %2035  ;;  %2656 = vrot.lane.b32.xlu1 %v5492_v10, %s4066_s4  ;;  %v2802_v20 = vrot.slane %v2773_v42, %v4447_v41  ;;  %v2787_v30 = vrot.slane %v2765_v29, %v4436_v52  ;;  %v2806_v8 = vrot.slane %v2773_v42, %v4550_v33  ;;  %v2795_v58 = vcombine.high %v2773_v42, %v2773_v42 }
 0x33d   : > { %v2034_v0 = vpop.permute.xlu1 %2033  ;;  %2658 = vrot.lane.b32.xlu0 %v2635_v27, %s4066_s4  ;;  %v2810_v5 = vrot.slane %v2787_v30, %v4447_v41  ;;  %v2814_v63 = vrot.slane %v2787_v30, %v4550_v33  ;;  %v2818_v44 = vrot.slane %v2795_v58, %v4447_v41 }
 0x33e   : > { %v2066_v53 = vsel %vm2065_vm11, %v2034_v0, %v2036_v12  ;;  %v2797_v12 = vcombine.high %v2787_v30, %v2787_v30  ;;  %v2822_v0 = vrot.slane %v2795_v58, %v4550_v33 }
 0x33f   : > { %2082 = vst.msk [vmem:[%s4452_s28 + $0x1c] sm:$0x1] %vm798_vm15, %v2066_v53  ;;  %v2052_v2 = vpop.permute.xlu0 %2051  ;;  %2660 = vrot.lane.b32.xlu1 %v5504_v46, %s4066_s4 }
 0x340   : > { %v2826_v21 = vrot.slane %v2797_v12, %v4447_v41 }
 0x341   : > { %v2050_v19 = vpop.permute.xlu1 %2049  ;;  %2662 = vrot.lane.b32.xlu0 %v2643_v35, %s4066_s4 }
 0x342   : > { %v2070_v1 = vsel %vm2065_vm11, %v2050_v19, %v2052_v2 }
 0x343   : > { %2086 = vst.msk [vmem:[%s4452_s28 + $0x9c] sm:$0x1] %vm798_vm15, %v2070_v1  ;;  %v2174_v50 = vpop.permute.xlu0 %2173  ;;  %2664 = vrot.lane.b32.xlu1 %v2647_v11, %s4066_s4  ;;  %v591_v1 = vpop.f32.mrf.mxu1 }
 0x344   : > { %2196 = vst.msk [vmem:[%s4452_s28 + $0x3e] sm:$0x1] %vm798_vm15, %v2174_v50  ;;  %v5624_v50 = vsel %vm4505_vm2, %v5455_v39, %v591_v1 }
 0x345   : > { %v2176_v22 = vpop.permute.xlu1 %2175  ;;  %2666 = vrot.lane.b32.xlu0 %v2651_v56, %s4066_s4  ;;  %vm2211_vm13 = vcmp.gt.f32.partialorder %v5624_v50, 0.0  ;;  %s3976_s4 = scalar_lea.vmem %s6141_s5, 4096 }
 0x346   : > { %2197 = vst.msk [vmem:[%s4452_s28 + $0x5e] sm:$0x1] %vm798_vm15, %v2176_v22  ;;  %p3977_p12 = scmp.ne.s32.totalorder %s6141_s5, %s3976_s4 }
 0x347   : > { %v2040_v7 = vpop.permute.xlu0 %2039  ;;  %2684 = vrot.lane.b32.xlu1 %v5473_v49, %s4068_s7 }
 0x348   : > { %p3978_p13 = pnand %p3977_p12, %p4134_p4 }
 0x349   : > { %v2180_v25 = vpop.permute.xlu1 %2179  ;;  %2686 = vrot.lane.b32.xlu0 %v5485_v31, %s4068_s7 }
 0x34a   : > { %2199 = vst.msk [vmem:[%s4452_s28 + $0x9e] sm:$0x1] %vm798_vm15, %v2180_v25  ;;  %p3979_p0 = pneg %p3978_p13 }
 0x34b   : > { %v2044_v14 = vpop.permute.xlu0 %2043  ;;  %2688 = vrot.lane.b32.xlu1 %v5492_v10, %s4068_s7 }
 0x34d   : > { %v2038_v37 = vpop.permute.xlu1 %2037  ;;  %2690 = vrot.lane.b32.xlu0 %v2635_v27, %s4068_s7 }
 0x34e   : > { %v2067_v18 = vsel %vm2065_vm11, %v2038_v37, %v2040_v7  ;;  %v2216_v37 = vmin.f32 %v5624_v50, 0.0 }
 0x34f   : > { %2083 = vst.msk [vmem:[%s4452_s28 + $0x3c] sm:$0x1] %vm798_vm15, %v2067_v18  ;;  %v2056_v34 = vpop.permute.xlu0 %2055  ;;  %2692 = vrot.lane.b32.xlu1 %v5504_v46, %s4068_s7  ;;  %v2926_v18 = vrot.slane %v5546_v45, %v4436_v52 }
 0x350   : > { %v2224_v48 = vmul.f32 1.442695, %v2216_v37 }
 0x351   : > { %v2042_v51 = vpop.permute.xlu1 %2041  ;;  %2694 = vrot.lane.b32.xlu0 %v2643_v35, %s4068_s7 }
 0x352   : > { %v2068_v54 = vsel %vm2065_vm11, %v2042_v51, %v2044_v14  ;;  %3972 = vpow2.f32 %v2224_v48 }
 0x353   : > { %2084 = vst.msk [vmem:[%s4452_s28 + $0x5c] sm:$0x1] %vm798_vm15, %v2068_v54  ;;  %v2060_v16 = vpop.permute.xlu0 %2059  ;;  %2696 = vrot.lane.b32.xlu1 %v2647_v11, %s4068_s7  ;;  %v2919_v54 = vcombine.high %v5546_v45, %v5546_v45 }
 0x355   : > { %v2054_v61 = vpop.permute.xlu1 %2053  ;;  %2698 = vrot.lane.b32.xlu0 %v2651_v56, %s4068_s7  ;;  %v2933_v6 = vrot.slane %v2919_v54, %v4436_v52  ;;  %s3980_s7 = sshll.u32 %s4077_s6, 4  ;;  %s3981_s7 = int_to_ptr.vmem [resolvable:$false] %s3980_s7 }
 0x356   : > { %v2071_v40 = vsel %vm2065_vm11, %v2054_v61, %v2056_v34  ;;  %p3983_p1 = scmp.lt.s32.totalorder %s6141_s5, %s3981_s7 }
 0x357   : > { %2087 = vst.msk [vmem:[%s4452_s28 + $0xbc] sm:$0x1] %vm798_vm15, %v2071_v40  ;;  %v2178_v38 = vpop.permute.xlu0 %2177  ;;  %2716 = vrot.lane.b32.xlu1 %v5473_v49, %s4069_s8  ;;  %v2934_v40 = vcombine.high %v2926_v18, %v2926_v18  ;;  %v2949_v30 = vrot.slane %v2933_v6, %v4436_v52 }
 0x358   : > { %2198 = vst.msk [vmem:[%s4452_s28 + $0x7e] sm:$0x1] %vm798_vm15, %v2178_v38 }
 0x359   : > { %v2058_v57 = vpop.permute.xlu1 %2057  ;;  %2718 = vrot.lane.b32.xlu0 %v5485_v31, %s4069_s8  ;;  %v2750_v31 = vcombine.high %v5362_v36, %v5546_v45  ;;  %v2987_v58 = vrot.slane %v2949_v30, %v4447_v41 }
 0x35a   : > { %v2072_v28 = vsel %vm2065_vm11, %v2058_v57, %v2060_v16  ;;  %v2942_v57 = vrot.slane %v2926_v18, %v4436_v52 }
 0x35b   : > { %2088 = vst.msk [vmem:[%s4452_s28 + $0xdc] sm:$0x1] %vm798_vm15, %v2072_v28  ;;  %v2048_v62 = vpop.permute.xlu0 %2047  ;;  %2720 = vrot.lane.b32.xlu1 %v5492_v10, %s4069_s8 }
 0x35d   : > { %2722 = vrot.lane.b32.xlu0 %v2635_v27, %s4069_s8  ;;  %v2046_v15 = vpop.permute.xlu1 %2045  ;;  %v2764_v27 = vrot.slane %v2750_v31, %v4436_v52 }
 0x35e   : > { %v2069_v23 = vsel %vm2065_vm11, %v2046_v15, %v2048_v62  ;;  %v2956_v15 = vrot.slane %v2934_v40, %v4436_v52 }
 0x35f   : > { %2085 = vst.msk [vmem:[%s4452_s28 + $0x7c] sm:$0x1] %vm798_vm15, %v2069_v23  ;;  %v2064_v3 = vpop.permute.xlu0 %2063  ;;  %2724 = vrot.lane.b32.xlu1 %v5504_v46, %s4069_s8  ;;  %v2780_v59 = vrot.slane %v2764_v27, %v4436_v52  ;;  %v2766_v53 = vcombine.high %v2764_v27, %v2764_v27 }
 0x360   : > { %v2975_v29 = vrot.slane %v2956_v15, %v4447_v41 }
 0x361   : > { %2726 = vrot.lane.b32.xlu0 %v2643_v35, %s4069_s8  ;;  %v2062_v32 = vpop.permute.xlu1 %2061  ;;  %v2830_v35 = vrot.slane %v2797_v12, %v4550_v33  ;;  %v2834_v19 = vrot.slane %v2780_v59, %v4447_v41  ;;  %v2838_v22 = vrot.slane %v2780_v59, %v4550_v33  ;;  %v2796_v14 = vcombine.high %v2780_v59, %v2780_v59 }
 0x362   : > { %v2073_v26 = vsel %vm2065_vm11, %v2062_v32, %v2064_v3  ;;  %v2971_v3 = vrot.slane %v2942_v57, %v4447_v41  ;;  %v2964_v32 = vcombine.high %v2942_v57, %v2942_v57 }
 0x363   : > { %2089 = vst.msk [vmem:[%s4452_s28 + $0xfc] sm:$0x1] %vm798_vm15, %v2073_v26  ;;  %v2182_v60 = vpop.permute.xlu0 %2181  ;;  %2728 = vrot.lane.b32.xlu1 %v2647_v11, %s4069_s8  ;;  %v2794_v11 = vrot.slane %v2766_v53, %v4436_v52  ;;  %v2850_v34 = vrot.slane %v2796_v14, %v4447_v41  ;;  %v2854_v61 = vrot.slane %v2796_v14, %v4550_v33 }
 0x364   : > { %2200 = vst.msk [vmem:[%s4452_s28 + $0xbe] sm:$0x1] %vm798_vm15, %v2182_v60  ;;  %v2966_v26 = vcombine.high %v2956_v15, %v2956_v15  ;;  %v2935_v60 = vcombine.high %v2933_v6, %v2933_v6 }
 0x365   : > { %2730 = vrot.lane.b32.xlu0 %v2651_v56, %s4069_s8  ;;  %v2184_v49 = vpop.permute.xlu1 %2183  ;;  %v2842_v25 = vrot.slane %v2794_v11, %v4447_v41  ;;  %v2846_v39 = vrot.slane %v2794_v11, %v4550_v33  ;;  %v2798_v51 = vcombine.high %v2794_v11, %v2794_v11  ;;  %s3982_s8 = scalar_lea.vmem %s3981_s7, 8192 }
 0x366   : > { %2201 = vst.msk [vmem:[%s4452_s28 + $0xde] sm:$0x1] %vm798_vm15, %v2184_v49  ;;  %v2963_v31 = vrot.slane %v2935_v60, %v4436_v52  ;;  %p3984_p2 = scmp.lt.s32.totalorder %s3982_s8, %s3976_s4 }
 0x367   : > { %v2186_v55 = vpop.permute.xlu0 %2185  ;;  %2863 = vrot.lane.b32.xlu1 %v2802_v20, %s4070_s15  ;;  %v2858_v13 = vrot.slane %v2798_v51, %v4447_v41  ;;  %v2862_v62 = vrot.slane %v2798_v51, %v4550_v33  ;;  %v2979_v20 = vrot.slane %v2964_v32, %v4447_v41 }
 0x368   : > { %2202 = vst.msk [vmem:[%s4452_s28 + $0xfe] sm:$0x1] %vm798_vm15, %v2186_v55  ;;  %v2967_v12 = vcombine.high %v2963_v31, %v2963_v31  ;;  %p3985_p3 = por %p3984_p2, %p3983_p1 }
 0x369   : > { %2865 = vrot.lane.b32.xlu0 %v2806_v8, %s4070_s15  ;;  %v2337_v17 = vpop.permute.xlu1 %2336  ;;  %v2983_v8 = vrot.slane %v2966_v26, %v4447_v41 }
 0x36a   : > { %2360 = vst.msk [vmem:[%s4452_s28 + $0x3] sm:$0x1] %vm798_vm15, %v2337_v17  ;;  %v2999_v59 = vrot.slane %v2967_v12, %v4447_v41  ;;  %p3986_p5 = pnand %p3985_p3, %p3979_p0 }
 0x36b   : > { %v2339_v10 = vpop.permute.xlu0 %2338  ;;  %2867 = vrot.lane.b32.xlu1 %v2810_v5, %s4070_s15 }
 0x36c   : > { %2361 = vst.msk [vmem:[%s4452_s28 + $0x23] sm:$0x1] %vm798_vm15, %v2339_v10  ;;  %v2965_v10 = vcombine.high %v2949_v30, %v2949_v30  ;;  %v3858_v30 = vpop.f32.mrf.mxu1 }
 0x36d   : > { %2869 = vrot.lane.b32.xlu0 %v2814_v63, %s4070_s15  ;;  %v2341_v36 = vpop.permute.xlu1 %2340  ;;  %v3973_v63 = vpop.eup %3972 }
 0x36e   : > { %2362 = vst.msk [vmem:[%s4452_s28 + $0x43] sm:$0x1] %vm798_vm15, %v2341_v36 }
 0x36f   : > { %v2343_v47 = vpop.permute.xlu0 %2342  ;;  %2871 = vrot.lane.b32.xlu1 %v2818_v44, %s4070_s15  ;;  %v2991_v44 = vrot.slane %v2963_v31, %v4447_v41 }
 0x370   : > { %2363 = vst.msk [vmem:[%s4452_s28 + $0x63] sm:$0x1] %vm798_vm15, %v2343_v47 }
 0x371   : > { %2873 = vrot.lane.b32.xlu0 %v2822_v0, %s4070_s15  ;;  %v2345_v46 = vpop.permute.xlu1 %2344  ;;  %v2995_v0 = vrot.slane %v2965_v10, %v4447_v41 }
 0x372   : > { %2364 = vst.msk [vmem:[%s4452_s28 + $0x83] sm:$0x1] %vm798_vm15, %v2345_v46  ;;  %v3826_v46 = vadd.f32 -1.0, %v3973_v63 }
 0x373   : > { %v2347_v2 = vpop.permute.xlu0 %2346  ;;  %2875 = vrot.lane.b32.xlu1 %v2826_v21, %s4070_s15 }
 0x374   : > { %2365 = vst.msk [vmem:[%s4452_s28 + $0xa3] sm:$0x1] %vm798_vm15, %v2347_v2 }
 0x375   : > { %2877 = vrot.lane.b32.xlu0 %v2830_v35, %s4070_s15  ;;  %v2349_v9 = vpop.permute.xlu1 %2348  ;;  %v5696_v35 = vsel %vm2211_vm13, %v5624_v50, %v3826_v46 }
 0x376   : > { %2366 = vst.msk [vmem:[%s4452_s28 + $0xc3] sm:$0x1] %vm798_vm15, %v2349_v9  ;;  %v3065_v11 = vcombine.low %v5546_v45, %v5696_v35  ;;  %v3066_v40 = vcombine.high %v5546_v45, %v5696_v35 }
 0x377   : > { %v2351_v56 = vpop.permute.xlu0 %2350  ;;  %2879 = vrot.lane.b32.xlu1 %v2834_v19, %s4070_s15 }
 0x378   : > { %2367 = vst.msk [vmem:[%s4452_s28 + $0xe3] sm:$0x1] %vm798_vm15, %v2351_v56 }
 0x379   : > { %2881 = vrot.lane.b32.xlu0 %v2838_v22, %s4070_s15  ;;  %v2369_v7 = vpop.permute.xlu1 %2368 }
 0x37a   : > { %2392 = vst.msk [vmem:[%s4452_s28 + $0x5] sm:$0x1] %vm798_vm15, %v2369_v7  ;;  %v3073_v7 = vrot.slane %v3065_v11, %v4436_v52 }
 0x37b   : > { %v2371_v4 = vpop.permute.xlu0 %2370  ;;  %2883 = vrot.lane.b32.xlu1 %v2842_v25, %s4070_s15 }
 0x37c   : > { %2393 = vst.msk [vmem:[%s4452_s28 + $0x25] sm:$0x1] %vm798_vm15, %v2371_v4  ;;  %v3089_v4 = vrot.slane %v3073_v7, %v4436_v52 }
 0x37d   : > { %2885 = vrot.lane.b32.xlu0 %v2846_v39, %s4070_s15  ;;  %v2373_v43 = vpop.permute.xlu1 %2372  ;;  %v3081_v39 = vcombine.high %v3073_v7, %v3073_v7 }
 0x37e   : > { %2394 = vst.msk [vmem:[%s4452_s28 + $0x45] sm:$0x1] %vm798_vm15, %v2373_v43  ;;  %v3118_v51 = vrot.slane %v3089_v4, %v4447_v41  ;;  %v3111_v57 = vcombine.high %v3089_v4, %v3089_v4 }
 0x37f   : > { %v2375_v16 = vpop.permute.xlu0 %2374  ;;  %2887 = vrot.lane.b32.xlu1 %v2850_v34, %s4070_s15  ;;  %v3103_v48 = vrot.slane %v3081_v39, %v4436_v52 }
 0x380   : > { %2395 = vst.msk [vmem:[%s4452_s28 + $0x65] sm:$0x1] %vm798_vm15, %v2375_v16  ;;  %v3122_v16 = vrot.slane %v3089_v4, %v4550_v33  ;;  %v3134_v15 = vrot.slane %v3111_v57, %v4447_v41  ;;  %v3138_v32 = vrot.slane %v3111_v57, %v4550_v33 }
 0x381   : > { %2889 = vrot.lane.b32.xlu0 %v2854_v61, %s4070_s15  ;;  %v2377_v38 = vpop.permute.xlu1 %2376  ;;  %v3113_v6 = vcombine.high %v3103_v48, %v3103_v48 }
 0x382   : > { %2396 = vst.msk [vmem:[%s4452_s28 + $0x85] sm:$0x1] %vm798_vm15, %v2377_v38 }
 0x383   : > { %v2379_v28 = vpop.permute.xlu0 %2378  ;;  %2891 = vrot.lane.b32.xlu1 %v2858_v13, %s4070_s15  ;;  %v3126_v13 = vrot.slane %v3103_v48, %v4447_v41 }
 0x384   : > { %2397 = vst.msk [vmem:[%s4452_s28 + $0xa5] sm:$0x1] %vm798_vm15, %v2379_v28 }
 0x385   : > { %2893 = vrot.lane.b32.xlu0 %v2862_v62, %s4070_s15  ;;  %v2381_v23 = vpop.permute.xlu1 %2380  ;;  %v3130_v62 = vrot.slane %v3103_v48, %v4550_v33 }
 0x386   : > { %2398 = vst.msk [vmem:[%s4452_s28 + $0xc5] sm:$0x1] %vm798_vm15, %v2381_v23  ;;  %v3080_v23 = vrot.slane %v3066_v40, %v4436_v52 }
 0x387   : > { %v2383_v42 = vpop.permute.xlu0 %2382  ;;  %3000 = vrot.lane.b32.xlu1 %v2971_v3, %s4064_s29 }
 0x388   : > { %2399 = vst.msk [vmem:[%s4452_s28 + $0xe5] sm:$0x1] %vm798_vm15, %v2383_v42  ;;  %v3096_v26 = vrot.slane %v3080_v23, %v4436_v52  ;;  %v3082_v60 = vcombine.high %v3080_v23, %v3080_v23 }
 0x389   : > { %3002 = vrot.lane.b32.xlu0 %v2975_v29, %s4064_s29  ;;  %v2516_v49 = vpop.permute.xlu1 %2515 }
 0x38a   : > { %v3110_v31 = vrot.slane %v3082_v60, %v4436_v52 }
 0x38b   : > { %v2518_v55 = vpop.permute.xlu0 %2517  ;;  %3004 = vrot.lane.b32.xlu1 %v2979_v20, %s4064_s29 }
 0x38c   : > { %v2547_v17 = vsel %vm1050_vm5, %v2516_v49, %v2518_v55  ;;  %v3158_v63 = vrot.slane %v3110_v31, %v4447_v41  ;;  %v3114_v24 = vcombine.high %v3110_v31, %v3110_v31 }
 0x38d   : > { %2563 = vst.msk [vmem:[%s4452_s28 + $0x7] sm:$0x1] %vm798_vm15, %v2547_v17  ;;  %3006 = vrot.lane.b32.xlu0 %v2983_v8, %s4064_s29  ;;  %v2520_v5 = vpop.permute.xlu1 %2519 }
 0x38e   : > { %v3174_v11 = vrot.slane %v3114_v24, %v4447_v41 }
 0x38f   : > { %v2522_v36 = vpop.permute.xlu0 %2521  ;;  %3008 = vrot.lane.b32.xlu1 %v2987_v58, %s4064_s29 }
 0x390   : > { %v2548_v27 = vsel %vm1050_vm5, %v2520_v5, %v2522_v36  ;;  %v3154_v5 = vrot.slane %v3096_v26, %v4550_v33  ;;  %v3112_v36 = vcombine.high %v3096_v26, %v3096_v26 }
 0x391   : > { %2564 = vst.msk [vmem:[%s4452_s28 + $0x27] sm:$0x1] %vm798_vm15, %v2548_v27  ;;  %3010 = vrot.lane.b32.xlu0 %v2991_v44, %s4064_s29  ;;  %v2524_v47 = vpop.permute.xlu1 %2523  ;;  %v3162_v27 = vrot.slane %v3110_v31, %v4550_v33 }
 0x392   : > { %v3166_v46 = vrot.slane %v3112_v36, %v4447_v41 }
 0x393   : > { %v2526_v21 = vpop.permute.xlu0 %2525  ;;  %3012 = vrot.lane.b32.xlu1 %v2995_v0, %s4064_s29 }
 0x394   : > { %v2549_v53 = vsel %vm1050_vm5, %v2524_v47, %v2526_v21  ;;  %v3242_v47 = vrot.slane %v5696_v35, %v4436_v52 }
 0x395   : > { %2565 = vst.msk [vmem:[%s4452_s28 + $0x47] sm:$0x1] %vm798_vm15, %v2549_v53  ;;  %3014 = vrot.lane.b32.xlu0 %v2999_v59, %s4064_s29  ;;  %v2528_v2 = vpop.permute.xlu1 %2527 }
 0x397   : > { %v2530_v9 = vpop.permute.xlu0 %2529  ;;  %3032 = vrot.lane.b32.xlu1 %v2971_v3, %s4065_s3 }
 0x398   : > { %v2550_v19 = vsel %vm1050_vm5, %v2528_v2, %v2530_v9  ;;  %v3170_v2 = vrot.slane %v3112_v36, %v4550_v33  ;;  %v3250_v9 = vcombine.high %v3242_v47, %v3242_v47 }
 0x399   : > { %2566 = vst.msk [vmem:[%s4452_s28 + $0x67] sm:$0x1] %vm798_vm15, %v2550_v19  ;;  %3034 = vrot.lane.b32.xlu0 %v2975_v29, %s4065_s3  ;;  %v2532_v1 = vpop.permute.xlu1 %2531  ;;  %v3142_v29 = vrot.slane %v3113_v6, %v4447_v41 }
 0x39a   : > { %v3272_v7 = vrot.slane %v3250_v9, %v4436_v52 }
 0x39b   : > { %v2534_v56 = vpop.permute.xlu0 %2533  ;;  %3036 = vrot.lane.b32.xlu1 %v2979_v20, %s4065_s3  ;;  %v3146_v20 = vrot.slane %v3113_v6, %v4550_v33 }
 0x39c   : > { %v2551_v50 = vsel %vm1050_vm5, %v2532_v1, %v2534_v56  ;;  %v3258_v1 = vrot.slane %v3242_v47, %v4436_v52 }
 0x39d   : > { %2567 = vst.msk [vmem:[%s4452_s28 + $0x87] sm:$0x1] %vm798_vm15, %v2551_v50  ;;  %3038 = vrot.lane.b32.xlu0 %v2983_v8, %s4065_s3  ;;  %v2536_v22 = vpop.permute.xlu1 %2535  ;;  %v3150_v8 = vrot.slane %v3096_v26, %v4447_v41 }
 0x39e   : > { %v3280_v4 = vcombine.high %v3258_v1, %v3258_v1 }
 0x39f   : > { %v2538_v25 = vpop.permute.xlu0 %2537  ;;  %3040 = vrot.lane.b32.xlu1 %v2987_v58, %s4065_s3  ;;  %v670_v58 = vpop.f32.mrf.mxu1 }
 0x3a0   : > { %v2552_v14 = vsel %vm1050_vm5, %v2536_v22, %v2538_v25  ;;  %v3178_v22 = vrot.slane %v3114_v24, %v4550_v33  ;;  %v5818_v48 = vrot.slane %v3280_v4, %v4447_v41 }
 0x3a1   : > { %2568 = vst.msk [vmem:[%s4452_s28 + $0xa7] sm:$0x1] %vm798_vm15, %v2552_v14  ;;  %3042 = vrot.lane.b32.xlu0 %v2991_v44, %s4065_s3  ;;  %v2540_v37 = vpop.permute.xlu1 %2539  ;;  %v5772_v44 = vsel %vm5057_vm6, %v670_v58, %v3858_v30 }
 0x3a2   : > { %v2217_v21 = vmin.f32 %v5772_v44, 0.0  ;;  %vm2212_vm14 = vcmp.gt.f32.partialorder %v5772_v44, 0.0 }
 0x3a3   : > { %v2542_v18 = vpop.permute.xlu0 %2541  ;;  %3044 = vrot.lane.b32.xlu1 %v2995_v0, %s4065_s3 }
 0x3a4   : > { %v2553_v43 = vsel %vm1050_vm5, %v2540_v37, %v2542_v18  ;;  %v2226_v56 = vmul.f32 1.442695, %v2217_v21  ;;  %v5804_v37 = vrot.slane %v3258_v1, %v4447_v41  ;;  %v5811_v18 = vrot.slane %v3272_v7, %v4447_v41 }
 0x3a5   : > { %2569 = vst.msk [vmem:[%s4452_s28 + $0xc7] sm:$0x1] %vm798_vm15, %v2553_v43  ;;  %3046 = vrot.lane.b32.xlu0 %v2999_v59, %s4065_s3  ;;  %v2544_v34 = vpop.permute.xlu1 %2543  ;;  %v3235_v59 = vcombine.high %v5696_v35, %v5696_v35  ;;  %v3282_v43 = vcombine.high %v3272_v7, %v3272_v7  ;;  %s6137_s3 = scalar_lea.hbm %s6195_s2, %s3833_s30 }
 0x3a6   : > { %3974 = vpow2.f32 %v2226_v56 }
 0x3a7   : > { %v2546_v54 = vpop.permute.xlu0 %2545  ;;  %3179 = vrot.lane.b32.xlu1 %v3118_v51, %s4074_s23  ;;  %v3249_v25 = vrot.slane %v3235_v59, %v4436_v52 }
 0x3a8   : > { %v2554_v61 = vsel %vm1050_vm5, %v2544_v34, %v2546_v54 }
 0x3a9   : > { %2570 = vst.msk [vmem:[%s4452_s28 + $0xe7] sm:$0x1] %vm798_vm15, %v2554_v61  ;;  %3181 = vrot.lane.b32.xlu0 %v3122_v16, %s4074_s23  ;;  %v2653_v38 = vpop.permute.xlu1 %2652  ;;  %v3251_v34 = vcombine.high %v3249_v25, %v3249_v25  ;;  %v3265_v54 = vrot.slane %v3249_v25, %v4436_v52  ;;  %v5826_v61 = vrot.slane %v3282_v43, %v4447_v41 }
 0x3aa   : > { %2676 = vst.msk [vmem:[%s4452_s28 + $0x9] sm:$0x1] %vm798_vm15, %v2653_v38 }
 0x3ab   : > { %v2655_v28 = vpop.permute.xlu0 %2654  ;;  %3183 = vrot.lane.b32.xlu1 %v3126_v13, %s4074_s23  ;;  %v3279_v40 = vrot.slane %v3251_v34, %v4436_v52  ;;  %v5834_v13 = vrot.slane %v3265_v54, %v4447_v41  ;;  %v3281_v57 = vcombine.high %v3265_v54, %v3265_v54 }
 0x3ac   : > { %2677 = vst.msk [vmem:[%s4452_s28 + $0x29] sm:$0x1] %vm798_vm15, %v2655_v28 }
 0x3ad   : > { %3185 = vrot.lane.b32.xlu0 %v3130_v62, %s4074_s23  ;;  %v2657_v45 = vpop.permute.xlu1 %2656  ;;  %v5841_v62 = vrot.slane %v3279_v40, %v4447_v41  ;;  %v5848_v6 = vrot.slane %v3281_v57, %v4447_v41 }
 0x3ae   : > { %2678 = vst.msk [vmem:[%s4452_s28 + $0x49] sm:$0x1] %vm798_vm15, %v2657_v45  ;;  %v3283_v45 = vcombine.high %v3279_v40, %v3279_v40 }
 0x3af   : > { %v2659_v3 = vpop.permute.xlu0 %2658  ;;  %3187 = vrot.lane.b32.xlu1 %v3134_v15, %s4074_s23 }
 0x3b0   : > { %2679 = vst.msk [vmem:[%s4452_s28 + $0x69] sm:$0x1] %vm798_vm15, %v2659_v3 }
 0x3b1   : > { %3189 = vrot.lane.b32.xlu0 %v3138_v32, %s4074_s23  ;;  %v2661_v42 = vpop.permute.xlu1 %2660  ;;  %v5855_v32 = vrot.slane %v3283_v45, %v4447_v41 }
 0x3b2   : > { %2680 = vst.msk [vmem:[%s4452_s28 + $0x89] sm:$0x1] %vm798_vm15, %v2661_v42 }
 0x3b3   : > { %v2663_v49 = vpop.permute.xlu0 %2662  ;;  %3191 = vrot.lane.b32.xlu1 %v3142_v29, %s4074_s23  ;;  %v3975_v23 = vpop.eup %3974 }
 0x3b4   : > { %2681 = vst.msk [vmem:[%s4452_s28 + $0xa9] sm:$0x1] %vm798_vm15, %v2663_v49  ;;  %v3827_v29 = vadd.f32 -1.0, %v3975_v23 }
 0x3b5   : > { %3193 = vrot.lane.b32.xlu0 %v3146_v20, %s4074_s23  ;;  %v2665_v55 = vpop.permute.xlu1 %2664 }
 0x3b6   : > { %2682 = vst.msk [vmem:[%s4452_s28 + $0xc9] sm:$0x1] %vm798_vm15, %v2665_v55  ;;  %v5871_v49 = vsel %vm2212_vm14, %v5772_v44, %v3827_v29 }
 0x3b7   : > { %v2667_v17 = vpop.permute.xlu0 %2666  ;;  %3195 = vrot.lane.b32.xlu1 %v3150_v8, %s4074_s23  ;;  %v3413_v55 = vcombine.low %v5696_v35, %v5871_v49 }
 0x3b8   : > { %2683 = vst.msk [vmem:[%s4452_s28 + $0xe9] sm:$0x1] %vm798_vm15, %v2667_v17 }
 0x3b9   : > { %3197 = vrot.lane.b32.xlu0 %v3154_v5, %s4074_s23  ;;  %v2685_v10 = vpop.permute.xlu1 %2684  ;;  %v3421_v5 = vrot.slane %v3413_v55, %v4436_v52 }
 0x3ba   : > { %2708 = vst.msk [vmem:[%s4452_s28 + $0xb] sm:$0x1] %vm798_vm15, %v2685_v10 }
 0x3bb   : > { %v2687_v12 = vpop.permute.xlu0 %2686  ;;  %3199 = vrot.lane.b32.xlu1 %v3158_v63, %s4074_s23  ;;  %v3429_v36 = vcombine.high %v3421_v5, %v3421_v5 }
 0x3bc   : > { %2709 = vst.msk [vmem:[%s4452_s28 + $0x2b] sm:$0x1] %vm798_vm15, %v2687_v12  ;;  %v3437_v12 = vrot.slane %v3421_v5, %v4436_v52 }
 0x3bd   : > { %3201 = vrot.lane.b32.xlu0 %v3162_v27, %s4074_s23  ;;  %v2689_v0 = vpop.permute.xlu1 %2688  ;;  %v3451_v24 = vrot.slane %v3429_v36, %v4436_v52  ;;  %v3583_v36 = vcombine.high %v5871_v49, %v5871_v49 }
 0x3be   : > { %2710 = vst.msk [vmem:[%s4452_s28 + $0x4b] sm:$0x1] %vm798_vm15, %v2689_v0  ;;  %v3470_v59 = vrot.slane %v3437_v12, %v4550_v33 }
 0x3bf   : > { %v2691_v53 = vpop.permute.xlu0 %2690  ;;  %3203 = vrot.lane.b32.xlu1 %v3166_v46, %s4074_s23  ;;  %v3466_v46 = vrot.slane %v3437_v12, %v4447_v41  ;;  %v3478_v56 = vrot.slane %v3451_v24, %v4550_v33  ;;  %v3461_v25 = vcombine.high %v3451_v24, %v3451_v24 }
 0x3c0   : > { %2711 = vst.msk [vmem:[%s4452_s28 + $0x6b] sm:$0x1] %vm798_vm15, %v2691_v53 }
 0x3c1   : > { %3205 = vrot.lane.b32.xlu0 %v3170_v2, %s4074_s23  ;;  %v2693_v19 = vpop.permute.xlu1 %2692  ;;  %v3414_v2 = vcombine.high %v5696_v35, %v5871_v49  ;;  %v3490_v43 = vrot.slane %v3461_v25, %v4447_v41  ;;  %v3494_v54 = vrot.slane %v3461_v25, %v4550_v33 }
 0x3c2   : > { %2712 = vst.msk [vmem:[%s4452_s28 + $0x8b] sm:$0x1] %vm798_vm15, %v2693_v19  ;;  %v3474_v19 = vrot.slane %v3451_v24, %v4447_v41 }
 0x3c3   : > { %v2695_v50 = vpop.permute.xlu0 %2694  ;;  %3207 = vrot.lane.b32.xlu1 %v3174_v11, %s4074_s23  ;;  %v3459_v11 = vcombine.high %v3437_v12, %v3437_v12 }
 0x3c4   : > { %2713 = vst.msk [vmem:[%s4452_s28 + $0xab] sm:$0x1] %vm798_vm15, %v2695_v50 }
 0x3c5   : > { %3209 = vrot.lane.b32.xlu0 %v3178_v22, %s4074_s23  ;;  %v2697_v14 = vpop.permute.xlu1 %2696  ;;  %v3428_v22 = vrot.slane %v3414_v2, %v4436_v52  ;;  %v3482_v7 = vrot.slane %v3459_v11, %v4447_v41 }
 0x3c6   : > { %2714 = vst.msk [vmem:[%s4452_s28 + $0xcb] sm:$0x1] %vm798_vm15, %v2697_v14 }
 0x3c7   : > { %v2699_v39 = vpop.permute.xlu0 %2698  ;;  %3316 = vrot.lane.b32.xlu1 %v5804_v37, %s4071_s16  ;;  %v3444_v34 = vrot.slane %v3428_v22, %v4436_v52 }
 0x3c8   : > { %2715 = vst.msk [vmem:[%s4452_s28 + $0xeb] sm:$0x1] %vm798_vm15, %v2699_v39  ;;  %v3430_v39 = vcombine.high %v3428_v22, %v3428_v22 }
 0x3c9   : > { %3318 = vrot.lane.b32.xlu0 %v5811_v18, %s4071_s16  ;;  %v2717_v51 = vpop.permute.xlu1 %2716  ;;  %v3502_v45 = vrot.slane %v3444_v34, %v4550_v33 }
 0x3ca   : > { %2740 = vst.msk [vmem:[%s4452_s28 + $0xd] sm:$0x1] %vm798_vm15, %v2717_v51  ;;  %v3458_v57 = vrot.slane %v3430_v39, %v4436_v52 }
 0x3cb   : > { %v2719_v16 = vpop.permute.xlu0 %2718  ;;  %3320 = vrot.lane.b32.xlu1 %v5818_v48, %s4071_s16 }
 0x3cc   : > { %2741 = vst.msk [vmem:[%s4452_s28 + $0x2d] sm:$0x1] %vm798_vm15, %v2719_v16  ;;  %v3506_v23 = vrot.slane %v3458_v57, %v4447_v41  ;;  %v3510_v29 = vrot.slane %v3458_v57, %v4550_v33 }
 0x3cd   : > { %3322 = vrot.lane.b32.xlu0 %v5826_v61, %s4071_s16  ;;  %v2721_v38 = vpop.permute.xlu1 %2720 }
 0x3ce   : > { %2742 = vst.msk [vmem:[%s4452_s28 + $0x4d] sm:$0x1] %vm798_vm15, %v2721_v38  ;;  %v3498_v38 = vrot.slane %v3444_v34, %v4447_v41 }
 0x3cf   : > { %v2723_v28 = vpop.permute.xlu0 %2722  ;;  %3324 = vrot.lane.b32.xlu1 %v5834_v13, %s4071_s16 }
 0x3d0   : > { %2743 = vst.msk [vmem:[%s4452_s28 + $0x6d] sm:$0x1] %vm798_vm15, %v2723_v28 }
 0x3d1   : > { %3326 = vrot.lane.b32.xlu0 %v5841_v62, %s4071_s16  ;;  %v2725_v15 = vpop.permute.xlu1 %2724 }
 0x3d2   : > { %2744 = vst.msk [vmem:[%s4452_s28 + $0x8d] sm:$0x1] %vm798_vm15, %v2725_v15 }
 0x3d3   : > { %v2727_v3 = vpop.permute.xlu0 %2726  ;;  %3328 = vrot.lane.b32.xlu1 %v5848_v6, %s4071_s16 }
 0x3d4   : > { %2745 = vst.msk [vmem:[%s4452_s28 + $0xad] sm:$0x1] %vm798_vm15, %v2727_v3  ;;  %v3460_v3 = vcombine.high %v3444_v34, %v3444_v34 }
 0x3d5   : > { %3330 = vrot.lane.b32.xlu0 %v5855_v32, %s4071_s16  ;;  %v2729_v42 = vpop.permute.xlu1 %2728 }
 0x3d6   : > { %2746 = vst.msk [vmem:[%s4452_s28 + $0xcd] sm:$0x1] %vm798_vm15, %v2729_v42  ;;  %v3518_v55 = vrot.slane %v3460_v3, %v4550_v33 }
 0x3d7   : > { %v2731_v26 = vpop.permute.xlu0 %2730  ;;  %3348 = vrot.lane.b32.xlu1 %v5804_v37, %s4072_s18 }
 0x3d8   : > { %2747 = vst.msk [vmem:[%s4452_s28 + $0xed] sm:$0x1] %vm798_vm15, %v2731_v26 }
 0x3d9   : > { %3350 = vrot.lane.b32.xlu0 %v5811_v18, %s4072_s18  ;;  %v2864_v60 = vpop.permute.xlu1 %2863 }
 0x3db   : > { %v2866_v20 = vpop.permute.xlu0 %2865  ;;  %3352 = vrot.lane.b32.xlu1 %v5818_v48, %s4072_s18 }
 0x3dc   : > { %v2895_v30 = vsel %vm1399_vm7, %v2864_v60, %v2866_v20  ;;  %v3514_v60 = vrot.slane %v3460_v3, %v4447_v41  ;;  %v3462_v20 = vcombine.high %v3458_v57, %v3458_v57 }
 0x3dd   : > { %2911 = vst.msk [vmem:[%s4452_s28 + $0xf] sm:$0x1] %vm798_vm15, %v2895_v30  ;;  %3354 = vrot.lane.b32.xlu0 %v5826_v61, %s4072_s18  ;;  %v2868_v8 = vpop.permute.xlu1 %2867 }
 0x3de   : > { %v3526_v5 = vrot.slane %v3462_v20, %v4550_v33 }
 0x3df   : > { %v2870_v31 = vpop.permute.xlu0 %2869  ;;  %3356 = vrot.lane.b32.xlu1 %v5834_v13, %s4072_s18 }
 0x3e0   : > { %v2896_v17 = vsel %vm1399_vm7, %v2868_v8, %v2870_v31  ;;  %v3522_v31 = vrot.slane %v3462_v20, %v4447_v41 }
 0x3e1   : > { %2912 = vst.msk [vmem:[%s4452_s28 + $0x2f] sm:$0x1] %vm798_vm15, %v2896_v17  ;;  %3358 = vrot.lane.b32.xlu0 %v5841_v62, %s4072_s18  ;;  %v2872_v58 = vpop.permute.xlu1 %2871 }
 0x3e3   : > { %v2874_v10 = vpop.permute.xlu0 %2873  ;;  %3360 = vrot.lane.b32.xlu1 %v5848_v6, %s4072_s18 }
 0x3e4   : > { %v2897_v63 = vsel %vm1399_vm7, %v2872_v58, %v2874_v10  ;;  %v3590_v10 = vrot.slane %v5871_v49, %v4436_v52 }
 0x3e5   : > { %2913 = vst.msk [vmem:[%s4452_s28 + $0x4f] sm:$0x1] %vm798_vm15, %v2897_v63  ;;  %3362 = vrot.lane.b32.xlu0 %v5855_v32, %s4072_s18  ;;  %v2876_v44 = vpop.permute.xlu1 %2875 }
 0x3e7   : > { %v2878_v27 = vpop.permute.xlu0 %2877  ;;  %3380 = vrot.lane.b32.xlu1 %v5804_v37, %s4073_s20  ;;  %v3486_v37 = vrot.slane %v3459_v11, %v4550_v33 }
 0x3e8   : > { %v2898_v47 = vsel %vm1399_vm7, %v2876_v44, %v2878_v27  ;;  %v3598_v44 = vcombine.high %v3590_v10, %v3590_v10  ;;  %v3597_v27 = vrot.slane %v3583_v36, %v4436_v52 }
 0x3e9   : > { %2914 = vst.msk [vmem:[%s4452_s28 + $0x6f] sm:$0x1] %vm798_vm15, %v2898_v47  ;;  %3382 = vrot.lane.b32.xlu0 %v5811_v18, %s4073_s20  ;;  %v2880_v0 = vpop.permute.xlu1 %2879 }
 0x3ea   : > { %v3620_v47 = vrot.slane %v3598_v44, %v4436_v52 }
 0x3eb   : > { %v2882_v21 = vpop.permute.xlu0 %2881  ;;  %3527 = vrot.lane.b32.xlu1 %v3466_v46, %s4076_s25 }
 0x3ec   : > { %v2899_v53 = vsel %vm1399_vm7, %v2880_v0, %v2882_v21  ;;  %v3639_v24 = vrot.slane %v3620_v47, %v4447_v41  ;;  %v3599_v21 = vcombine.high %v3597_v27, %v3597_v27 }
 0x3ed   : > { %2915 = vst.msk [vmem:[%s4452_s28 + $0x8f] sm:$0x1] %vm798_vm15, %v2899_v53  ;;  %3529 = vrot.lane.b32.xlu0 %v3470_v59, %s4076_s25  ;;  %v2884_v9 = vpop.permute.xlu1 %2883  ;;  %v3613_v53 = vrot.slane %v3597_v27, %v4436_v52 }
 0x3ef   : > { %v2886_v1 = vpop.permute.xlu0 %2885  ;;  %3531 = vrot.lane.b32.xlu1 %v3474_v19, %s4076_s25  ;;  %v3627_v19 = vrot.slane %v3599_v21, %v4436_v52 }
 0x3f0   : > { %v2900_v50 = vsel %vm1399_vm7, %v2884_v9, %v2886_v1 }
 0x3f1   : > { %2916 = vst.msk [vmem:[%s4452_s28 + $0xaf] sm:$0x1] %vm798_vm15, %v2900_v50  ;;  %3533 = vrot.lane.b32.xlu0 %v3478_v56, %s4076_s25  ;;  %v2888_v35 = vpop.permute.xlu1 %2887  ;;  %v3651_v56 = vrot.slane %v3613_v53, %v4447_v41  ;;  %v3629_v50 = vcombine.high %v3613_v53, %v3613_v53 }
 0x3f3   : > { %v2890_v14 = vpop.permute.xlu0 %2889  ;;  %3535 = vrot.lane.b32.xlu1 %v3482_v7, %s4076_s25  ;;  %v3631_v7 = vcombine.high %v3627_v19, %v3627_v19 }
 0x3f4   : > { %v2901_v4 = vsel %vm1399_vm7, %v2888_v35, %v2890_v14  ;;  %v3655_v35 = vrot.slane %v3627_v19, %v4447_v41  ;;  %v3659_v14 = vrot.slane %v3629_v50, %v4447_v41 }
 0x3f5   : > { %2917 = vst.msk [vmem:[%s4452_s28 + $0xcf] sm:$0x1] %vm798_vm15, %v2901_v4  ;;  %3537 = vrot.lane.b32.xlu0 %v3486_v37, %s4076_s25  ;;  %v2892_v18 = vpop.permute.xlu1 %2891  ;;  %v3663_v4 = vrot.slane %v3631_v7, %v4447_v41 }
 0x3f7   : > { %v2894_v51 = vpop.permute.xlu0 %2893  ;;  %3539 = vrot.lane.b32.xlu1 %v3490_v43, %s4076_s25 }
 0x3f8   : > { %v2902_v16 = vsel %vm1399_vm7, %v2892_v18, %v2894_v51 }
 0x3f9   : > { %2918 = vst.msk [vmem:[%s4452_s28 + $0xef] sm:$0x1] %vm798_vm15, %v2902_v16  ;;  %3541 = vrot.lane.b32.xlu0 %v3494_v54, %s4076_s25  ;;  %v3001_v40 = vpop.permute.xlu1 %3000 }
 0x3fa   : > { %3024 = vst.msk [vmem:[%s4452_s28 + $0x11] sm:$0x1] %vm798_vm15, %v3001_v40 }
 0x3fb   : > { %v3003_v28 = vpop.permute.xlu0 %3002  ;;  %3543 = vrot.lane.b32.xlu1 %v3498_v38, %s4076_s25 }
 0x3fc   : > { %3025 = vst.msk [vmem:[%s4452_s28 + $0x31] sm:$0x1] %vm798_vm15, %v3003_v28 }
 0x3fd   : > { %3545 = vrot.lane.b32.xlu0 %v3502_v45, %s4076_s25  ;;  %v3005_v15 = vpop.permute.xlu1 %3004 }
 0x3fe   : > { %3026 = vst.msk [vmem:[%s4452_s28 + $0x51] sm:$0x1] %vm798_vm15, %v3005_v15 }
 0x3ff   : > { %v3007_v42 = vpop.permute.xlu0 %3006  ;;  %3547 = vrot.lane.b32.xlu1 %v3506_v23, %s4076_s25 }
 0x400   : > { %3027 = vst.msk [vmem:[%s4452_s28 + $0x71] sm:$0x1] %vm798_vm15, %v3007_v42 }
 0x401   : > { %3549 = vrot.lane.b32.xlu0 %v3510_v29, %s4076_s25  ;;  %v3009_v26 = vpop.permute.xlu1 %3008 }
 0x402   : > { %3028 = vst.msk [vmem:[%s4452_s28 + $0x91] sm:$0x1] %vm798_vm15, %v3009_v26 }
 0x403   : > { %v3011_v30 = vpop.permute.xlu0 %3010  ;;  %3551 = vrot.lane.b32.xlu1 %v3514_v60, %s4076_s25 }
 0x404   : > { %3029 = vst.msk [vmem:[%s4452_s28 + $0xb1] sm:$0x1] %vm798_vm15, %v3011_v30 }
 0x405   : > { %3553 = vrot.lane.b32.xlu0 %v3518_v55, %s4076_s25  ;;  %v3013_v8 = vpop.permute.xlu1 %3012 }
 0x406   : > { %3030 = vst.msk [vmem:[%s4452_s28 + $0xd1] sm:$0x1] %vm798_vm15, %v3013_v8 }
 0x407   : > { %v3015_v17 = vpop.permute.xlu0 %3014  ;;  %3555 = vrot.lane.b32.xlu1 %v3522_v31, %s4076_s25 }
 0x408   : > { %3031 = vst.msk [vmem:[%s4452_s28 + $0xf1] sm:$0x1] %vm798_vm15, %v3015_v17 }
 0x409   : > { %3557 = vrot.lane.b32.xlu0 %v3526_v5, %s4076_s25  ;;  %v3033_v58 = vpop.permute.xlu1 %3032 }
 0x40a   : > { %3056 = vst.msk [vmem:[%s4452_s28 + $0x13] sm:$0x1] %vm798_vm15, %v3033_v58 }
 0x40b   : > { %v3035_v63 = vpop.permute.xlu0 %3034  ;;  %3384 = vrot.lane.b32.xlu1 %v5818_v48, %s4073_s20 }
 0x40c   : > { %3057 = vst.msk [vmem:[%s4452_s28 + $0x33] sm:$0x1] %vm798_vm15, %v3035_v63 }
 0x40d   : > { %3386 = vrot.lane.b32.xlu0 %v5826_v61, %s4073_s20  ;;  %v3037_v33 = vpop.permute.xlu1 %3036  ;;  %v3606_v61 = vrot.slane %v3590_v10, %v4436_v52 }
 0x40e   : > { %3058 = vst.msk [vmem:[%s4452_s28 + $0x53] sm:$0x1] %vm798_vm15, %v3037_v33 }
 0x40f   : > { %v3039_v12 = vpop.permute.xlu0 %3038  ;;  %3388 = vrot.lane.b32.xlu1 %v5834_v13, %s4073_s20  ;;  %v3628_v0 = vcombine.high %v3606_v61, %v3606_v61 }
 0x410   : > { %3059 = vst.msk [vmem:[%s4452_s28 + $0x73] sm:$0x1] %vm798_vm15, %v3039_v12 }
 0x411   : > { %3390 = vrot.lane.b32.xlu0 %v5841_v62, %s4073_s20  ;;  %v3041_v48 = vpop.permute.xlu1 %3040  ;;  %v3635_v62 = vrot.slane %v3606_v61, %v4447_v41 }
 0x412   : > { %3060 = vst.msk [vmem:[%s4452_s28 + $0x93] sm:$0x1] %vm798_vm15, %v3041_v48 }
 0x413   : > { %v3043_v49 = vpop.permute.xlu0 %3042  ;;  %3392 = vrot.lane.b32.xlu1 %v5848_v6, %s4073_s20  ;;  %v3630_v6 = vcombine.high %v3620_v47, %v3620_v47 }
 0x414   : > { %3061 = vst.msk [vmem:[%s4452_s28 + $0xb3] sm:$0x1] %vm798_vm15, %v3043_v49 }
 0x415   : > { %3394 = vrot.lane.b32.xlu0 %v5855_v32, %s4073_s20  ;;  %v3045_v13 = vpop.permute.xlu1 %3044  ;;  %v3643_v32 = vrot.slane %v3628_v0, %v4447_v41  ;;  %v3647_v9 = vrot.slane %v3630_v6, %v4447_v41 }
 0x416   : > { %3062 = vst.msk [vmem:[%s4452_s28 + $0xd3] sm:$0x1] %vm798_vm15, %v3045_v13 }
 0x417   : > { %v3047_v46 = vpop.permute.xlu0 %3046  ;;  %3664 = vrot.lane.b32.xlu1 %v3635_v62, %s4075_s24 }
 0x418   : > { %3063 = vst.msk [vmem:[%s4452_s28 + $0xf3] sm:$0x1] %vm798_vm15, %v3047_v46 }
 0x419   : > { %3666 = vrot.lane.b32.xlu0 %v3639_v24, %s4075_s24  ;;  %v3180_v59 = vpop.permute.xlu1 %3179 }
 0x41b   : > { %v3182_v2 = vpop.permute.xlu0 %3181  ;;  %3668 = vrot.lane.b32.xlu1 %v3643_v32, %s4075_s24 }
 0x41c   : > { %v3211_v11 = vsel %vm1716_vm9, %v3180_v59, %v3182_v2 }
 0x41d   : > { %3227 = vst.msk [vmem:[%s4452_s28 + $0x15] sm:$0x1] %vm798_vm15, %v3211_v11  ;;  %3670 = vrot.lane.b32.xlu0 %v3647_v9, %s4075_s24  ;;  %v3184_v1 = vpop.permute.xlu1 %3183 }
 0x41f   : > { %v3186_v22 = vpop.permute.xlu0 %3185  ;;  %3672 = vrot.lane.b32.xlu1 %v3651_v56, %s4075_s24 }
 0x420   : > { %v3212_v52 = vsel %vm1716_vm9, %v3184_v1, %v3186_v22 }
 0x421   : > { %3228 = vst.msk [vmem:[%s4452_s28 + $0x35] sm:$0x1] %vm798_vm15, %v3212_v52  ;;  %3674 = vrot.lane.b32.xlu0 %v3655_v35, %s4075_s24  ;;  %v3188_v25 = vpop.permute.xlu1 %3187 }
 0x423   : > { %v3190_v37 = vpop.permute.xlu0 %3189  ;;  %3676 = vrot.lane.b32.xlu1 %v3659_v14, %s4075_s24 }
 0x424   : > { %v3213_v39 = vsel %vm1716_vm9, %v3188_v25, %v3190_v37 }
 0x425   : > { %3229 = vst.msk [vmem:[%s4452_s28 + $0x55] sm:$0x1] %vm798_vm15, %v3213_v39  ;;  %3678 = vrot.lane.b32.xlu0 %v3663_v4, %s4075_s24  ;;  %v3192_v18 = vpop.permute.xlu1 %3191 }
 0x427   : > { %v3194_v43 = vpop.permute.xlu0 %3193 }
 0x428   : > { %v3214_v34 = vsel %vm1716_vm9, %v3192_v18, %v3194_v43 }
 0x429   : > { %3230 = vst.msk [vmem:[%s4452_s28 + $0x75] sm:$0x1] %vm798_vm15, %v3214_v34  ;;  %v3196_v51 = vpop.permute.xlu1 %3195 }
 0x42b   : > { %v3198_v54 = vpop.permute.xlu0 %3197 }
 0x42c   : > { %v3215_v16 = vsel %vm1716_vm9, %v3196_v51, %v3198_v54 }
 0x42d   : > { %3231 = vst.msk [vmem:[%s4452_s28 + $0x95] sm:$0x1] %vm798_vm15, %v3215_v16  ;;  %v3200_v41 = vpop.permute.xlu1 %3199 }
 0x42f   : > { %v3202_v40 = vpop.permute.xlu0 %3201 }
 0x430   : > { %v3216_v38 = vsel %vm1716_vm9, %v3200_v41, %v3202_v40 }
 0x431   : > { %3232 = vst.msk [vmem:[%s4452_s28 + $0xb5] sm:$0x1] %vm798_vm15, %v3216_v38  ;;  %v3204_v57 = vpop.permute.xlu1 %3203 }
 0x433   : > { %v3206_v28 = vpop.permute.xlu0 %3205 }
 0x434   : > { %v3217_v45 = vsel %vm1716_vm9, %v3204_v57, %v3206_v28 }
 0x435   : > { %3233 = vst.msk [vmem:[%s4452_s28 + $0xd5] sm:$0x1] %vm798_vm15, %v3217_v45  ;;  %v3208_v15 = vpop.permute.xlu1 %3207 }
 0x437   : > { %v3210_v23 = vpop.permute.xlu0 %3209 }
 0x438   : > { %v3218_v3 = vsel %vm1716_vm9, %v3208_v15, %v3210_v23 }
 0x439   : > { %3234 = vst.msk [vmem:[%s4452_s28 + $0xf5] sm:$0x1] %vm798_vm15, %v3218_v3  ;;  %v3317_v42 = vpop.permute.xlu1 %3316 }
 0x43a   : > { %3340 = vst.msk [vmem:[%s4452_s28 + $0x17] sm:$0x1] %vm798_vm15, %v3317_v42 }
 0x43b   : > { %v3319_v29 = vpop.permute.xlu0 %3318 }
 0x43c   : > { %3341 = vst.msk [vmem:[%s4452_s28 + $0x37] sm:$0x1] %vm798_vm15, %v3319_v29 }
 0x43d   : > { %v3321_v26 = vpop.permute.xlu1 %3320 }
 0x43e   : > { %3342 = vst.msk [vmem:[%s4452_s28 + $0x57] sm:$0x1] %vm798_vm15, %v3321_v26 }
 0x43f   : > { %v3323_v60 = vpop.permute.xlu0 %3322 }
 0x440   : > { %3343 = vst.msk [vmem:[%s4452_s28 + $0x77] sm:$0x1] %vm798_vm15, %v3323_v60 }
 0x441   : > { %v3325_v20 = vpop.permute.xlu1 %3324 }
 0x442   : > { %3344 = vst.msk [vmem:[%s4452_s28 + $0x97] sm:$0x1] %vm798_vm15, %v3325_v20 }
 0x443   : > { %v3327_v30 = vpop.permute.xlu0 %3326 }
 0x444   : > { %3345 = vst.msk [vmem:[%s4452_s28 + $0xb7] sm:$0x1] %vm798_vm15, %v3327_v30 }
 0x445   : > { %v3329_v55 = vpop.permute.xlu1 %3328 }
 0x446   : > { %3346 = vst.msk [vmem:[%s4452_s28 + $0xd7] sm:$0x1] %vm798_vm15, %v3329_v55 }
 0x447   : > { %v3331_v8 = vpop.permute.xlu0 %3330 }
 0x448   : > { %3347 = vst.msk [vmem:[%s4452_s28 + $0xf7] sm:$0x1] %vm798_vm15, %v3331_v8 }
 0x449   : > { %v3349_v31 = vpop.permute.xlu1 %3348 }
 0x44a   : > { %3372 = vst.msk [vmem:[%s4452_s28 + $0x19] sm:$0x1] %vm798_vm15, %v3349_v31 }
 0x44b   : > { %v3351_v17 = vpop.permute.xlu0 %3350 }
 0x44c   : > { %3373 = vst.msk [vmem:[%s4452_s28 + $0x39] sm:$0x1] %vm798_vm15, %v3351_v17 }
 0x44d   : > { %v3353_v5 = vpop.permute.xlu1 %3352 }
 0x44e   : > { %3374 = vst.msk [vmem:[%s4452_s28 + $0x59] sm:$0x1] %vm798_vm15, %v3353_v5 }
 0x44f   : > { %v3355_v58 = vpop.permute.xlu0 %3354 }
 0x450   : > { %3375 = vst.msk [vmem:[%s4452_s28 + $0x79] sm:$0x1] %vm798_vm15, %v3355_v58 }
 0x451   : > { %v3357_v10 = vpop.permute.xlu1 %3356 }
 0x452   : > { %3376 = vst.msk [vmem:[%s4452_s28 + $0x99] sm:$0x1] %vm798_vm15, %v3357_v10 }
 0x453   : > { %v3359_v63 = vpop.permute.xlu0 %3358 }
 0x454   : > { %3377 = vst.msk [vmem:[%s4452_s28 + $0xb9] sm:$0x1] %vm798_vm15, %v3359_v63 }
 0x455   : > { %v3361_v33 = vpop.permute.xlu1 %3360 }
 0x456   : > { %3378 = vst.msk [vmem:[%s4452_s28 + $0xd9] sm:$0x1] %vm798_vm15, %v3361_v33 }
 0x457   : > { %v3363_v36 = vpop.permute.xlu0 %3362 }
 0x458   : > { %3379 = vst.msk [vmem:[%s4452_s28 + $0xf9] sm:$0x1] %vm798_vm15, %v3363_v36 }
 0x459   : > { %v3381_v44 = vpop.permute.xlu1 %3380 }
 0x45a   : > { %3404 = vst.msk [vmem:[%s4452_s28 + $0x1b] sm:$0x1] %vm798_vm15, %v3381_v44 }
 0x45b   : > { %v3383_v12 = vpop.permute.xlu0 %3382 }
 0x45c   : > { %3405 = vst.msk [vmem:[%s4452_s28 + $0x3b] sm:$0x1] %vm798_vm15, %v3383_v12 }
 0x45d   : > { %v3528_v48 = vpop.permute.xlu1 %3527 }
 0x45f   : > { %v3530_v61 = vpop.permute.xlu0 %3529 }
 0x460   : > { %v3559_v27 = vsel %vm2065_vm11, %v3528_v48, %v3530_v61 }
 0x461   : > { %3575 = vst.msk [vmem:[%s4452_s28 + $0x1d] sm:$0x1] %vm798_vm15, %v3559_v27  ;;  %v3532_v49 = vpop.permute.xlu1 %3531 }
 0x463   : > { %v3534_v47 = vpop.permute.xlu0 %3533 }
 0x464   : > { %v3560_v13 = vsel %vm2065_vm11, %v3532_v49, %v3534_v47 }
 0x465   : > { %3576 = vst.msk [vmem:[%s4452_s28 + $0x3d] sm:$0x1] %vm798_vm15, %v3560_v13  ;;  %v3536_v62 = vpop.permute.xlu1 %3535 }
 0x467   : > { %v3538_v0 = vpop.permute.xlu0 %3537 }
 0x468   : > { %v3561_v46 = vsel %vm2065_vm11, %v3536_v62, %v3538_v0 }
 0x469   : > { %3577 = vst.msk [vmem:[%s4452_s28 + $0x5d] sm:$0x1] %vm798_vm15, %v3561_v46  ;;  %v3540_v24 = vpop.permute.xlu1 %3539 }
 0x46b   : > { %v3542_v6 = vpop.permute.xlu0 %3541 }
 0x46c   : > { %v3562_v21 = vsel %vm2065_vm11, %v3540_v24, %v3542_v6 }
 0x46d   : > { %3578 = vst.msk [vmem:[%s4452_s28 + $0x7d] sm:$0x1] %vm798_vm15, %v3562_v21  ;;  %v3544_v59 = vpop.permute.xlu1 %3543 }
 0x46f   : > { %v3546_v32 = vpop.permute.xlu0 %3545 }
 0x470   : > { %v3563_v53 = vsel %vm2065_vm11, %v3544_v59, %v3546_v32 }
 0x471   : > { %3579 = vst.msk [vmem:[%s4452_s28 + $0x9d] sm:$0x1] %vm798_vm15, %v3563_v53  ;;  %v3548_v2 = vpop.permute.xlu1 %3547 }
 0x473   : > { %v3550_v9 = vpop.permute.xlu0 %3549 }
 0x474   : > { %v3564_v19 = vsel %vm2065_vm11, %v3548_v2, %v3550_v9 }
 0x475   : > { %3580 = vst.msk [vmem:[%s4452_s28 + $0xbd] sm:$0x1] %vm798_vm15, %v3564_v19  ;;  %v3552_v11 = vpop.permute.xlu1 %3551 }
 0x477   : > { %v3554_v1 = vpop.permute.xlu0 %3553 }
 0x478   : > { %v3565_v56 = vsel %vm2065_vm11, %v3552_v11, %v3554_v1 }
 0x479   : > { %3581 = vst.msk [vmem:[%s4452_s28 + $0xdd] sm:$0x1] %vm798_vm15, %v3565_v56  ;;  %v3556_v50 = vpop.permute.xlu1 %3555 }
 0x47b   : > { %v3558_v22 = vpop.permute.xlu0 %3557 }
 0x47c   : > { %v3566_v35 = vsel %vm2065_vm11, %v3556_v50, %v3558_v22 }
 0x47d   : > { %3582 = vst.msk [vmem:[%s4452_s28 + $0xfd] sm:$0x1] %vm798_vm15, %v3566_v35  ;;  %v3385_v7 = vpop.permute.xlu1 %3384 }
 0x47e   : > { %3406 = vst.msk [vmem:[%s4452_s28 + $0x5b] sm:$0x1] %vm798_vm15, %v3385_v7 }
 0x47f   : > { %v3387_v52 = vpop.permute.xlu0 %3386 }
 0x480   : > { %3407 = vst.msk [vmem:[%s4452_s28 + $0x7b] sm:$0x1] %vm798_vm15, %v3387_v52 }
 0x481   : > { %v3389_v25 = vpop.permute.xlu1 %3388 }
 0x482   : > { %3408 = vst.msk [vmem:[%s4452_s28 + $0x9b] sm:$0x1] %vm798_vm15, %v3389_v25 }
 0x483   : > { %v3391_v14 = vpop.permute.xlu0 %3390 }
 0x484   : > { %3409 = vst.msk [vmem:[%s4452_s28 + $0xbb] sm:$0x1] %vm798_vm15, %v3391_v14 }
 0x485   : > { %v3393_v37 = vpop.permute.xlu1 %3392 }
 0x486   : > { %3410 = vst.msk [vmem:[%s4452_s28 + $0xdb] sm:$0x1] %vm798_vm15, %v3393_v37 }
 0x487   : > { %v3395_v4 = vpop.permute.xlu0 %3394 }
 0x488   : > { %3411 = vst.msk [vmem:[%s4452_s28 + $0xfb] sm:$0x1] %vm798_vm15, %v3395_v4 }
 0x489   : > { %v3665_v39 = vpop.permute.xlu1 %3664 }
 0x48a   : > { %3688 = vst.msk [vmem:[%s4452_s28 + $0x1f] sm:$0x1] %vm798_vm15, %v3665_v39 }
 0x48b   : > { %v3667_v18 = vpop.permute.xlu0 %3666 }
 0x48c   : > { %3689 = vst.msk [vmem:[%s4452_s28 + $0x3f] sm:$0x1] %vm798_vm15, %v3667_v18 }
 0x48d   : > { %v3669_v43 = vpop.permute.xlu1 %3668 }
 0x48e   : > { %3690 = vst.msk [vmem:[%s4452_s28 + $0x5f] sm:$0x1] %vm798_vm15, %v3669_v43 }
 0x48f   : > { %v3671_v34 = vpop.permute.xlu0 %3670 }
 0x490   : > { %3691 = vst.msk [vmem:[%s4452_s28 + $0x7f] sm:$0x1] %vm798_vm15, %v3671_v34 }
 0x491   : > { %v3673_v51 = vpop.permute.xlu1 %3672 }
 0x492   : > { %3692 = vst.msk [vmem:[%s4452_s28 + $0x9f] sm:$0x1] %vm798_vm15, %v3673_v51 }
 0x493   : > { %v3675_v54 = vpop.permute.xlu0 %3674 }
 0x494   : > { %3693 = vst.msk [vmem:[%s4452_s28 + $0xbf] sm:$0x1] %vm798_vm15, %v3675_v54 }
 0x495   : > { %v3677_v16 = vpop.permute.xlu1 %3676 }
 0x496   : > { %3694 = vst.msk [vmem:[%s4452_s28 + $0xdf] sm:$0x1] %vm798_vm15, %v3677_v16 }
 0x497   : > { %v3679_v41 = vpop.permute.xlu0 %3678 }
 0x498   : > { %3695 = vst.msk [vmem:[%s4452_s28 + $0xff] sm:$0x1] %vm798_vm15, %v3679_v41 }
 0x499   : > { %3989 = shalt.err (!%p3986_p5)
}
 0x49a   : > { %s3990_s26 = scalar_lea.hbm %s6137_s3, 4096  ;;  %s3994_s16 = scalar_lea.hbm %s6195_s2, 8192 }
 0x49b   : > { %p3991_p6 = scmp.ne.s32.totalorder %s6137_s3, %s3990_s26  ;;  %p3995_p10 = scmp.lt.s32.totalorder %s6137_s3, %s6195_s2 }
 0x49c   : > { %p3996_p11 = scmp.lt.s32.totalorder %s3994_s16, %s3990_s26 }
 0x49d   : > { %p3992_p7 = pnand %p3991_p6, %p4134_p4 }
 0x49e   : > { %p3997_p12 = por %p3996_p11, %p3995_p10 }
 0x49f   : > { %p3993_p9 = pneg %p3992_p7 }
 0x4a1   : > { %p3998_p13 = pnand %p3997_p12, %p3993_p9 }
 0x4a3   : > { %4001 = shalt.err (!%p3998_p13)
}
 0x4a4   : > { %s4078_s23 = smov 128  }
 0x4a5   : > { %3870 = dma.vmem_to_hbm [thread:$0]  (%p4134_p4), %s6141_s5, 4096, %s6137_s3, %s6147_s12, %s4078_s23, %s4078_s23, %s4076_s25  }
 0x4a6 PF: > { %p3876_p0 = scmp.ge.s32.totalorder %s4052_s14, 2  ;;  %s3727_s24 = sand.u32 1, %s4032_s9  }
 0x4a7   : > { %s3728_s30 = scalar_lea.sflag [#allocation3], %s3727_s24 }
 0x4a8   : > { %p3873_p1 = pnand %p3876_p0, %p4141_p8 }
 0x4aa   : > { %p3874_p2 = pneg %p3873_p1 }
 0x4ac   : > { %4027 = dma.done.wait (%p3874_p2), %s3728_s30, 4096  }
 0x4ad   : > { %4029 = vsyncadd (%p3874_p2), %s3728_s30, 4294963200  ;;  %s15_s14 = sadd.s32 1, %s4052_s14   ;;  %s6206_s9 = smov %s4036_s10 }
 0x4ae   : > { %p12_p3 = scmp.ge.s32.totalorder %s15_s14, 4   ;;  %s6207_s10 = smov %s4040_s11 }
 0x4af   : > { %s6208_s11 = smov %s4147_s22  ;;  %s6209_s12 = smov %s4048_s13 }
 0x4b0   : > { %s6210_s13 = smov %s6212_s17  ;;  %14 = sbr.rel (!%p12_p3) target bundleno = 4 (0x4), region = 63 }
 0x4b5   :  { %3733 = vsyncpa [#allocation3], 1 }
 0x4b6   :  { %3735 = vsyncpa [#allocation3 + $0x1], 1 }

</bundles_post_ra>
